<compile_context>
chip_gen: v5e
topology: v5e:2x2
jax: 0.10.0
libtpu: 0.0.40
codegen_flags: <defaults>
</compile_context>

<pallas_src>
import functools

import numpy as np
import jax
import jax.numpy as jnp
from jax.experimental import pallas as pl
from jax.experimental.pallas import tpu as pltpu


# ----------------------------------------------------------------------------
# In-kernel helpers
# ----------------------------------------------------------------------------
def _gelu_tanh(x):
    # tanh-based GELU so the transcendental lands on the EUP slot.
    # TODO(synk): PyTorch nn.GELU() default is the exact-erf variant; the tanh
    # approximation differs by up to ~1e-3 (acceptable for inference).
    c = 0.7978845608028654  # sqrt(2/pi)
    return 0.5 * x * (1.0 + jnp.tanh(c * (x + 0.044715 * x * x * x)))


def _mm(a_f32, w_bf16, b_f32):
    """(R, K) f32 @ (K, N) bf16 + (1, N) f32 -> (R, N) f32 (MXU, f32 accum)."""
    return jnp.dot(a_f32.astype(jnp.bfloat16), w_bf16,
                   preferred_element_type=jnp.float32) + b_f32


def _multihead_attention(q3, k3, v3_list, bias, num_heads, dh):
    """q3/k3/v3*: (nW, N, C) f32, bias: (nW, nh, N, N) f32.

    Head loop statically unrolled (nh is tiny). The softmax probabilities are
    computed once and applied to every V in v3_list (Scale / Shift share
    q = k = processed Key). Returns one (nW, N, C) f32 array per V.
    """
    outs = [[] for _ in v3_list]
    for h in range(num_heads):
        sl = slice(h * dh, (h + 1) * dh)
        qh = q3[:, :, sl].astype(jnp.bfloat16)
        kh = k3[:, :, sl].astype(jnp.bfloat16)
        logits = jnp.einsum('wqd,wkd->wqk', qh, kh,
                            preferred_element_type=jnp.float32)
        logits = logits + bias[:, h]
        logits = logits - jnp.max(logits, axis=-1, keepdims=True)
        p = jnp.exp(logits)
        p = p * pl.reciprocal(jnp.sum(p, axis=-1, keepdims=True), approx=True)
        pb = p.astype(jnp.bfloat16)
        for i, v3 in enumerate(v3_list):
            vh = v3[:, :, sl].astype(jnp.bfloat16)
            outs[i].append(jnp.einsum('wqk,wkd->wqd', pb, vh,
                                      preferred_element_type=jnp.float32))
    return [jnp.concatenate(o, axis=-1) for o in outs]


# ----------------------------------------------------------------------------
# Pallas kernels
# ----------------------------------------------------------------------------
def _self_attn_kernel(x_ref, bias_ref, wqkv_ref, bqkv_ref, wp_ref, bp_ref,
                      o_ref, *, num_heads, scale):
    """Key self-attention (q = k = v = Key), grid = (B,).

    Blocks:  x / o : (1, nW, N, C);  bias : (nW, nh, N, N) full;
             wqkv_t: (C, 3C) bf16;   bqkv : (1, 3C);
             wp_t  : (C, C)  bf16;   bp   : (1, C)
    Output includes the fused residual (out = v + proj(attn)).
    """
    _, nW, N, C = x_ref.shape
    dh = C // num_heads

    x2d = x_ref[0].reshape(nW * N, C)                         # (R, C) f32
    qkv = _mm(x2d, wqkv_ref[...], bqkv_ref[...])              # (R, 3C) f32
    q3 = qkv[:, :C].reshape(nW, N, C) * scale
    k3 = qkv[:, C:2 * C].reshape(nW, N, C)
    v3 = qkv[:, 2 * C:].reshape(nW, N, C)

    (attn_out,) = _multihead_attention(q3, k3, (v3,), bias_ref[...],
                                       num_heads, dh)         # (nW, N, C)
    proj = _mm(attn_out.reshape(nW * N, C), wp_ref[...], bp_ref[...])
    o_ref[0] = (x2d + proj).reshape(nW, N, C).astype(o_ref.dtype)


def _dual_cross_attn_kernel(xqk_ref, v1_ref, v2_ref, bias_ref,
                            wqk_ref, bqk_ref, wv_ref, bv_ref, wp_ref, bp_ref,
                            o1_ref, o2_ref, *, num_heads, scale):
    """Scale & Shift attention sharing q = k = processed Key, grid = (B,).

    Softmax is computed once per head and applied to both projected V inputs.
    Outputs include the fused residuals (o_i = v_i + proj(attn_i)).
    """
    _, nW, N, C = xqk_ref.shape
    dh = C // num_heads

    xqk2d = xqk_ref[0].reshape(nW * N, C)
    v1_2d = v1_ref[0].reshape(nW * N, C)
    v2_2d = v2_ref[0].reshape(nW * N, C)

    qk = _mm(xqk2d, wqk_ref[...], bqk_ref[...])               # (R, 2C) f32
    q3 = qk[:, :C].reshape(nW, N, C) * scale
    k3 = qk[:, C:].reshape(nW, N, C)

    wv, bv = wv_ref[...], bv_ref[...]
    v1p = _mm(v1_2d, wv, bv).reshape(nW, N, C)
    v2p = _mm(v2_2d, wv, bv).reshape(nW, N, C)

    a1, a2 = _multihead_attention(q3, k3, (v1p, v2p), bias_ref[...],
                                  num_heads, dh)

    wp, bp = wp_ref[...], bp_ref[...]
    p1 = _mm(a1.reshape(nW * N, C), wp, bp)
    p2 = _mm(a2.reshape(nW * N, C), wp, bp)
    o1_ref[0] = (v1_2d + p1).reshape(nW, N, C).astype(o1_ref.dtype)
    o2_ref[0] = (v2_2d + p2).reshape(nW, N, C).astype(o2_ref.dtype)


def _mlp_kernel(x_ref, w1_ref, b1_ref, w2_ref, b2_ref, o_ref):
    """Transposed-layout MLP with fused residual, grid = (S,).

    x / o : (1, C, M)  (M = B*H*W rows in the lane dim -> lane-dense stores)
    w1    : (1, hidden, C) bf16,  b1: (1, hidden, 1)
    w2    : (1, C, hidden) bf16,  b2: (1, C, 1)
    out = x + W2 @ gelu(W1 @ x + b1) + b2
    """
    x = x_ref[0]                                              # (C, M) f32
    xb = x.astype(jnp.bfloat16)
    h = jnp.dot(w1_ref[0], xb, preferred_element_type=jnp.float32) + b1_ref[0]
    h = _gelu_tanh(h)
    y = jnp.dot(w2_ref[0], h.astype(jnp.bfloat16),
                preferred_element_type=jnp.float32) + b2_ref[0]
    o_ref[0] = (x + y).astype(o_ref.dtype)


# ----------------------------------------------------------------------------
# pallas_call wrappers
# ----------------------------------------------------------------------------
def _full_spec(a):
    nd = a.ndim
    return pl.BlockSpec(a.shape, lambda b, _nd=nd: (0,) * _nd)


def self_attention_pallas(x_win, bias, ap):
    B, nW, N, C = x_win.shape
    nh = ap["num_heads"]
    kernel = functools.partial(_self_attn_kernel, num_heads=nh,
                               scale=float(C // nh) ** -0.5)
    win_spec = pl.BlockSpec((1, nW, N, C), lambda b: (b, 0, 0, 0))
    return pl.pallas_call(
        kernel,
        out_shape=jax.ShapeDtypeStruct((B, nW, N, C), x_win.dtype),
        grid_spec=pltpu.PrefetchScalarGridSpec(
            num_scalar_prefetch=0,
            grid=(B,),
            in_specs=[win_spec, _full_spec(bias),
                      _full_spec(ap["wqkv_t"]), _full_spec(ap["bqkv"]),
                      _full_spec(ap["wp_t"]), _full_spec(ap["bp"])],
            out_specs=win_spec,
        ),
        compiler_params=pltpu.CompilerParams(
            dimension_semantics=("parallel",)),
    )(x_win, bias, ap["wqkv_t"], ap["bqkv"], ap["wp_t"], ap["bp"])


def dual_attention_pallas(xqk_win, v1_win, v2_win, bias, ap):
    B, nW, N, C = xqk_win.shape
    nh = ap["num_heads"]
    kernel = functools.partial(_dual_cross_attn_kernel, num_heads=nh,
                               scale=float(C // nh) ** -0.5)
    win_spec = pl.BlockSpec((1, nW, N, C), lambda b: (b, 0, 0, 0))
    return pl.pallas_call(
        kernel,
        out_shape=(jax.ShapeDtypeStruct((B, nW, N, C), v1_win.dtype),
                   jax.ShapeDtypeStruct((B, nW, N, C), v2_win.dtype)),
        grid_spec=pltpu.PrefetchScalarGridSpec(
            num_scalar_prefetch=0,
            grid=(B,),
            in_specs=[win_spec, win_spec, win_spec, _full_spec(bias),
                      _full_spec(ap["wqk_t"]), _full_spec(ap["bqk"]),
                      _full_spec(ap["wv_t"]), _full_spec(ap["bv"]),
                      _full_spec(ap["wp_t"]), _full_spec(ap["bp"])],
            out_specs=[win_spec, win_spec],
        ),
        compiler_params=pltpu.CompilerParams(
            dimension_semantics=("parallel",)),
    )(xqk_win, v1_win, v2_win, bias,
      ap["wqk_t"], ap["bqk"], ap["wv_t"], ap["bv"], ap["wp_t"], ap["bp"])


def mlp_pallas(xT_stack, mp):
    S, C, M = xT_stack.shape
    hid = mp["w1"].shape[1]
    x_spec = pl.BlockSpec((1, C, M), lambda s: (s, 0, 0))
    return pl.pallas_call(
        _mlp_kernel,
        out_shape=jax.ShapeDtypeStruct((S, C, M), xT_stack.dtype),
        grid_spec=pltpu.PrefetchScalarGridSpec(
            num_scalar_prefetch=0,
            grid=(S,),
            in_specs=[x_spec,
                      pl.BlockSpec((1, hid, C), lambda s: (s, 0, 0)),
                      pl.BlockSpec((1, hid, 1), lambda s: (s, 0, 0)),
                      pl.BlockSpec((1, C, hid), lambda s: (s, 0, 0)),
                      pl.BlockSpec((1, C, 1), lambda s: (s, 0, 0))],
            out_specs=x_spec,
        ),
        compiler_params=pltpu.CompilerParams(
            dimension_semantics=("parallel",)),
    )(xT_stack, mp["w1"], mp["b1"], mp["w2"], mp["b2"])


# ----------------------------------------------------------------------------
# JAX glue (window partition / reverse, rolls, bias construction)
# ----------------------------------------------------------------------------
def _window_partition(x, ws):
    B, H, W, C = x.shape
    x = x.reshape(B, H // ws[0], ws[0], W // ws[1], ws[1], C)
    x = x.transpose(0, 1, 3, 2, 4, 5)
    return x.reshape(B, (H // ws[0]) * (W // ws[1]), ws[0] * ws[1], C)


def _window_reverse(xw, ws, B, H, W, C):
    xw = xw.reshape(B, H // ws[0], W // ws[1], ws[0], ws[1], C)
    xw = xw.transpose(0, 1, 3, 2, 4, 5)
    return xw.reshape(B, H, W, C)


def _make_shift_mask(H, W, ws, shift):
    mask = np.zeros((H, W), dtype=np.float32)
    h_slices = ((0, -ws[0]), (-ws[0], -shift[0]), (-shift[0], None))
    w_slices = ((0, -ws[1]), (-ws[1], -shift[1]), (-shift[1], None))
    count = 0
    for hs in h_slices:
        for wsl in w_slices:
            mask[hs[0]:hs[1], wsl[0]:wsl[1]] = count
            count += 1
    mask = mask.reshape(H // ws[0], ws[0], W // ws[1], ws[1])
    mask = mask.transpose(0, 2, 1, 3).reshape(-1, ws[0] * ws[1])   # [nW, N]
    am = mask[:, None, :] - mask[:, :, None]                       # [nW, N, N]
    am = np.where(am != 0, -100.0, 0.0).astype(np.float32)
    return jnp.asarray(am)


def _relative_position_bias(table, ws, num_heads):
    coords_h = np.arange(ws[0])
    coords_w = np.arange(ws[1])
    coords = np.stack(np.meshgrid(coords_h, coords_w, indexing="ij"))
    coords_flat = coords.reshape(2, -1)
    rel = coords_flat[:, :, None] - coords_flat[:, None, :]
    rel = rel.transpose(1, 2, 0).copy()
    rel[:, :, 0] += ws[0] - 1
    rel[:, :, 1] += ws[1] - 1
    rel[:, :, 0] *= 2 * ws[1] - 1
    idx = rel.sum(-1).reshape(-1)
    N = ws[0] * ws[1]
    bias = table[jnp.asarray(idx)].reshape(N, N, num_heads)
    return bias.transpose(2, 0, 1)                                 # [nh, N, N]


def _resolve_shift(H, W, ws, shift):
    sh = list(shift)
    if ws[0] >= H:
        sh[0] = 0
    if ws[1] >= W:
        sh[1] = 0
    return sh


def _prep_windows(x, ws, shift):
    if sum(shift) > 0:
        x = jnp.roll(x, (-shift[0], -shift[1]), axis=(1, 2))
    return _window_partition(x, ws)


def _finish_windows(xw, ws, shift, B, H, W, C):
    x = _window_reverse(xw, ws, B, H, W, C)
    if sum(shift) > 0:
        x = jnp.roll(x, (shift[0], shift[1]), axis=(1, 2))
    return x


def _attn_bias(ap, H, W, ws, shift, num_heads):
    nW = (H // ws[0]) * (W // ws[1])
    rel = ap["rel_bias"]                                           # [nh, N, N]
    if sum(shift) > 0:
        mask = _make_shift_mask(H, W, ws, shift)                   # [nW, N, N]
        return rel[None, :, :, :] + mask[:, None, :, :]            # [nW,nh,N,N]
    N = ws[0] * ws[1]
    return jnp.broadcast_to(rel[None], (nW, num_heads, N, N))


def key_self_attention(key_x, ap, window_size, shift_size, num_heads):
    # returns Key + attn(Key, Key, Key); residual fused in-kernel.
    B, H, W, C = key_x.shape
    ws = list(window_size)
    sh = _resolve_shift(H, W, ws, shift_size)
    # TODO(synk): the F.pad path for non-divisible H/W is omitted (not hit here).
    xw = _prep_windows(key_x, ws, sh)
    bias = _attn_bias(ap, H, W, ws, sh, num_heads)
    ow = self_attention_pallas(xw, bias, ap)
    return _finish_windows(ow, ws, sh, B, H, W, C)


def dual_cross_attention(key_x, scale_x, shift_x, ap,
                         window_size, shift_size, num_heads):
    # returns (Scale + attn(K,K,Scale), Shift + attn(K,K,Shift)); residuals fused.
    B, H, W, C = key_x.shape
    ws = list(window_size)
    sh = _resolve_shift(H, W, ws, shift_size)
    qkw = _prep_windows(key_x, ws, sh)
    v1w = _prep_windows(scale_x, ws, sh)
    v2w = _prep_windows(shift_x, ws, sh)
    bias = _attn_bias(ap, H, W, ws, sh, num_heads)
    o1w, o2w = dual_attention_pallas(qkw, v1w, v2w, bias, ap)
    return (_finish_windows(o1w, ws, sh, B, H, W, C),
            _finish_windows(o2w, ws, sh, B, H, W, C))


def mlp_fwd(x_list, mp):
    # returns [x + MLP(x)] for each x; residual fused in-kernel.
    B, H, W, C = x_list[0].shape
    M = B * H * W
    xT = jnp.stack([x.reshape(M, C).T for x in x_list])            # (S, C, M)
    outT = mlp_pallas(xT, mp)                                      # (S, C, M)
    return [outT[s].T.reshape(B, H, W, C) for s in range(len(x_list))]


def style_encoder_forward(Key, Scale, Shift, params,
                          window_size, shift_size, num_heads):
    # if_use_processed_Key_in_Scale_and_Shift_calculation = True branch,
    # norm_layer = None, exclude_MLP_after = True,
    # StochasticDepth / Dropout = identity (eval-mode semantics).
    ap = params["attn"]
    Key = key_self_attention(Key, ap, window_size, shift_size, num_heads)
    Key = mlp_fwd([Key], params["mlp_key"])[0]
    Scale, Shift = dual_cross_attention(Key, Scale, Shift, ap,
                                        window_size, shift_size, num_heads)
    Scale, Shift = mlp_fwd([Scale, Shift], params["mlp_scale_shift"])
    return Key, Scale, Shift


# ----------------------------------------------------------------------------
# Deterministic parameter init + driver
# ----------------------------------------------------------------------------
def _init_params(key, dim, num_heads, window_size, mlp_ratio):
    hidden = int(dim * mlp_ratio)
    ks = jax.random.split(key, 21)

    def lin(kw, kb, out_f, in_f, wstd=0.05, bstd=0.01):
        w = (jax.random.normal(kw, (out_f, in_f)) * wstd).astype(jnp.float32)
        b = (jax.random.normal(kb, (out_f,)) * bstd).astype(jnp.float32)
        return w, b

    wq, bq = lin(ks[0], ks[1], dim, dim)
    wk, bk = lin(ks[2], ks[3], dim, dim)
    wv, bv = lin(ks[4], ks[5], dim, dim)
    wp, bp = lin(ks[6], ks[7], dim, dim)
    table = (jax.random.normal(
        ks[8], ((2 * window_size[0] - 1) * (2 * window_size[1] - 1), num_heads))
        * 0.02).astype(jnp.float32)

    attn_params = {
        "num_heads": num_heads,
        # fused + pre-transposed (in_features, out_features) weights, bf16
        # for the MXU; biases stay f32.
        "wqkv_t": jnp.concatenate([wq.T, wk.T, wv.T], axis=1).astype(jnp.bfloat16),
        "bqkv":   jnp.concatenate([bq, bk, bv])[None, :],
        "wqk_t":  jnp.concatenate([wq.T, wk.T], axis=1).astype(jnp.bfloat16),
        "bqk":    jnp.concatenate([bq, bk])[None, :],
        "wv_t":   wv.T.astype(jnp.bfloat16),
        "bv":     bv[None, :],
        "wp_t":   wp.T.astype(jnp.bfloat16),
        "bp":     bp[None, :],
        "rel_bias": _relative_position_bias(table, window_size, num_heads),
    }

    def mlp_stack(key_quads):
        w1s, b1s, w2s, b2s = [], [], [], []
        for (k0, k1, k2, k3) in key_quads:
            w1, b1 = lin(k0, k1, hidden, dim)
            w2, b2 = lin(k2, k3, dim, hidden)
            w1s.append(w1); b1s.append(b1); w2s.append(w2); b2s.append(b2)
        return {"w1": jnp.stack(w1s).astype(jnp.bfloat16),        # (S, hid, C)
                "b1": jnp.stack(b1s)[:, :, None],                 # (S, hid, 1)
                "w2": jnp.stack(w2s).astype(jnp.bfloat16),        # (S, C, hid)
                "b2": jnp.stack(b2s)[:, :, None]}                 # (S, C, 1)

    return {
        "attn": attn_params,
        "mlp_key": mlp_stack([(ks[9], ks[10], ks[11], ks[12])]),
        "mlp_scale_shift": mlp_stack([(ks[13], ks[14], ks[15], ks[16]),
                                      (ks[17], ks[18], ks[19], ks[20])]),
    }


if __name__ == "__main__":
    B, H, W, C = 2, 8, 8, 16
    num_heads = 4
    window_size = [4, 4]
    shift_size = [2, 2]
    mlp_ratio = 4.0

    root = jax.random.PRNGKey(0)
    kp, kk, ks, ksh = jax.random.split(root, 4)
    params = _init_params(kp, C, num_heads, window_size, mlp_ratio)

    Key = jax.random.normal(kk, (B, H, W, C), dtype=jnp.float32)
    Scale = jax.random.normal(ks, (B, H, W, C), dtype=jnp.float32)
    Shift = jax.random.normal(ksh, (B, H, W, C), dtype=jnp.float32)

    fwd = jax.jit(lambda K, S, Sh: style_encoder_forward(
        K, S, Sh, params, window_size, shift_size, num_heads))

    out_key, out_scale, out_shift = fwd(Key, Scale, Shift)
    jax.block_until_ready((out_key, out_scale, out_shift))
    assert out_key.shape == (B, H, W, C)
    assert out_scale.shape == (B, H, W, C)
    assert out_shift.shape == (B, H, W, C)
    assert bool(jnp.isfinite(out_key).all())
    assert bool(jnp.isfinite(out_scale).all())
    assert bool(jnp.isfinite(out_shift).all())
    print("KERNEL_OK")
</pallas_src>

<mosaic_0001>
module attributes {stable_mosaic.version = 11 : i64} {
  func.func @_self_attn_kernel(%arg0: i32, %arg1: memref<1x4x16x16xf32, #tpu.memory_space<vmem>>, %arg2: memref<4x4x16x16xf32, #tpu.memory_space<vmem>>, %arg3: memref<16x48xbf16, #tpu.memory_space<vmem>>, %arg4: memref<1x48xf32, #tpu.memory_space<vmem>>, %arg5: memref<16x16xbf16, #tpu.memory_space<vmem>>, %arg6: memref<1x16xf32, #tpu.memory_space<vmem>>, %arg7: memref<1x4x16x16xf32, #tpu.memory_space<vmem>>) attributes {dimension_semantics = [#tpu.dimension_semantics<parallel>], iteration_bounds = array<i64: 2>, scalar_prefetch = 0 : i64, scratch_operands = 0 : i64, tpu.core_type = #tpu.core_type<tc>, window_params = [{transform_indices = @transform_0, window_bounds = array<i64: 1, 4, 16, 16>}, {pipeline_mode = #tpu.pipeline_mode<synchronous>, transform_indices = @transform_1, window_bounds = array<i64: 4, 4, 16, 16>}, {pipeline_mode = #tpu.pipeline_mode<synchronous>, transform_indices = @transform_2, window_bounds = array<i64: 16, 48>}, {pipeline_mode = #tpu.pipeline_mode<synchronous>, transform_indices = @transform_3, window_bounds = array<i64: 1, 48>}, {pipeline_mode = #tpu.pipeline_mode<synchronous>, transform_indices = @transform_4, window_bounds = array<i64: 16, 16>}, {pipeline_mode = #tpu.pipeline_mode<synchronous>, transform_indices = @transform_5, window_bounds = array<i64: 1, 16>}, {transform_indices = @transform_6, window_bounds = array<i64: 1, 4, 16, 16>}]} {
    %c0 = arith.constant 0 : index
    %c0_0 = arith.constant 0 : index
    %c0_1 = arith.constant 0 : index
    %c0_2 = arith.constant 0 : index
    %0 = vector.load %arg1[%c0, %c0_0, %c0_1, %c0_2] : memref<1x4x16x16xf32, #tpu.memory_space<vmem>>, vector<1x4x16x16xf32>
    %1 = vector.shape_cast %0 : vector<1x4x16x16xf32> to vector<4x16x16xf32>
    %2 = vector.shape_cast %1 : vector<4x16x16xf32> to vector<64x16xf32>
    %c0_3 = arith.constant 0 : index
    %c0_4 = arith.constant 0 : index
    %3 = vector.load %arg3[%c0_3, %c0_4] : memref<16x48xbf16, #tpu.memory_space<vmem>>, vector<16x48xbf16>
    %c0_5 = arith.constant 0 : index
    %c0_6 = arith.constant 0 : index
    %4 = vector.load %arg4[%c0_5, %c0_6] : memref<1x48xf32, #tpu.memory_space<vmem>>, vector<1x48xf32>
    %5 = arith.truncf %2 : vector<64x16xf32> to vector<64x16xbf16>
    %cst = arith.constant dense<0.000000e+00> : vector<64x48xf32>
    %6 = tpu.matmul %5, %3, %cst {dimension_numbers = #tpu.dot_dimension_numbers<[1], [0], [0], [1], [0, 0, 1, 1], [], []>} : vector<64x16xbf16>, vector<16x48xbf16>, vector<64x48xf32> -> vector<64x48xf32>
    %7 = vector.broadcast %4 : vector<1x48xf32> to vector<64x48xf32>
    %8 = arith.addf %6, %7 : vector<64x48xf32>
    %9 = vector.extract_strided_slice %8 {offsets = [0, 0], sizes = [64, 16], strides = [1, 1]} : vector<64x48xf32> to vector<64x16xf32>
    %10 = vector.shape_cast %9 : vector<64x16xf32> to vector<4x16x16xf32>
    %cst_7 = arith.constant 5.000000e-01 : f32
    %11 = vector.broadcast %cst_7 : f32 to vector<4x16x16xf32>
    %12 = arith.mulf %10, %11 : vector<4x16x16xf32>
    %13 = vector.extract_strided_slice %8 {offsets = [0, 16], sizes = [64, 16], strides = [1, 1]} : vector<64x48xf32> to vector<64x16xf32>
    %14 = vector.shape_cast %13 : vector<64x16xf32> to vector<4x16x16xf32>
    %15 = vector.extract_strided_slice %8 {offsets = [0, 32], sizes = [64, 16], strides = [1, 1]} : vector<64x48xf32> to vector<64x16xf32>
    %16 = vector.shape_cast %15 : vector<64x16xf32> to vector<4x16x16xf32>
    %c0_8 = arith.constant 0 : index
    %c0_9 = arith.constant 0 : index
    %c0_10 = arith.constant 0 : index
    %c0_11 = arith.constant 0 : index
    %17 = vector.load %arg2[%c0_8, %c0_9, %c0_10, %c0_11] : memref<4x4x16x16xf32, #tpu.memory_space<vmem>>, vector<4x4x16x16xf32>
    %18 = vector.extract_strided_slice %12 {offsets = [0, 0, 0], sizes = [4, 16, 4], strides = [1, 1, 1]} : vector<4x16x16xf32> to vector<4x16x4xf32>
    %19 = arith.truncf %18 : vector<4x16x4xf32> to vector<4x16x4xbf16>
    %20 = vector.extract_strided_slice %14 {offsets = [0, 0, 0], sizes = [4, 16, 4], strides = [1, 1, 1]} : vector<4x16x16xf32> to vector<4x16x4xf32>
    %21 = arith.truncf %20 : vector<4x16x4xf32> to vector<4x16x4xbf16>
    "tpu.trace_start"() <{level = 10 : i32, message = "wqd,wkd->wqk"}> : () -> ()
    %cst_12 = arith.constant dense<0.000000e+00> : vector<4x16x16xf32>
    %22 = tpu.matmul %19, %21, %cst_12 {dimension_numbers = #tpu.dot_dimension_numbers<[2], [2], [1], [1], [0, 0, 0, 1, 1, 1], [0], [0]>} : vector<4x16x4xbf16>, vector<4x16x4xbf16>, vector<4x16x16xf32> -> vector<4x16x16xf32>
    "tpu.trace_stop"() : () -> ()
    %23 = vector.extract_strided_slice %17 {offsets = [0, 0, 0, 0], sizes = [4, 1, 16, 16], strides = [1, 1, 1, 1]} : vector<4x4x16x16xf32> to vector<4x1x16x16xf32>
    %24 = vector.shape_cast %23 : vector<4x1x16x16xf32> to vector<4x16x16xf32>
    %25 = arith.addf %22, %24 : vector<4x16x16xf32>
    %cst_13 = arith.constant dense<0xFF800000> : vector<4x16xf32>
    %26 = vector.multi_reduction <maximumf>, %25, %cst_13 [2] : vector<4x16x16xf32> to vector<4x16xf32>
    %27 = vector.shape_cast %26 : vector<4x16xf32> to vector<4x16x1xf32>
    %28 = vector.broadcast %27 : vector<4x16x1xf32> to vector<4x16x16xf32>
    %29 = arith.subf %25, %28 : vector<4x16x16xf32>
    %30 = math.exp %29 : vector<4x16x16xf32>
    %cst_14 = arith.constant dense<0.000000e+00> : vector<4x16xf32>
    %31 = vector.multi_reduction <add>, %30, %cst_14 [2] : vector<4x16x16xf32> to vector<4x16xf32>
    %32 = vector.shape_cast %31 : vector<4x16xf32> to vector<4x16x1xf32>
    %33 = tpu.reciprocal %32 {approx = true} : vector<4x16x1xf32> -> vector<4x16x1xf32>
    %34 = vector.broadcast %33 : vector<4x16x1xf32> to vector<4x16x16xf32>
    %35 = arith.mulf %30, %34 : vector<4x16x16xf32>
    %36 = arith.truncf %35 : vector<4x16x16xf32> to vector<4x16x16xbf16>
    %37 = vector.extract_strided_slice %16 {offsets = [0, 0, 0], sizes = [4, 16, 4], strides = [1, 1, 1]} : vector<4x16x16xf32> to vector<4x16x4xf32>
    %38 = arith.truncf %37 : vector<4x16x4xf32> to vector<4x16x4xbf16>
    "tpu.trace_start"() <{level = 10 : i32, message = "wqk,wkd->wqd"}> : () -> ()
    %cst_15 = arith.constant dense<0.000000e+00> : vector<4x16x4xf32>
    %39 = tpu.matmul %36, %38, %cst_15 {dimension_numbers = #tpu.dot_dimension_numbers<[2], [1], [1], [2], [0, 0, 0, 1, 1, 2], [0], [0]>} : vector<4x16x16xbf16>, vector<4x16x4xbf16>, vector<4x16x4xf32> -> vector<4x16x4xf32>
    "tpu.trace_stop"() : () -> ()
    %40 = vector.extract_strided_slice %12 {offsets = [0, 0, 4], sizes = [4, 16, 4], strides = [1, 1, 1]} : vector<4x16x16xf32> to vector<4x16x4xf32>
    %41 = arith.truncf %40 : vector<4x16x4xf32> to vector<4x16x4xbf16>
    %42 = vector.extract_strided_slice %14 {offsets = [0, 0, 4], sizes = [4, 16, 4], strides = [1, 1, 1]} : vector<4x16x16xf32> to vector<4x16x4xf32>
    %43 = arith.truncf %42 : vector<4x16x4xf32> to vector<4x16x4xbf16>
    "tpu.trace_start"() <{level = 10 : i32, message = "wqd,wkd->wqk"}> : () -> ()
    %cst_16 = arith.constant dense<0.000000e+00> : vector<4x16x16xf32>
    %44 = tpu.matmul %41, %43, %cst_16 {dimension_numbers = #tpu.dot_dimension_numbers<[2], [2], [1], [1], [0, 0, 0, 1, 1, 1], [0], [0]>} : vector<4x16x4xbf16>, vector<4x16x4xbf16>, vector<4x16x16xf32> -> vector<4x16x16xf32>
    "tpu.trace_stop"() : () -> ()
    %45 = vector.extract_strided_slice %17 {offsets = [0, 1, 0, 0], sizes = [4, 1, 16, 16], strides = [1, 1, 1, 1]} : vector<4x4x16x16xf32> to vector<4x1x16x16xf32>
    %46 = vector.shape_cast %45 : vector<4x1x16x16xf32> to vector<4x16x16xf32>
    %47 = arith.addf %44, %46 : vector<4x16x16xf32>
    %cst_17 = arith.constant dense<0xFF800000> : vector<4x16xf32>
    %48 = vector.multi_reduction <maximumf>, %47, %cst_17 [2] : vector<4x16x16xf32> to vector<4x16xf32>
    %49 = vector.shape_cast %48 : vector<4x16xf32> to vector<4x16x1xf32>
    %50 = vector.broadcast %49 : vector<4x16x1xf32> to vector<4x16x16xf32>
    %51 = arith.subf %47, %50 : vector<4x16x16xf32>
    %52 = math.exp %51 : vector<4x16x16xf32>
    %cst_18 = arith.constant dense<0.000000e+00> : vector<4x16xf32>
    %53 = vector.multi_reduction <add>, %52, %cst_18 [2] : vector<4x16x16xf32> to vector<4x16xf32>
    %54 = vector.shape_cast %53 : vector<4x16xf32> to vector<4x16x1xf32>
    %55 = tpu.reciprocal %54 {approx = true} : vector<4x16x1xf32> -> vector<4x16x1xf32>
    %56 = vector.broadcast %55 : vector<4x16x1xf32> to vector<4x16x16xf32>
    %57 = arith.mulf %52, %56 : vector<4x16x16xf32>
    %58 = arith.truncf %57 : vector<4x16x16xf32> to vector<4x16x16xbf16>
    %59 = vector.extract_strided_slice %16 {offsets = [0, 0, 4], sizes = [4, 16, 4], strides = [1, 1, 1]} : vector<4x16x16xf32> to vector<4x16x4xf32>
    %60 = arith.truncf %59 : vector<4x16x4xf32> to vector<4x16x4xbf16>
    "tpu.trace_start"() <{level = 10 : i32, message = "wqk,wkd->wqd"}> : () -> ()
    %cst_19 = arith.constant dense<0.000000e+00> : vector<4x16x4xf32>
    %61 = tpu.matmul %58, %60, %cst_19 {dimension_numbers = #tpu.dot_dimension_numbers<[2], [1], [1], [2], [0, 0, 0, 1, 1, 2], [0], [0]>} : vector<4x16x16xbf16>, vector<4x16x4xbf16>, vector<4x16x4xf32> -> vector<4x16x4xf32>
    "tpu.trace_stop"() : () -> ()
    %62 = vector.extract_strided_slice %12 {offsets = [0, 0, 8], sizes = [4, 16, 4], strides = [1, 1, 1]} : vector<4x16x16xf32> to vector<4x16x4xf32>
    %63 = arith.truncf %62 : vector<4x16x4xf32> to vector<4x16x4xbf16>
    %64 = vector.extract_strided_slice %14 {offsets = [0, 0, 8], sizes = [4, 16, 4], strides = [1, 1, 1]} : vector<4x16x16xf32> to vector<4x16x4xf32>
    %65 = arith.truncf %64 : vector<4x16x4xf32> to vector<4x16x4xbf16>
    "tpu.trace_start"() <{level = 10 : i32, message = "wqd,wkd->wqk"}> : () -> ()
    %cst_20 = arith.constant dense<0.000000e+00> : vector<4x16x16xf32>
    %66 = tpu.matmul %63, %65, %cst_20 {dimension_numbers = #tpu.dot_dimension_numbers<[2], [2], [1], [1], [0, 0, 0, 1, 1, 1], [0], [0]>} : vector<4x16x4xbf16>, vector<4x16x4xbf16>, vector<4x16x16xf32> -> vector<4x16x16xf32>
    "tpu.trace_stop"() : () -> ()
    %67 = vector.extract_strided_slice %17 {offsets = [0, 2, 0, 0], sizes = [4, 1, 16, 16], strides = [1, 1, 1, 1]} : vector<4x4x16x16xf32> to vector<4x1x16x16xf32>
    %68 = vector.shape_cast %67 : vector<4x1x16x16xf32> to vector<4x16x16xf32>
    %69 = arith.addf %66, %68 : vector<4x16x16xf32>
    %cst_21 = arith.constant dense<0xFF800000> : vector<4x16xf32>
    %70 = vector.multi_reduction <maximumf>, %69, %cst_21 [2] : vector<4x16x16xf32> to vector<4x16xf32>
    %71 = vector.shape_cast %70 : vector<4x16xf32> to vector<4x16x1xf32>
    %72 = vector.broadcast %71 : vector<4x16x1xf32> to vector<4x16x16xf32>
    %73 = arith.subf %69, %72 : vector<4x16x16xf32>
    %74 = math.exp %73 : vector<4x16x16xf32>
    %cst_22 = arith.constant dense<0.000000e+00> : vector<4x16xf32>
    %75 = vector.multi_reduction <add>, %74, %cst_22 [2] : vector<4x16x16xf32> to vector<4x16xf32>
    %76 = vector.shape_cast %75 : vector<4x16xf32> to vector<4x16x1xf32>
    %77 = tpu.reciprocal %76 {approx = true} : vector<4x16x1xf32> -> vector<4x16x1xf32>
    %78 = vector.broadcast %77 : vector<4x16x1xf32> to vector<4x16x16xf32>
    %79 = arith.mulf %74, %78 : vector<4x16x16xf32>
    %80 = arith.truncf %79 : vector<4x16x16xf32> to vector<4x16x16xbf16>
    %81 = vector.extract_strided_slice %16 {offsets = [0, 0, 8], sizes = [4, 16, 4], strides = [1, 1, 1]} : vector<4x16x16xf32> to vector<4x16x4xf32>
    %82 = arith.truncf %81 : vector<4x16x4xf32> to vector<4x16x4xbf16>
    "tpu.trace_start"() <{level = 10 : i32, message = "wqk,wkd->wqd"}> : () -> ()
    %cst_23 = arith.constant dense<0.000000e+00> : vector<4x16x4xf32>
    %83 = tpu.matmul %80, %82, %cst_23 {dimension_numbers = #tpu.dot_dimension_numbers<[2], [1], [1], [2], [0, 0, 0, 1, 1, 2], [0], [0]>} : vector<4x16x16xbf16>, vector<4x16x4xbf16>, vector<4x16x4xf32> -> vector<4x16x4xf32>
    "tpu.trace_stop"() : () -> ()
    %84 = vector.extract_strided_slice %12 {offsets = [0, 0, 12], sizes = [4, 16, 4], strides = [1, 1, 1]} : vector<4x16x16xf32> to vector<4x16x4xf32>
    %85 = arith.truncf %84 : vector<4x16x4xf32> to vector<4x16x4xbf16>
    %86 = vector.extract_strided_slice %14 {offsets = [0, 0, 12], sizes = [4, 16, 4], strides = [1, 1, 1]} : vector<4x16x16xf32> to vector<4x16x4xf32>
    %87 = arith.truncf %86 : vector<4x16x4xf32> to vector<4x16x4xbf16>
    "tpu.trace_start"() <{level = 10 : i32, message = "wqd,wkd->wqk"}> : () -> ()
    %cst_24 = arith.constant dense<0.000000e+00> : vector<4x16x16xf32>
    %88 = tpu.matmul %85, %87, %cst_24 {dimension_numbers = #tpu.dot_dimension_numbers<[2], [2], [1], [1], [0, 0, 0, 1, 1, 1], [0], [0]>} : vector<4x16x4xbf16>, vector<4x16x4xbf16>, vector<4x16x16xf32> -> vector<4x16x16xf32>
    "tpu.trace_stop"() : () -> ()
    %89 = vector.extract_strided_slice %17 {offsets = [0, 3, 0, 0], sizes = [4, 1, 16, 16], strides = [1, 1, 1, 1]} : vector<4x4x16x16xf32> to vector<4x1x16x16xf32>
    %90 = vector.shape_cast %89 : vector<4x1x16x16xf32> to vector<4x16x16xf32>
    %91 = arith.addf %88, %90 : vector<4x16x16xf32>
    %cst_25 = arith.constant dense<0xFF800000> : vector<4x16xf32>
    %92 = vector.multi_reduction <maximumf>, %91, %cst_25 [2] : vector<4x16x16xf32> to vector<4x16xf32>
    %93 = vector.shape_cast %92 : vector<4x16xf32> to vector<4x16x1xf32>
    %94 = vector.broadcast %93 : vector<4x16x1xf32> to vector<4x16x16xf32>
    %95 = arith.subf %91, %94 : vector<4x16x16xf32>
    %96 = math.exp %95 : vector<4x16x16xf32>
    %cst_26 = arith.constant dense<0.000000e+00> : vector<4x16xf32>
    %97 = vector.multi_reduction <add>, %96, %cst_26 [2] : vector<4x16x16xf32> to vector<4x16xf32>
    %98 = vector.shape_cast %97 : vector<4x16xf32> to vector<4x16x1xf32>
    %99 = tpu.reciprocal %98 {approx = true} : vector<4x16x1xf32> -> vector<4x16x1xf32>
    %100 = vector.broadcast %99 : vector<4x16x1xf32> to vector<4x16x16xf32>
    %101 = arith.mulf %96, %100 : vector<4x16x16xf32>
    %102 = arith.truncf %101 : vector<4x16x16xf32> to vector<4x16x16xbf16>
    %103 = vector.extract_strided_slice %16 {offsets = [0, 0, 12], sizes = [4, 16, 4], strides = [1, 1, 1]} : vector<4x16x16xf32> to vector<4x16x4xf32>
    %104 = arith.truncf %103 : vector<4x16x4xf32> to vector<4x16x4xbf16>
    "tpu.trace_start"() <{level = 10 : i32, message = "wqk,wkd->wqd"}> : () -> ()
    %cst_27 = arith.constant dense<0.000000e+00> : vector<4x16x4xf32>
    %105 = tpu.matmul %102, %104, %cst_27 {dimension_numbers = #tpu.dot_dimension_numbers<[2], [1], [1], [2], [0, 0, 0, 1, 1, 2], [0], [0]>} : vector<4x16x16xbf16>, vector<4x16x4xbf16>, vector<4x16x4xf32> -> vector<4x16x4xf32>
    "tpu.trace_stop"() : () -> ()
    %106 = tpu.concatenate %39, %61, %83, %105 in 2 : vector<4x16x4xf32>, vector<4x16x4xf32>, vector<4x16x4xf32>, vector<4x16x4xf32> -> vector<4x16x16xf32>
    %107 = vector.shape_cast %106 : vector<4x16x16xf32> to vector<64x16xf32>
    %c0_28 = arith.constant 0 : index
    %c0_29 = arith.constant 0 : index
    %108 = vector.load %arg5[%c0_28, %c0_29] : memref<16x16xbf16, #tpu.memory_space<vmem>>, vector<16x16xbf16>
    %c0_30 = arith.constant 0 : index
    %c0_31 = arith.constant 0 : index
    %109 = vector.load %arg6[%c0_30, %c0_31] : memref<1x16xf32, #tpu.memory_space<vmem>>, vector<1x16xf32>
    %110 = arith.truncf %107 : vector<64x16xf32> to vector<64x16xbf16>
    %cst_32 = arith.constant dense<0.000000e+00> : vector<64x16xf32>
    %111 = tpu.matmul %110, %108, %cst_32 {dimension_numbers = #tpu.dot_dimension_numbers<[1], [0], [0], [1], [0, 0, 1, 1], [], []>} : vector<64x16xbf16>, vector<16x16xbf16>, vector<64x16xf32> -> vector<64x16xf32>
    %112 = vector.broadcast %109 : vector<1x16xf32> to vector<64x16xf32>
    %113 = arith.addf %111, %112 : vector<64x16xf32>
    %114 = arith.addf %2, %113 : vector<64x16xf32>
    %115 = vector.shape_cast %114 : vector<64x16xf32> to vector<4x16x16xf32>
    %c0_33 = arith.constant 0 : index
    %c0_34 = arith.constant 0 : index
    %c0_35 = arith.constant 0 : index
    %c0_36 = arith.constant 0 : index
    %116 = vector.load %arg7[%c0_33, %c0_34, %c0_35, %c0_36] : memref<1x4x16x16xf32, #tpu.memory_space<vmem>>, vector<1x4x16x16xf32>
    %117 = vector.shape_cast %116 : vector<1x4x16x16xf32> to vector<4x16x16xf32>
    %118 = vector.shape_cast %115 : vector<4x16x16xf32> to vector<1x4x16x16xf32>
    tpu.vector_store %arg7[%c0_33, %c0_34, %c0_35, %c0_36], %118 {strides = array<i32>} : memref<1x4x16x16xf32, #tpu.memory_space<vmem>>, vector<1x4x16x16xf32>,
    return
  }
  func.func @transform_0(%arg0: i32) -> (i32, i32, i32, i32) {
    %c0_i32 = arith.constant 0 : i32
    %c0_i32_0 = arith.constant 0 : i32
    %c0_i32_1 = arith.constant 0 : i32
    %c0_i32_2 = arith.constant 0 : i32
    return %arg0, %c0_i32, %c0_i32_0, %c0_i32_1 : i32, i32, i32, i32
  }
  func.func @transform_1(%arg0: i32) -> (i32, i32, i32, i32) {
    %c0_i32 = arith.constant 0 : i32
    %c0_i32_0 = arith.constant 0 : i32
    %c0_i32_1 = arith.constant 0 : i32
    %c0_i32_2 = arith.constant 0 : i32
    %c0_i32_3 = arith.constant 0 : i32
    return %c0_i32, %c0_i32_0, %c0_i32_1, %c0_i32_2 : i32, i32, i32, i32
  }
  func.func @transform_2(%arg0: i32) -> (i32, i32) {
    %c0_i32 = arith.constant 0 : i32
    %c0_i32_0 = arith.constant 0 : i32
    %c0_i32_1 = arith.constant 0 : i32
    return %c0_i32, %c0_i32_0 : i32, i32
  }
  func.func @transform_3(%arg0: i32) -> (i32, i32) {
    %c0_i32 = arith.constant 0 : i32
    %c0_i32_0 = arith.constant 0 : i32
    %c0_i32_1 = arith.constant 0 : i32
    return %c0_i32, %c0_i32_0 : i32, i32
  }
  func.func @transform_4(%arg0: i32) -> (i32, i32) {
    %c0_i32 = arith.constant 0 : i32
    %c0_i32_0 = arith.constant 0 : i32
    %c0_i32_1 = arith.constant 0 : i32
    return %c0_i32, %c0_i32_0 : i32, i32
  }
  func.func @transform_5(%arg0: i32) -> (i32, i32) {
    %c0_i32 = arith.constant 0 : i32
    %c0_i32_0 = arith.constant 0 : i32
    %c0_i32_1 = arith.constant 0 : i32
    return %c0_i32, %c0_i32_0 : i32, i32
  }
  func.func @transform_6(%arg0: i32) -> (i32, i32, i32, i32) {
    %c0_i32 = arith.constant 0 : i32
    %c0_i32_0 = arith.constant 0 : i32
    %c0_i32_1 = arith.constant 0 : i32
    %c0_i32_2 = arith.constant 0 : i32
    return %arg0, %c0_i32, %c0_i32_0, %c0_i32_1 : i32, i32, i32, i32
  }
}

module attributes {stable_mosaic.version = 11 : i64} {
  func.func @_mlp_kernel(%arg0: i32, %arg1: memref<1x16x128xf32, #tpu.memory_space<vmem>>, %arg2: memref<1x64x16xbf16, #tpu.memory_space<vmem>>, %arg3: memref<1x64x1xf32, #tpu.memory_space<vmem>>, %arg4: memref<1x16x64xbf16, #tpu.memory_space<vmem>>, %arg5: memref<1x16x1xf32, #tpu.memory_space<vmem>>, %arg6: memref<1x16x128xf32, #tpu.memory_space<vmem>>) attributes {dimension_semantics = [#tpu.dimension_semantics<parallel>], iteration_bounds = array<i64: 1>, scalar_prefetch = 0 : i64, scratch_operands = 0 : i64, tpu.core_type = #tpu.core_type<tc>, window_params = [{transform_indices = @transform_0, window_bounds = array<i64: 1, 16, 128>}, {transform_indices = @transform_1, window_bounds = array<i64: 1, 64, 16>}, {transform_indices = @transform_2, window_bounds = array<i64: 1, 64, 1>}, {transform_indices = @transform_3, window_bounds = array<i64: 1, 16, 64>}, {transform_indices = @transform_4, window_bounds = array<i64: 1, 16, 1>}, {transform_indices = @transform_5, window_bounds = array<i64: 1, 16, 128>}]} {
    %c0 = arith.constant 0 : index
    %c0_0 = arith.constant 0 : index
    %c0_1 = arith.constant 0 : index
    %0 = vector.load %arg1[%c0, %c0_0, %c0_1] : memref<1x16x128xf32, #tpu.memory_space<vmem>>, vector<1x16x128xf32>
    %1 = vector.shape_cast %0 : vector<1x16x128xf32> to vector<16x128xf32>
    %2 = arith.truncf %1 : vector<16x128xf32> to vector<16x128xbf16>
    %c0_2 = arith.constant 0 : index
    %c0_3 = arith.constant 0 : index
    %c0_4 = arith.constant 0 : index
    %3 = vector.load %arg2[%c0_2, %c0_3, %c0_4] : memref<1x64x16xbf16, #tpu.memory_space<vmem>>, vector<1x64x16xbf16>
    %4 = vector.shape_cast %3 : vector<1x64x16xbf16> to vector<64x16xbf16>
    %cst = arith.constant dense<0.000000e+00> : vector<64x128xf32>
    %5 = tpu.matmul %4, %2, %cst {dimension_numbers = #tpu.dot_dimension_numbers<[1], [0], [0], [1], [0, 0, 1, 1], [], []>} : vector<64x16xbf16>, vector<16x128xbf16>, vector<64x128xf32> -> vector<64x128xf32>
    %c0_5 = arith.constant 0 : index
    %c0_6 = arith.constant 0 : index
    %c0_7 = arith.constant 0 : index
    %6 = vector.load %arg3[%c0_5, %c0_6, %c0_7] : memref<1x64x1xf32, #tpu.memory_space<vmem>>, vector<1x64x1xf32>
    %7 = vector.shape_cast %6 : vector<1x64x1xf32> to vector<64x1xf32>
    %8 = vector.broadcast %7 : vector<64x1xf32> to vector<64x128xf32>
    %9 = arith.addf %5, %8 : vector<64x128xf32>
    %cst_8 = arith.constant 5.000000e-01 : f32
    %10 = vector.broadcast %cst_8 : f32 to vector<64x128xf32>
    %11 = arith.mulf %10, %9 : vector<64x128xf32>
    %cst_9 = arith.constant 4.471500e-02 : f32
    %12 = vector.broadcast %cst_9 : f32 to vector<64x128xf32>
    %13 = arith.mulf %12, %9 : vector<64x128xf32>
    %14 = arith.mulf %13, %9 : vector<64x128xf32>
    %15 = arith.mulf %14, %9 : vector<64x128xf32>
    %16 = arith.addf %9, %15 : vector<64x128xf32>
    %cst_10 = arith.constant 0.797884583 : f32
    %17 = vector.broadcast %cst_10 : f32 to vector<64x128xf32>
    %18 = arith.mulf %17, %16 : vector<64x128xf32>
    %19 = math.tanh %18 : vector<64x128xf32>
    %cst_11 = arith.constant 1.000000e+00 : f32
    %20 = vector.broadcast %cst_11 : f32 to vector<64x128xf32>
    %21 = arith.addf %20, %19 : vector<64x128xf32>
    %22 = arith.mulf %11, %21 : vector<64x128xf32>
    %c0_12 = arith.constant 0 : index
    %c0_13 = arith.constant 0 : index
    %c0_14 = arith.constant 0 : index
    %23 = vector.load %arg4[%c0_12, %c0_13, %c0_14] : memref<1x16x64xbf16, #tpu.memory_space<vmem>>, vector<1x16x64xbf16>
    %24 = vector.shape_cast %23 : vector<1x16x64xbf16> to vector<16x64xbf16>
    %25 = arith.truncf %22 : vector<64x128xf32> to vector<64x128xbf16>
    %cst_15 = arith.constant dense<0.000000e+00> : vector<16x128xf32>
    %26 = tpu.matmul %24, %25, %cst_15 {dimension_numbers = #tpu.dot_dimension_numbers<[1], [0], [0], [1], [0, 0, 1, 1], [], []>} : vector<16x64xbf16>, vector<64x128xbf16>, vector<16x128xf32> -> vector<16x128xf32>
    %c0_16 = arith.constant 0 : index
    %c0_17 = arith.constant 0 : index
    %c0_18 = arith.constant 0 : index
    %27 = vector.load %arg5[%c0_16, %c0_17, %c0_18] : memref<1x16x1xf32, #tpu.memory_space<vmem>>, vector<1x16x1xf32>
    %28 = vector.shape_cast %27 : vector<1x16x1xf32> to vector<16x1xf32>
    %29 = vector.broadcast %28 : vector<16x1xf32> to vector<16x128xf32>
    %30 = arith.addf %26, %29 : vector<16x128xf32>
    %31 = arith.addf %1, %30 : vector<16x128xf32>
    %c0_19 = arith.constant 0 : index
    %c0_20 = arith.constant 0 : index
    %c0_21 = arith.constant 0 : index
    %32 = vector.load %arg6[%c0_19, %c0_20, %c0_21] : memref<1x16x128xf32, #tpu.memory_space<vmem>>, vector<1x16x128xf32>
    %33 = vector.shape_cast %32 : vector<1x16x128xf32> to vector<16x128xf32>
    %34 = vector.shape_cast %31 : vector<16x128xf32> to vector<1x16x128xf32>
    tpu.vector_store %arg6[%c0_19, %c0_20, %c0_21], %34 {strides = array<i32>} : memref<1x16x128xf32, #tpu.memory_space<vmem>>, vector<1x16x128xf32>,
    return
  }
  func.func @transform_0(%arg0: i32) -> (i32, i32, i32) {
    %c0_i32 = arith.constant 0 : i32
    %c0_i32_0 = arith.constant 0 : i32
    %c0_i32_1 = arith.constant 0 : i32
    return %arg0, %c0_i32, %c0_i32_0 : i32, i32, i32
  }
  func.func @transform_1(%arg0: i32) -> (i32, i32, i32) {
    %c0_i32 = arith.constant 0 : i32
    %c0_i32_0 = arith.constant 0 : i32
    %c0_i32_1 = arith.constant 0 : i32
    return %arg0, %c0_i32, %c0_i32_0 : i32, i32, i32
  }
  func.func @transform_2(%arg0: i32) -> (i32, i32, i32) {
    %c0_i32 = arith.constant 0 : i32
    %c0_i32_0 = arith.constant 0 : i32
    %c0_i32_1 = arith.constant 0 : i32
    return %arg0, %c0_i32, %c0_i32_0 : i32, i32, i32
  }
  func.func @transform_3(%arg0: i32) -> (i32, i32, i32) {
    %c0_i32 = arith.constant 0 : i32
    %c0_i32_0 = arith.constant 0 : i32
    %c0_i32_1 = arith.constant 0 : i32
    return %arg0, %c0_i32, %c0_i32_0 : i32, i32, i32
  }
  func.func @transform_4(%arg0: i32) -> (i32, i32, i32) {
    %c0_i32 = arith.constant 0 : i32
    %c0_i32_0 = arith.constant 0 : i32
    %c0_i32_1 = arith.constant 0 : i32
    return %arg0, %c0_i32, %c0_i32_0 : i32, i32, i32
  }
  func.func @transform_5(%arg0: i32) -> (i32, i32, i32) {
    %c0_i32 = arith.constant 0 : i32
    %c0_i32_0 = arith.constant 0 : i32
    %c0_i32_1 = arith.constant 0 : i32
    return %arg0, %c0_i32, %c0_i32_0 : i32, i32, i32
  }
}

module attributes {stable_mosaic.version = 11 : i64} {
  func.func @_dual_cross_attn_kernel(%arg0: i32, %arg1: memref<1x4x16x16xf32, #tpu.memory_space<vmem>>, %arg2: memref<1x4x16x16xf32, #tpu.memory_space<vmem>>, %arg3: memref<1x4x16x16xf32, #tpu.memory_space<vmem>>, %arg4: memref<4x4x16x16xf32, #tpu.memory_space<vmem>>, %arg5: memref<16x32xbf16, #tpu.memory_space<vmem>>, %arg6: memref<1x32xf32, #tpu.memory_space<vmem>>, %arg7: memref<16x16xbf16, #tpu.memory_space<vmem>>, %arg8: memref<1x16xf32, #tpu.memory_space<vmem>>, %arg9: memref<16x16xbf16, #tpu.memory_space<vmem>>, %arg10: memref<1x16xf32, #tpu.memory_space<vmem>>, %arg11: memref<1x4x16x16xf32, #tpu.memory_space<vmem>>, %arg12: memref<1x4x16x16xf32, #tpu.memory_space<vmem>>) attributes {dimension_semantics = [#tpu.dimension_semantics<parallel>], iteration_bounds = array<i64: 2>, scalar_prefetch = 0 : i64, scratch_operands = 0 : i64, tpu.core_type = #tpu.core_type<tc>, window_params = [{transform_indices = @transform_0, window_bounds = array<i64: 1, 4, 16, 16>}, {transform_indices = @transform_1, window_bounds = array<i64: 1, 4, 16, 16>}, {transform_indices = @transform_2, window_bounds = array<i64: 1, 4, 16, 16>}, {pipeline_mode = #tpu.pipeline_mode<synchronous>, transform_indices = @transform_3, window_bounds = array<i64: 4, 4, 16, 16>}, {pipeline_mode = #tpu.pipeline_mode<synchronous>, transform_indices = @transform_4, window_bounds = array<i64: 16, 32>}, {pipeline_mode = #tpu.pipeline_mode<synchronous>, transform_indices = @transform_5, window_bounds = array<i64: 1, 32>}, {pipeline_mode = #tpu.pipeline_mode<synchronous>, transform_indices = @transform_6, window_bounds = array<i64: 16, 16>}, {pipeline_mode = #tpu.pipeline_mode<synchronous>, transform_indices = @transform_7, window_bounds = array<i64: 1, 16>}, {pipeline_mode = #tpu.pipeline_mode<synchronous>, transform_indices = @transform_8, window_bounds = array<i64: 16, 16>}, {pipeline_mode = #tpu.pipeline_mode<synchronous>, transform_indices = @transform_9, window_bounds = array<i64: 1, 16>}, {transform_indices = @transform_10, window_bounds = array<i64: 1, 4, 16, 16>}, {transform_indices = @transform_11, window_bounds = array<i64: 1, 4, 16, 16>}]} {
    %c0 = arith.constant 0 : index
    %c0_0 = arith.constant 0 : index
    %c0_1 = arith.constant 0 : index
    %c0_2 = arith.constant 0 : index
    %0 = vector.load %arg1[%c0, %c0_0, %c0_1, %c0_2] : memref<1x4x16x16xf32, #tpu.memory_space<vmem>>, vector<1x4x16x16xf32>
    %1 = vector.shape_cast %0 : vector<1x4x16x16xf32> to vector<4x16x16xf32>
    %2 = vector.shape_cast %1 : vector<4x16x16xf32> to vector<64x16xf32>
    %c0_3 = arith.constant 0 : index
    %c0_4 = arith.constant 0 : index
    %c0_5 = arith.constant 0 : index
    %c0_6 = arith.constant 0 : index
    %3 = vector.load %arg2[%c0_3, %c0_4, %c0_5, %c0_6] : memref<1x4x16x16xf32, #tpu.memory_space<vmem>>, vector<1x4x16x16xf32>
    %4 = vector.shape_cast %3 : vector<1x4x16x16xf32> to vector<4x16x16xf32>
    %5 = vector.shape_cast %4 : vector<4x16x16xf32> to vector<64x16xf32>
    %c0_7 = arith.constant 0 : index
    %c0_8 = arith.constant 0 : index
    %c0_9 = arith.constant 0 : index
    %c0_10 = arith.constant 0 : index
    %6 = vector.load %arg3[%c0_7, %c0_8, %c0_9, %c0_10] : memref<1x4x16x16xf32, #tpu.memory_space<vmem>>, vector<1x4x16x16xf32>
    %7 = vector.shape_cast %6 : vector<1x4x16x16xf32> to vector<4x16x16xf32>
    %8 = vector.shape_cast %7 : vector<4x16x16xf32> to vector<64x16xf32>
    %c0_11 = arith.constant 0 : index
    %c0_12 = arith.constant 0 : index
    %9 = vector.load %arg5[%c0_11, %c0_12] : memref<16x32xbf16, #tpu.memory_space<vmem>>, vector<16x32xbf16>
    %c0_13 = arith.constant 0 : index
    %c0_14 = arith.constant 0 : index
    %10 = vector.load %arg6[%c0_13, %c0_14] : memref<1x32xf32, #tpu.memory_space<vmem>>, vector<1x32xf32>
    %11 = arith.truncf %2 : vector<64x16xf32> to vector<64x16xbf16>
    %cst = arith.constant dense<0.000000e+00> : vector<64x32xf32>
    %12 = tpu.matmul %11, %9, %cst {dimension_numbers = #tpu.dot_dimension_numbers<[1], [0], [0], [1], [0, 0, 1, 1], [], []>} : vector<64x16xbf16>, vector<16x32xbf16>, vector<64x32xf32> -> vector<64x32xf32>
    %13 = vector.broadcast %10 : vector<1x32xf32> to vector<64x32xf32>
    %14 = arith.addf %12, %13 : vector<64x32xf32>
    %15 = vector.extract_strided_slice %14 {offsets = [0, 0], sizes = [64, 16], strides = [1, 1]} : vector<64x32xf32> to vector<64x16xf32>
    %16 = vector.shape_cast %15 : vector<64x16xf32> to vector<4x16x16xf32>
    %cst_15 = arith.constant 5.000000e-01 : f32
    %17 = vector.broadcast %cst_15 : f32 to vector<4x16x16xf32>
    %18 = arith.mulf %16, %17 : vector<4x16x16xf32>
    %19 = vector.extract_strided_slice %14 {offsets = [0, 16], sizes = [64, 16], strides = [1, 1]} : vector<64x32xf32> to vector<64x16xf32>
    %20 = vector.shape_cast %19 : vector<64x16xf32> to vector<4x16x16xf32>
    %c0_16 = arith.constant 0 : index
    %c0_17 = arith.constant 0 : index
    %21 = vector.load %arg7[%c0_16, %c0_17] : memref<16x16xbf16, #tpu.memory_space<vmem>>, vector<16x16xbf16>
    %c0_18 = arith.constant 0 : index
    %c0_19 = arith.constant 0 : index
    %22 = vector.load %arg8[%c0_18, %c0_19] : memref<1x16xf32, #tpu.memory_space<vmem>>, vector<1x16xf32>
    %23 = arith.truncf %5 : vector<64x16xf32> to vector<64x16xbf16>
    %cst_20 = arith.constant dense<0.000000e+00> : vector<64x16xf32>
    %24 = tpu.matmul %23, %21, %cst_20 {dimension_numbers = #tpu.dot_dimension_numbers<[1], [0], [0], [1], [0, 0, 1, 1], [], []>} : vector<64x16xbf16>, vector<16x16xbf16>, vector<64x16xf32> -> vector<64x16xf32>
    %25 = vector.broadcast %22 : vector<1x16xf32> to vector<64x16xf32>
    %26 = arith.addf %24, %25 : vector<64x16xf32>
    %27 = vector.shape_cast %26 : vector<64x16xf32> to vector<4x16x16xf32>
    %28 = arith.truncf %8 : vector<64x16xf32> to vector<64x16xbf16>
    %cst_21 = arith.constant dense<0.000000e+00> : vector<64x16xf32>
    %29 = tpu.matmul %28, %21, %cst_21 {dimension_numbers = #tpu.dot_dimension_numbers<[1], [0], [0], [1], [0, 0, 1, 1], [], []>} : vector<64x16xbf16>, vector<16x16xbf16>, vector<64x16xf32> -> vector<64x16xf32>
    %30 = vector.broadcast %22 : vector<1x16xf32> to vector<64x16xf32>
    %31 = arith.addf %29, %30 : vector<64x16xf32>
    %32 = vector.shape_cast %31 : vector<64x16xf32> to vector<4x16x16xf32>
    %c0_22 = arith.constant 0 : index
    %c0_23 = arith.constant 0 : index
    %c0_24 = arith.constant 0 : index
    %c0_25 = arith.constant 0 : index
    %33 = vector.load %arg4[%c0_22, %c0_23, %c0_24, %c0_25] : memref<4x4x16x16xf32, #tpu.memory_space<vmem>>, vector<4x4x16x16xf32>
    %34 = vector.extract_strided_slice %18 {offsets = [0, 0, 0], sizes = [4, 16, 4], strides = [1, 1, 1]} : vector<4x16x16xf32> to vector<4x16x4xf32>
    %35 = arith.truncf %34 : vector<4x16x4xf32> to vector<4x16x4xbf16>
    %36 = vector.extract_strided_slice %20 {offsets = [0, 0, 0], sizes = [4, 16, 4], strides = [1, 1, 1]} : vector<4x16x16xf32> to vector<4x16x4xf32>
    %37 = arith.truncf %36 : vector<4x16x4xf32> to vector<4x16x4xbf16>
    "tpu.trace_start"() <{level = 10 : i32, message = "wqd,wkd->wqk"}> : () -> ()
    %cst_26 = arith.constant dense<0.000000e+00> : vector<4x16x16xf32>
    %38 = tpu.matmul %35, %37, %cst_26 {dimension_numbers = #tpu.dot_dimension_numbers<[2], [2], [1], [1], [0, 0, 0, 1, 1, 1], [0], [0]>} : vector<4x16x4xbf16>, vector<4x16x4xbf16>, vector<4x16x16xf32> -> vector<4x16x16xf32>
    "tpu.trace_stop"() : () -> ()
    %39 = vector.extract_strided_slice %33 {offsets = [0, 0, 0, 0], sizes = [4, 1, 16, 16], strides = [1, 1, 1, 1]} : vector<4x4x16x16xf32> to vector<4x1x16x16xf32>
    %40 = vector.shape_cast %39 : vector<4x1x16x16xf32> to vector<4x16x16xf32>
    %41 = arith.addf %38, %40 : vector<4x16x16xf32>
    %cst_27 = arith.constant dense<0xFF800000> : vector<4x16xf32>
    %42 = vector.multi_reduction <maximumf>, %41, %cst_27 [2] : vector<4x16x16xf32> to vector<4x16xf32>
    %43 = vector.shape_cast %42 : vector<4x16xf32> to vector<4x16x1xf32>
    %44 = vector.broadcast %43 : vector<4x16x1xf32> to vector<4x16x16xf32>
    %45 = arith.subf %41, %44 : vector<4x16x16xf32>
    %46 = math.exp %45 : vector<4x16x16xf32>
    %cst_28 = arith.constant dense<0.000000e+00> : vector<4x16xf32>
    %47 = vector.multi_reduction <add>, %46, %cst_28 [2] : vector<4x16x16xf32> to vector<4x16xf32>
    %48 = vector.shape_cast %47 : vector<4x16xf32> to vector<4x16x1xf32>
    %49 = tpu.reciprocal %48 {approx = true} : vector<4x16x1xf32> -> vector<4x16x1xf32>
    %50 = vector.broadcast %49 : vector<4x16x1xf32> to vector<4x16x16xf32>
    %51 = arith.mulf %46, %50 : vector<4x16x16xf32>
    %52 = arith.truncf %51 : vector<4x16x16xf32> to vector<4x16x16xbf16>
    %53 = vector.extract_strided_slice %27 {offsets = [0, 0, 0], sizes = [4, 16, 4], strides = [1, 1, 1]} : vector<4x16x16xf32> to vector<4x16x4xf32>
    %54 = arith.truncf %53 : vector<4x16x4xf32> to vector<4x16x4xbf16>
    "tpu.trace_start"() <{level = 10 : i32, message = "wqk,wkd->wqd"}> : () -> ()
    %cst_29 = arith.constant dense<0.000000e+00> : vector<4x16x4xf32>
    %55 = tpu.matmul %52, %54, %cst_29 {dimension_numbers = #tpu.dot_dimension_numbers<[2], [1], [1], [2], [0, 0, 0, 1, 1, 2], [0], [0]>} : vector<4x16x16xbf16>, vector<4x16x4xbf16>, vector<4x16x4xf32> -> vector<4x16x4xf32>
    "tpu.trace_stop"() : () -> ()
    %56 = vector.extract_strided_slice %32 {offsets = [0, 0, 0], sizes = [4, 16, 4], strides = [1, 1, 1]} : vector<4x16x16xf32> to vector<4x16x4xf32>
    %57 = arith.truncf %56 : vector<4x16x4xf32> to vector<4x16x4xbf16>
    "tpu.trace_start"() <{level = 10 : i32, message = "wqk,wkd->wqd"}> : () -> ()
    %cst_30 = arith.constant dense<0.000000e+00> : vector<4x16x4xf32>
    %58 = tpu.matmul %52, %57, %cst_30 {dimension_numbers = #tpu.dot_dimension_numbers<[2], [1], [1], [2], [0, 0, 0, 1, 1, 2], [0], [0]>} : vector<4x16x16xbf16>, vector<4x16x4xbf16>, vector<4x16x4xf32> -> vector<4x16x4xf32>
    "tpu.trace_stop"() : () -> ()
    %59 = vector.extract_strided_slice %18 {offsets = [0, 0, 4], sizes = [4, 16, 4], strides = [1, 1, 1]} : vector<4x16x16xf32> to vector<4x16x4xf32>
    %60 = arith.truncf %59 : vector<4x16x4xf32> to vector<4x16x4xbf16>
    %61 = vector.extract_strided_slice %20 {offsets = [0, 0, 4], sizes = [4, 16, 4], strides = [1, 1, 1]} : vector<4x16x16xf32> to vector<4x16x4xf32>
    %62 = arith.truncf %61 : vector<4x16x4xf32> to vector<4x16x4xbf16>
    "tpu.trace_start"() <{level = 10 : i32, message = "wqd,wkd->wqk"}> : () -> ()
    %cst_31 = arith.constant dense<0.000000e+00> : vector<4x16x16xf32>
    %63 = tpu.matmul %60, %62, %cst_31 {dimension_numbers = #tpu.dot_dimension_numbers<[2], [2], [1], [1], [0, 0, 0, 1, 1, 1], [0], [0]>} : vector<4x16x4xbf16>, vector<4x16x4xbf16>, vector<4x16x16xf32> -> vector<4x16x16xf32>
    "tpu.trace_stop"() : () -> ()
    %64 = vector.extract_strided_slice %33 {offsets = [0, 1, 0, 0], sizes = [4, 1, 16, 16], strides = [1, 1, 1, 1]} : vector<4x4x16x16xf32> to vector<4x1x16x16xf32>
    %65 = vector.shape_cast %64 : vector<4x1x16x16xf32> to vector<4x16x16xf32>
    %66 = arith.addf %63, %65 : vector<4x16x16xf32>
    %cst_32 = arith.constant dense<0xFF800000> : vector<4x16xf32>
    %67 = vector.multi_reduction <maximumf>, %66, %cst_32 [2] : vector<4x16x16xf32> to vector<4x16xf32>
    %68 = vector.shape_cast %67 : vector<4x16xf32> to vector<4x16x1xf32>
    %69 = vector.broadcast %68 : vector<4x16x1xf32> to vector<4x16x16xf32>
    %70 = arith.subf %66, %69 : vector<4x16x16xf32>
    %71 = math.exp %70 : vector<4x16x16xf32>
    %cst_33 = arith.constant dense<0.000000e+00> : vector<4x16xf32>
    %72 = vector.multi_reduction <add>, %71, %cst_33 [2] : vector<4x16x16xf32> to vector<4x16xf32>
    %73 = vector.shape_cast %72 : vector<4x16xf32> to vector<4x16x1xf32>
    %74 = tpu.reciprocal %73 {approx = true} : vector<4x16x1xf32> -> vector<4x16x1xf32>
    %75 = vector.broadcast %74 : vector<4x16x1xf32> to vector<4x16x16xf32>
    %76 = arith.mulf %71, %75 : vector<4x16x16xf32>
    %77 = arith.truncf %76 : vector<4x16x16xf32> to vector<4x16x16xbf16>
    %78 = vector.extract_strided_slice %27 {offsets = [0, 0, 4], sizes = [4, 16, 4], strides = [1, 1, 1]} : vector<4x16x16xf32> to vector<4x16x4xf32>
    %79 = arith.truncf %78 : vector<4x16x4xf32> to vector<4x16x4xbf16>
    "tpu.trace_start"() <{level = 10 : i32, message = "wqk,wkd->wqd"}> : () -> ()
    %cst_34 = arith.constant dense<0.000000e+00> : vector<4x16x4xf32>
    %80 = tpu.matmul %77, %79, %cst_34 {dimension_numbers = #tpu.dot_dimension_numbers<[2], [1], [1], [2], [0, 0, 0, 1, 1, 2], [0], [0]>} : vector<4x16x16xbf16>, vector<4x16x4xbf16>, vector<4x16x4xf32> -> vector<4x16x4xf32>
    "tpu.trace_stop"() : () -> ()
    %81 = vector.extract_strided_slice %32 {offsets = [0, 0, 4], sizes = [4, 16, 4], strides = [1, 1, 1]} : vector<4x16x16xf32> to vector<4x16x4xf32>
    %82 = arith.truncf %81 : vector<4x16x4xf32> to vector<4x16x4xbf16>
    "tpu.trace_start"() <{level = 10 : i32, message = "wqk,wkd->wqd"}> : () -> ()
    %cst_35 = arith.constant dense<0.000000e+00> : vector<4x16x4xf32>
    %83 = tpu.matmul %77, %82, %cst_35 {dimension_numbers = #tpu.dot_dimension_numbers<[2], [1], [1], [2], [0, 0, 0, 1, 1, 2], [0], [0]>} : vector<4x16x16xbf16>, vector<4x16x4xbf16>, vector<4x16x4xf32> -> vector<4x16x4xf32>
    "tpu.trace_stop"() : () -> ()
    %84 = vector.extract_strided_slice %18 {offsets = [0, 0, 8], sizes = [4, 16, 4], strides = [1, 1, 1]} : vector<4x16x16xf32> to vector<4x16x4xf32>
    %85 = arith.truncf %84 : vector<4x16x4xf32> to vector<4x16x4xbf16>
    %86 = vector.extract_strided_slice %20 {offsets = [0, 0, 8], sizes = [4, 16, 4], strides = [1, 1, 1]} : vector<4x16x16xf32> to vector<4x16x4xf32>
    %87 = arith.truncf %86 : vector<4x16x4xf32> to vector<4x16x4xbf16>
    "tpu.trace_start"() <{level = 10 : i32, message = "wqd,wkd->wqk"}> : () -> ()
    %cst_36 = arith.constant dense<0.000000e+00> : vector<4x16x16xf32>
    %88 = tpu.matmul %85, %87, %cst_36 {dimension_numbers = #tpu.dot_dimension_numbers<[2], [2], [1], [1], [0, 0, 0, 1, 1, 1], [0], [0]>} : vector<4x16x4xbf16>, vector<4x16x4xbf16>, vector<4x16x16xf32> -> vector<4x16x16xf32>
    "tpu.trace_stop"() : () -> ()
    %89 = vector.extract_strided_slice %33 {offsets = [0, 2, 0, 0], sizes = [4, 1, 16, 16], strides = [1, 1, 1, 1]} : vector<4x4x16x16xf32> to vector<4x1x16x16xf32>
    %90 = vector.shape_cast %89 : vector<4x1x16x16xf32> to vector<4x16x16xf32>
    %91 = arith.addf %88, %90 : vector<4x16x16xf32>
    %cst_37 = arith.constant dense<0xFF800000> : vector<4x16xf32>
    %92 = vector.multi_reduction <maximumf>, %91, %cst_37 [2] : vector<4x16x16xf32> to vector<4x16xf32>
    %93 = vector.shape_cast %92 : vector<4x16xf32> to vector<4x16x1xf32>
    %94 = vector.broadcast %93 : vector<4x16x1xf32> to vector<4x16x16xf32>
    %95 = arith.subf %91, %94 : vector<4x16x16xf32>
    %96 = math.exp %95 : vector<4x16x16xf32>
    %cst_38 = arith.constant dense<0.000000e+00> : vector<4x16xf32>
    %97 = vector.multi_reduction <add>, %96, %cst_38 [2] : vector<4x16x16xf32> to vector<4x16xf32>
    %98 = vector.shape_cast %97 : vector<4x16xf32> to vector<4x16x1xf32>
    %99 = tpu.reciprocal %98 {approx = true} : vector<4x16x1xf32> -> vector<4x16x1xf32>
    %100 = vector.broadcast %99 : vector<4x16x1xf32> to vector<4x16x16xf32>
    %101 = arith.mulf %96, %100 : vector<4x16x16xf32>
    %102 = arith.truncf %101 : vector<4x16x16xf32> to vector<4x16x16xbf16>
    %103 = vector.extract_strided_slice %27 {offsets = [0, 0, 8], sizes = [4, 16, 4], strides = [1, 1, 1]} : vector<4x16x16xf32> to vector<4x16x4xf32>
    %104 = arith.truncf %103 : vector<4x16x4xf32> to vector<4x16x4xbf16>
    "tpu.trace_start"() <{level = 10 : i32, message = "wqk,wkd->wqd"}> : () -> ()
    %cst_39 = arith.constant dense<0.000000e+00> : vector<4x16x4xf32>
    %105 = tpu.matmul %102, %104, %cst_39 {dimension_numbers = #tpu.dot_dimension_numbers<[2], [1], [1], [2], [0, 0, 0, 1, 1, 2], [0], [0]>} : vector<4x16x16xbf16>, vector<4x16x4xbf16>, vector<4x16x4xf32> -> vector<4x16x4xf32>
    "tpu.trace_stop"() : () -> ()
    %106 = vector.extract_strided_slice %32 {offsets = [0, 0, 8], sizes = [4, 16, 4], strides = [1, 1, 1]} : vector<4x16x16xf32> to vector<4x16x4xf32>
    %107 = arith.truncf %106 : vector<4x16x4xf32> to vector<4x16x4xbf16>
    "tpu.trace_start"() <{level = 10 : i32, message = "wqk,wkd->wqd"}> : () -> ()
    %cst_40 = arith.constant dense<0.000000e+00> : vector<4x16x4xf32>
    %108 = tpu.matmul %102, %107, %cst_40 {dimension_numbers = #tpu.dot_dimension_numbers<[2], [1], [1], [2], [0, 0, 0, 1, 1, 2], [0], [0]>} : vector<4x16x16xbf16>, vector<4x16x4xbf16>, vector<4x16x4xf32> -> vector<4x16x4xf32>
    "tpu.trace_stop"() : () -> ()
    %109 = vector.extract_strided_slice %18 {offsets = [0, 0, 12], sizes = [4, 16, 4], strides = [1, 1, 1]} : vector<4x16x16xf32> to vector<4x16x4xf32>
    %110 = arith.truncf %109 : vector<4x16x4xf32> to vector<4x16x4xbf16>
    %111 = vector.extract_strided_slice %20 {offsets = [0, 0, 12], sizes = [4, 16, 4], strides = [1, 1, 1]} : vector<4x16x16xf32> to vector<4x16x4xf32>
    %112 = arith.truncf %111 : vector<4x16x4xf32> to vector<4x16x4xbf16>
    "tpu.trace_start"() <{level = 10 : i32, message = "wqd,wkd->wqk"}> : () -> ()
    %cst_41 = arith.constant dense<0.000000e+00> : vector<4x16x16xf32>
    %113 = tpu.matmul %110, %112, %cst_41 {dimension_numbers = #tpu.dot_dimension_numbers<[2], [2], [1], [1], [0, 0, 0, 1, 1, 1], [0], [0]>} : vector<4x16x4xbf16>, vector<4x16x4xbf16>, vector<4x16x16xf32> -> vector<4x16x16xf32>
    "tpu.trace_stop"() : () -> ()
    %114 = vector.extract_strided_slice %33 {offsets = [0, 3, 0, 0], sizes = [4, 1, 16, 16], strides = [1, 1, 1, 1]} : vector<4x4x16x16xf32> to vector<4x1x16x16xf32>
    %115 = vector.shape_cast %114 : vector<4x1x16x16xf32> to vector<4x16x16xf32>
    %116 = arith.addf %113, %115 : vector<4x16x16xf32>
    %cst_42 = arith.constant dense<0xFF800000> : vector<4x16xf32>
    %117 = vector.multi_reduction <maximumf>, %116, %cst_42 [2] : vector<4x16x16xf32> to vector<4x16xf32>
    %118 = vector.shape_cast %117 : vector<4x16xf32> to vector<4x16x1xf32>
    %119 = vector.broadcast %118 : vector<4x16x1xf32> to vector<4x16x16xf32>
    %120 = arith.subf %116, %119 : vector<4x16x16xf32>
    %121 = math.exp %120 : vector<4x16x16xf32>
    %cst_43 = arith.constant dense<0.000000e+00> : vector<4x16xf32>
    %122 = vector.multi_reduction <add>, %121, %cst_43 [2] : vector<4x16x16xf32> to vector<4x16xf32>
    %123 = vector.shape_cast %122 : vector<4x16xf32> to vector<4x16x1xf32>
    %124 = tpu.reciprocal %123 {approx = true} : vector<4x16x1xf32> -> vector<4x16x1xf32>
    %125 = vector.broadcast %124 : vector<4x16x1xf32> to vector<4x16x16xf32>
    %126 = arith.mulf %121, %125 : vector<4x16x16xf32>
    %127 = arith.truncf %126 : vector<4x16x16xf32> to vector<4x16x16xbf16>
    %128 = vector.extract_strided_slice %27 {offsets = [0, 0, 12], sizes = [4, 16, 4], strides = [1, 1, 1]} : vector<4x16x16xf32> to vector<4x16x4xf32>
    %129 = arith.truncf %128 : vector<4x16x4xf32> to vector<4x16x4xbf16>
    "tpu.trace_start"() <{level = 10 : i32, message = "wqk,wkd->wqd"}> : () -> ()
    %cst_44 = arith.constant dense<0.000000e+00> : vector<4x16x4xf32>
    %130 = tpu.matmul %127, %129, %cst_44 {dimension_numbers = #tpu.dot_dimension_numbers<[2], [1], [1], [2], [0, 0, 0, 1, 1, 2], [0], [0]>} : vector<4x16x16xbf16>, vector<4x16x4xbf16>, vector<4x16x4xf32> -> vector<4x16x4xf32>
    "tpu.trace_stop"() : () -> ()
    %131 = vector.extract_strided_slice %32 {offsets = [0, 0, 12], sizes = [4, 16, 4], strides = [1, 1, 1]} : vector<4x16x16xf32> to vector<4x16x4xf32>
    %132 = arith.truncf %131 : vector<4x16x4xf32> to vector<4x16x4xbf16>
    "tpu.trace_start"() <{level = 10 : i32, message = "wqk,wkd->wqd"}> : () -> ()
    %cst_45 = arith.constant dense<0.000000e+00> : vector<4x16x4xf32>
    %133 = tpu.matmul %127, %132, %cst_45 {dimension_numbers = #tpu.dot_dimension_numbers<[2], [1], [1], [2], [0, 0, 0, 1, 1, 2], [0], [0]>} : vector<4x16x16xbf16>, vector<4x16x4xbf16>, vector<4x16x4xf32> -> vector<4x16x4xf32>
    "tpu.trace_stop"() : () -> ()
    %134 = tpu.concatenate %55, %80, %105, %130 in 2 : vector<4x16x4xf32>, vector<4x16x4xf32>, vector<4x16x4xf32>, vector<4x16x4xf32> -> vector<4x16x16xf32>
    %135 = tpu.concatenate %58, %83, %108, %133 in 2 : vector<4x16x4xf32>, vector<4x16x4xf32>, vector<4x16x4xf32>, vector<4x16x4xf32> -> vector<4x16x16xf32>
    %c0_46 = arith.constant 0 : index
    %c0_47 = arith.constant 0 : index
    %136 = vector.load %arg9[%c0_46, %c0_47] : memref<16x16xbf16, #tpu.memory_space<vmem>>, vector<16x16xbf16>
    %c0_48 = arith.constant 0 : index
    %c0_49 = arith.constant 0 : index
    %137 = vector.load %arg10[%c0_48, %c0_49] : memref<1x16xf32, #tpu.memory_space<vmem>>, vector<1x16xf32>
    %138 = vector.shape_cast %134 : vector<4x16x16xf32> to vector<64x16xf32>
    %139 = arith.truncf %138 : vector<64x16xf32> to vector<64x16xbf16>
    %cst_50 = arith.constant dense<0.000000e+00> : vector<64x16xf32>
    %140 = tpu.matmul %139, %136, %cst_50 {dimension_numbers = #tpu.dot_dimension_numbers<[1], [0], [0], [1], [0, 0, 1, 1], [], []>} : vector<64x16xbf16>, vector<16x16xbf16>, vector<64x16xf32> -> vector<64x16xf32>
    %141 = vector.broadcast %137 : vector<1x16xf32> to vector<64x16xf32>
    %142 = arith.addf %140, %141 : vector<64x16xf32>
    %143 = vector.shape_cast %135 : vector<4x16x16xf32> to vector<64x16xf32>
    %144 = arith.truncf %143 : vector<64x16xf32> to vector<64x16xbf16>
    %cst_51 = arith.constant dense<0.000000e+00> : vector<64x16xf32>
    %145 = tpu.matmul %144, %136, %cst_51 {dimension_numbers = #tpu.dot_dimension_numbers<[1], [0], [0], [1], [0, 0, 1, 1], [], []>} : vector<64x16xbf16>, vector<16x16xbf16>, vector<64x16xf32> -> vector<64x16xf32>
    %146 = vector.broadcast %137 : vector<1x16xf32> to vector<64x16xf32>
    %147 = arith.addf %145, %146 : vector<64x16xf32>
    %148 = arith.addf %5, %142 : vector<64x16xf32>
    %149 = vector.shape_cast %148 : vector<64x16xf32> to vector<4x16x16xf32>
    %c0_52 = arith.constant 0 : index
    %c0_53 = arith.constant 0 : index
    %c0_54 = arith.constant 0 : index
    %c0_55 = arith.constant 0 : index
    %150 = vector.load %arg11[%c0_52, %c0_53, %c0_54, %c0_55] : memref<1x4x16x16xf32, #tpu.memory_space<vmem>>, vector<1x4x16x16xf32>
    %151 = vector.shape_cast %150 : vector<1x4x16x16xf32> to vector<4x16x16xf32>
    %152 = vector.shape_cast %149 : vector<4x16x16xf32> to vector<1x4x16x16xf32>
    tpu.vector_store %arg11[%c0_52, %c0_53, %c0_54, %c0_55], %152 {strides = array<i32>} : memref<1x4x16x16xf32, #tpu.memory_space<vmem>>, vector<1x4x16x16xf32>,
    %153 = arith.addf %8, %147 : vector<64x16xf32>
    %154 = vector.shape_cast %153 : vector<64x16xf32> to vector<4x16x16xf32>
    %c0_56 = arith.constant 0 : index
    %c0_57 = arith.constant 0 : index
    %c0_58 = arith.constant 0 : index
    %c0_59 = arith.constant 0 : index
    %155 = vector.load %arg12[%c0_56, %c0_57, %c0_58, %c0_59] : memref<1x4x16x16xf32, #tpu.memory_space<vmem>>, vector<1x4x16x16xf32>
    %156 = vector.shape_cast %155 : vector<1x4x16x16xf32> to vector<4x16x16xf32>
    %157 = vector.shape_cast %154 : vector<4x16x16xf32> to vector<1x4x16x16xf32>
    tpu.vector_store %arg12[%c0_56, %c0_57, %c0_58, %c0_59], %157 {strides = array<i32>} : memref<1x4x16x16xf32, #tpu.memory_space<vmem>>, vector<1x4x16x16xf32>,
    return
  }
  func.func @transform_0(%arg0: i32) -> (i32, i32, i32, i32) {
    %c0_i32 = arith.constant 0 : i32
    %c0_i32_0 = arith.constant 0 : i32
    %c0_i32_1 = arith.constant 0 : i32
    %c0_i32_2 = arith.constant 0 : i32
    return %arg0, %c0_i32, %c0_i32_0, %c0_i32_1 : i32, i32, i32, i32
  }
  func.func @transform_1(%arg0: i32) -> (i32, i32, i32, i32) {
    %c0_i32 = arith.constant 0 : i32
    %c0_i32_0 = arith.constant 0 : i32
    %c0_i32_1 = arith.constant 0 : i32
    %c0_i32_2 = arith.constant 0 : i32
    return %arg0, %c0_i32, %c0_i32_0, %c0_i32_1 : i32, i32, i32, i32
  }
  func.func @transform_2(%arg0: i32) -> (i32, i32, i32, i32) {
    %c0_i32 = arith.constant 0 : i32
    %c0_i32_0 = arith.constant 0 : i32
    %c0_i32_1 = arith.constant 0 : i32
    %c0_i32_2 = arith.constant 0 : i32
    return %arg0, %c0_i32, %c0_i32_0, %c0_i32_1 : i32, i32, i32, i32
  }
  func.func @transform_3(%arg0: i32) -> (i32, i32, i32, i32) {
    %c0_i32 = arith.constant 0 : i32
    %c0_i32_0 = arith.constant 0 : i32
    %c0_i32_1 = arith.constant 0 : i32
    %c0_i32_2 = arith.constant 0 : i32
    %c0_i32_3 = arith.constant 0 : i32
    return %c0_i32, %c0_i32_0, %c0_i32_1, %c0_i32_2 : i32, i32, i32, i32
  }
  func.func @transform_4(%arg0: i32) -> (i32, i32) {
    %c0_i32 = arith.constant 0 : i32
    %c0_i32_0 = arith.constant 0 : i32
    %c0_i32_1 = arith.constant 0 : i32
    return %c0_i32, %c0_i32_0 : i32, i32
  }
  func.func @transform_5(%arg0: i32) -> (i32, i32) {
    %c0_i32 = arith.constant 0 : i32
    %c0_i32_0 = arith.constant 0 : i32
    %c0_i32_1 = arith.constant 0 : i32
    return %c0_i32, %c0_i32_0 : i32, i32
  }
  func.func @transform_6(%arg0: i32) -> (i32, i32) {
    %c0_i32 = arith.constant 0 : i32
    %c0_i32_0 = arith.constant 0 : i32
    %c0_i32_1 = arith.constant 0 : i32
    return %c0_i32, %c0_i32_0 : i32, i32
  }
  func.func @transform_7(%arg0: i32) -> (i32, i32) {
    %c0_i32 = arith.constant 0 : i32
    %c0_i32_0 = arith.constant 0 : i32
    %c0_i32_1 = arith.constant 0 : i32
    return %c0_i32, %c0_i32_0 : i32, i32
  }
  func.func @transform_8(%arg0: i32) -> (i32, i32) {
    %c0_i32 = arith.constant 0 : i32
    %c0_i32_0 = arith.constant 0 : i32
    %c0_i32_1 = arith.constant 0 : i32
    return %c0_i32, %c0_i32_0 : i32, i32
  }
  func.func @transform_9(%arg0: i32) -> (i32, i32) {
    %c0_i32 = arith.constant 0 : i32
    %c0_i32_0 = arith.constant 0 : i32
    %c0_i32_1 = arith.constant 0 : i32
    return %c0_i32, %c0_i32_0 : i32, i32
  }
  func.func @transform_10(%arg0: i32) -> (i32, i32, i32, i32) {
    %c0_i32 = arith.constant 0 : i32
    %c0_i32_0 = arith.constant 0 : i32
    %c0_i32_1 = arith.constant 0 : i32
    %c0_i32_2 = arith.constant 0 : i32
    return %arg0, %c0_i32, %c0_i32_0, %c0_i32_1 : i32, i32, i32, i32
  }
  func.func @transform_11(%arg0: i32) -> (i32, i32, i32, i32) {
    %c0_i32 = arith.constant 0 : i32
    %c0_i32_0 = arith.constant 0 : i32
    %c0_i32_1 = arith.constant 0 : i32
    %c0_i32_2 = arith.constant 0 : i32
    return %arg0, %c0_i32, %c0_i32_0, %c0_i32_1 : i32, i32, i32, i32
  }
}

module attributes {stable_mosaic.version = 11 : i64} {
  func.func @_mlp_kernel(%arg0: i32, %arg1: memref<1x16x128xf32, #tpu.memory_space<vmem>>, %arg2: memref<1x64x16xbf16, #tpu.memory_space<vmem>>, %arg3: memref<1x64x1xf32, #tpu.memory_space<vmem>>, %arg4: memref<1x16x64xbf16, #tpu.memory_space<vmem>>, %arg5: memref<1x16x1xf32, #tpu.memory_space<vmem>>, %arg6: memref<1x16x128xf32, #tpu.memory_space<vmem>>) attributes {dimension_semantics = [#tpu.dimension_semantics<parallel>], iteration_bounds = array<i64: 2>, scalar_prefetch = 0 : i64, scratch_operands = 0 : i64, tpu.core_type = #tpu.core_type<tc>, window_params = [{transform_indices = @transform_0, window_bounds = array<i64: 1, 16, 128>}, {transform_indices = @transform_1, window_bounds = array<i64: 1, 64, 16>}, {transform_indices = @transform_2, window_bounds = array<i64: 1, 64, 1>}, {transform_indices = @transform_3, window_bounds = array<i64: 1, 16, 64>}, {transform_indices = @transform_4, window_bounds = array<i64: 1, 16, 1>}, {transform_indices = @transform_5, window_bounds = array<i64: 1, 16, 128>}]} {
    %c0 = arith.constant 0 : index
    %c0_0 = arith.constant 0 : index
    %c0_1 = arith.constant 0 : index
    %0 = vector.load %arg1[%c0, %c0_0, %c0_1] : memref<1x16x128xf32, #tpu.memory_space<vmem>>, vector<1x16x128xf32>
    %1 = vector.shape_cast %0 : vector<1x16x128xf32> to vector<16x128xf32>
    %2 = arith.truncf %1 : vector<16x128xf32> to vector<16x128xbf16>
    %c0_2 = arith.constant 0 : index
    %c0_3 = arith.constant 0 : index
    %c0_4 = arith.constant 0 : index
    %3 = vector.load %arg2[%c0_2, %c0_3, %c0_4] : memref<1x64x16xbf16, #tpu.memory_space<vmem>>, vector<1x64x16xbf16>
    %4 = vector.shape_cast %3 : vector<1x64x16xbf16> to vector<64x16xbf16>
    %cst = arith.constant dense<0.000000e+00> : vector<64x128xf32>
    %5 = tpu.matmul %4, %2, %cst {dimension_numbers = #tpu.dot_dimension_numbers<[1], [0], [0], [1], [0, 0, 1, 1], [], []>} : vector<64x16xbf16>, vector<16x128xbf16>, vector<64x128xf32> -> vector<64x128xf32>
    %c0_5 = arith.constant 0 : index
    %c0_6 = arith.constant 0 : index
    %c0_7 = arith.constant 0 : index
    %6 = vector.load %arg3[%c0_5, %c0_6, %c0_7] : memref<1x64x1xf32, #tpu.memory_space<vmem>>, vector<1x64x1xf32>
    %7 = vector.shape_cast %6 : vector<1x64x1xf32> to vector<64x1xf32>
    %8 = vector.broadcast %7 : vector<64x1xf32> to vector<64x128xf32>
    %9 = arith.addf %5, %8 : vector<64x128xf32>
    %cst_8 = arith.constant 5.000000e-01 : f32
    %10 = vector.broadcast %cst_8 : f32 to vector<64x128xf32>
    %11 = arith.mulf %10, %9 : vector<64x128xf32>
    %cst_9 = arith.constant 4.471500e-02 : f32
    %12 = vector.broadcast %cst_9 : f32 to vector<64x128xf32>
    %13 = arith.mulf %12, %9 : vector<64x128xf32>
    %14 = arith.mulf %13, %9 : vector<64x128xf32>
    %15 = arith.mulf %14, %9 : vector<64x128xf32>
    %16 = arith.addf %9, %15 : vector<64x128xf32>
    %cst_10 = arith.constant 0.797884583 : f32
    %17 = vector.broadcast %cst_10 : f32 to vector<64x128xf32>
    %18 = arith.mulf %17, %16 : vector<64x128xf32>
    %19 = math.tanh %18 : vector<64x128xf32>
    %cst_11 = arith.constant 1.000000e+00 : f32
    %20 = vector.broadcast %cst_11 : f32 to vector<64x128xf32>
    %21 = arith.addf %20, %19 : vector<64x128xf32>
    %22 = arith.mulf %11, %21 : vector<64x128xf32>
    %c0_12 = arith.constant 0 : index
    %c0_13 = arith.constant 0 : index
    %c0_14 = arith.constant 0 : index
    %23 = vector.load %arg4[%c0_12, %c0_13, %c0_14] : memref<1x16x64xbf16, #tpu.memory_space<vmem>>, vector<1x16x64xbf16>
    %24 = vector.shape_cast %23 : vector<1x16x64xbf16> to vector<16x64xbf16>
    %25 = arith.truncf %22 : vector<64x128xf32> to vector<64x128xbf16>
    %cst_15 = arith.constant dense<0.000000e+00> : vector<16x128xf32>
    %26 = tpu.matmul %24, %25, %cst_15 {dimension_numbers = #tpu.dot_dimension_numbers<[1], [0], [0], [1], [0, 0, 1, 1], [], []>} : vector<16x64xbf16>, vector<64x128xbf16>, vector<16x128xf32> -> vector<16x128xf32>
    %c0_16 = arith.constant 0 : index
    %c0_17 = arith.constant 0 : index
    %c0_18 = arith.constant 0 : index
    %27 = vector.load %arg5[%c0_16, %c0_17, %c0_18] : memref<1x16x1xf32, #tpu.memory_space<vmem>>, vector<1x16x1xf32>
    %28 = vector.shape_cast %27 : vector<1x16x1xf32> to vector<16x1xf32>
    %29 = vector.broadcast %28 : vector<16x1xf32> to vector<16x128xf32>
    %30 = arith.addf %26, %29 : vector<16x128xf32>
    %31 = arith.addf %1, %30 : vector<16x128xf32>
    %c0_19 = arith.constant 0 : index
    %c0_20 = arith.constant 0 : index
    %c0_21 = arith.constant 0 : index
    %32 = vector.load %arg6[%c0_19, %c0_20, %c0_21] : memref<1x16x128xf32, #tpu.memory_space<vmem>>, vector<1x16x128xf32>
    %33 = vector.shape_cast %32 : vector<1x16x128xf32> to vector<16x128xf32>
    %34 = vector.shape_cast %31 : vector<16x128xf32> to vector<1x16x128xf32>
    tpu.vector_store %arg6[%c0_19, %c0_20, %c0_21], %34 {strides = array<i32>} : memref<1x16x128xf32, #tpu.memory_space<vmem>>, vector<1x16x128xf32>,
    return
  }
  func.func @transform_0(%arg0: i32) -> (i32, i32, i32) {
    %c0_i32 = arith.constant 0 : i32
    %c0_i32_0 = arith.constant 0 : i32
    %c0_i32_1 = arith.constant 0 : i32
    return %arg0, %c0_i32, %c0_i32_0 : i32, i32, i32
  }
  func.func @transform_1(%arg0: i32) -> (i32, i32, i32) {
    %c0_i32 = arith.constant 0 : i32
    %c0_i32_0 = arith.constant 0 : i32
    %c0_i32_1 = arith.constant 0 : i32
    return %arg0, %c0_i32, %c0_i32_0 : i32, i32, i32
  }
  func.func @transform_2(%arg0: i32) -> (i32, i32, i32) {
    %c0_i32 = arith.constant 0 : i32
    %c0_i32_0 = arith.constant 0 : i32
    %c0_i32_1 = arith.constant 0 : i32
    return %arg0, %c0_i32, %c0_i32_0 : i32, i32, i32
  }
  func.func @transform_3(%arg0: i32) -> (i32, i32, i32) {
    %c0_i32 = arith.constant 0 : i32
    %c0_i32_0 = arith.constant 0 : i32
    %c0_i32_1 = arith.constant 0 : i32
    return %arg0, %c0_i32, %c0_i32_0 : i32, i32, i32
  }
  func.func @transform_4(%arg0: i32) -> (i32, i32, i32) {
    %c0_i32 = arith.constant 0 : i32
    %c0_i32_0 = arith.constant 0 : i32
    %c0_i32_1 = arith.constant 0 : i32
    return %arg0, %c0_i32, %c0_i32_0 : i32, i32, i32
  }
  func.func @transform_5(%arg0: i32) -> (i32, i32, i32) {
    %c0_i32 = arith.constant 0 : i32
    %c0_i32_0 = arith.constant 0 : i32
    %c0_i32_1 = arith.constant 0 : i32
    return %arg0, %c0_i32, %c0_i32_0 : i32, i32, i32
  }
}

</mosaic_0001>

<bundles_post_ra>
// kernel: _lambda_.5
= control target key start
LH: loop header
LB: loop body
LE: loop exit
PB: predicated region body
PF: predicated region fallthrough
CT: control target
= control target key end

     0   :  { %v315_v0 = vmov 0   ;;  %vm100_vm0 = vcmask 130048   ;;  %vm237_vm1 = vcmask 523264   ;;  %s443_s2 = inlined_call_operand.vmem [shape: f32[1,64,1], index: 2, kind: input, shape index: {}]   ;;  %s444_s0 = inlined_call_operand.vmem [shape: f32[1,16,128], index: 0, kind: input, shape index: {}]   ;;  %s445_s1 = inlined_call_operand.vmem [shape: bf16[1,64,16], index: 1, kind: input, shape index: {}]   ;;  %s446_s4 = inlined_call_operand.vmem [shape: f32[1,16,1], index: 4, kind: input, shape index: {}]   ;;  %s447_s3 = inlined_call_operand.vmem [shape: bf16[1,16,64], index: 3, kind: input, shape index: {}]   ;;  %s448_s5 = inlined_call_operand.vmem [shape: f32[1,16,128], index: 5, kind: output, shape index: {}]  }
   0x1   :  { %296 = vset.pattern.permute.xlu0 %v315_v0  ;;  %v38_v1 = vld [vmem:[%s443_s2 + $0x30] sm:$0xff]  ;;  %v352_v2 = vld [vmem:[%s444_s0] sm:$0xff]  ;;  %v357_v3 = vld [vmem:[%s444_s0 + $0x8] sm:$0xff]  ;;  %297 = vset.pattern.permute.xlu1 %v315_v0 }
   0x2   :  { %72 = vperm.xlu0 %296, %v38_v1   ;;  %v23_v4 = vpack.c.bf16 %v357_v3, %v352_v2  ;;  %298 = vset.pattern.permute.xlu2 %v315_v0  ;;  %v288_v5 = vld [vmem:[%s445_s1] sm:$0xff]  ;;  %v289_v6 = vld [vmem:[%s445_s1 + $0x8] sm:$0xff]  ;;  %v291_v8 = vld [vmem:[%s445_s1 + $0x18] sm:$0xff] }
   0x3   :  { %v36_v7 = vld [vmem:[%s443_s2 + $0x20] sm:$0xff]  ;;  %v34_v9 = vld [vmem:[%s443_s2 + $0x10] sm:$0xff]  ;;  %v39_v10 = vld [vmem:[%s443_s2 + $0x38] sm:$0xff] }
   0x4   :  { %120 = vmatpush.bf16.msra.mxu0 %v23_v4  ;;  %293 = vmatpush.bf16.msra.mxu2 %v23_v4  ;;  %v37_v11 = vld [vmem:[%s443_s2 + $0x28] sm:$0xff]  ;;  %v35_v12 = vld [vmem:[%s443_s2 + $0x18] sm:$0xff]  ;;  %v32_v13 = vld [vmem:[%s443_s2] sm:$0xff] }
   0x5   :  { %294 = vmatpush.bf16.msra.mxu3 %v23_v4  ;;  %62 = vperm.xlu1 %297, %v36_v7   ;;  %v33_v14 = vld [vmem:[%s443_s2 + $0x8] sm:$0xff]  ;;  %v290_v15 = vld [vmem:[%s445_s1 + $0x10] sm:$0xff]  ;;  %v220_v16 = vld [vmem:[%s446_s4] sm:$0xff] }
   0x6   :  { %52 = vperm.xlu2 %298, %v34_v9   ;;  %v221_v17 = vld [vmem:[%s446_s4 + $0x8] sm:$0xff] }
   0x7   :  { %279 = vmatmul.msk.bf16.vlgmr.msra.gmra.mxu0 %vm100_vm0, %v288_v5  ;;  %280 = vmatmul.msk.bf16.vlgmr.msra.gmra.mxu2 %vm100_vm0, %v289_v6 }
   0x8   :  { %282 = vmatmul.msk.bf16.vlgmr.msra.gmra.mxu3 %vm100_vm0, %v291_v8 }
   0xa   :  { %77 = vperm.xlu0 %296, %v39_v10  }
   0xd   :  { %67 = vperm.xlu1 %297, %v37_v11  }
   0xe   :  { %57 = vperm.xlu2 %298, %v35_v12  }
  0x12   :  { %42 = vperm.xlu0 %296, %v32_v13  }
  0x15   :  { %47 = vperm.xlu1 %297, %v33_v14  }
  0x16   :  { %224 = vperm.xlu2 %298, %v220_v16  }
  0x17   :  { %281 = vmatmul.msk.bf16.gmra.mxu2 %vm100_vm0, %v290_v15 }
  0x1a   :  { %229 = vperm.xlu0 %296, %v221_v17  }
  0x60   :  { %v53_v20 = vpop.permute.xlu2 %52 }
  0x68   :  { %v58_v29 = vpop.permute.xlu2 %57 }
  0x74   :  { %v73_v19 = vpop.permute.xlu0 %72 }
  0x77   :  { %v63_v18 = vpop.permute.xlu1 %62 }
  0x7c   :  { %v78_v26 = vpop.permute.xlu0 %77 }
  0x7f   :  { %v68_v21 = vpop.permute.xlu1 %67 }
  0x84   :  { %v122_v23 = vpop.f32.mrf.mxu0  ;;  %v43_v40 = vpop.permute.xlu0 %42 }
  0x85   :  { %v411_v45 = vadd.f32 %v122_v23, %v43_v40 }
  0x87   :  { %v48_v35 = vpop.permute.xlu1 %47  ;;  %v150_v54 = vmul.f32 0.044715, %v411_v45 }
  0x89   :  { %v158_v0 = vmul.f32 %v150_v54, %v411_v45  ;;  %v142_v54 = vmul.f32 0.5, %v411_v45 }
  0x8a   :  { %v127_v22 = vpop.f32.mrf.mxu2 }
  0x8b   :  { %v137_v24 = vpop.f32.mrf.mxu3  ;;  %v406_v38 = vadd.f32 %v127_v22, %v53_v20  ;;  %v166_v12 = vmul.f32 %v158_v0, %v411_v45 }
  0x8c   :  { %v138_v25 = vadd.f32 %v137_v24, %v73_v19  ;;  %v124_v36 = vpop.f32.mrf.mxu0 }
  0x8d   :  { %v408_v41 = vadd.f32 %v124_v36, %v48_v35  ;;  %v152_v46 = vmul.f32 0.044715, %v406_v38 }
  0x8e   :  { %v156_v27 = vmul.f32 0.044715, %v138_v25  ;;  %v148_v10 = vmul.f32 0.5, %v138_v25 }
  0x8f   :  { %v151_v50 = vmul.f32 0.044715, %v408_v41  ;;  %v160_v56 = vmul.f32 %v152_v46, %v406_v38 }
  0x90   :  { %v164_v28 = vmul.f32 %v156_v27, %v138_v25 }
  0x91   :  { %v159_v58 = vmul.f32 %v151_v50, %v408_v41  ;;  %v168_v63 = vmul.f32 %v160_v56, %v406_v38  ;;  %v144_v50 = vmul.f32 0.5, %v406_v38 }
  0x92   :  { %v129_v30 = vpop.f32.mrf.mxu2  ;;  %v172_v31 = vmul.f32 %v164_v28, %v138_v25 }
  0x93   :  { %v139_v32 = vpop.f32.mrf.mxu3  ;;  %v404_v37 = vadd.f32 %v129_v30, %v58_v29  ;;  %v167_v5 = vmul.f32 %v159_v58, %v408_v41  ;;  %v176_v11 = vadd.f32 %v168_v63, %v406_v38  ;;  %v225_v38 = vpop.permute.xlu2 %224 }
  0x94   :  { %v140_v33 = vadd.f32 %v139_v32, %v78_v26  ;;  %v180_v34 = vadd.f32 %v172_v31, %v138_v25  ;;  %v174_v25 = vadd.f32 %v166_v12, %v411_v45 }
  0x95   :  { %v153_v44 = vmul.f32 0.044715, %v404_v37  ;;  %v175_v17 = vadd.f32 %v167_v5, %v408_v41  ;;  %v184_v22 = vmul.f32 0.7978846, %v176_v11 }
  0x96   :  { %v157_v39 = vmul.f32 0.044715, %v140_v33  ;;  %v188_v43 = vmul.f32 0.7978846, %v180_v34  ;;  %v149_v13 = vmul.f32 0.5, %v140_v33 }
  0x97   :  { %v161_v53 = vmul.f32 %v153_v44, %v404_v37  ;;  %v183_v27 = vmul.f32 0.7978846, %v175_v17  ;;  %v182_v28 = vmul.f32 0.7978846, %v174_v25  ;;  %v145_v44 = vmul.f32 0.5, %v404_v37 }
  0x98   :  { %v165_v42 = vmul.f32 %v157_v39, %v140_v33  ;;  %299 = vtanh.f32 %v188_v43 }
  0x99   :  { %v169_v60 = vmul.f32 %v161_v53, %v404_v37 }
  0x9a   :  { %v132_v47 = vpop.f32.mrf.mxu2  ;;  %v173_v48 = vmul.f32 %v165_v42, %v140_v33 }
  0x9b   :  { %v133_v49 = vadd.f32 %v132_v47, %v63_v18  ;;  %v177_v8 = vadd.f32 %v169_v60, %v404_v37  ;;  %v292_v37 = vld [vmem:[%s447_s3] sm:$0xff] }
  0x9c   :  { %v181_v51 = vadd.f32 %v173_v48, %v140_v33 }
  0x9d   :  { %v154_v52 = vmul.f32 0.044715, %v133_v49  ;;  %v146_v34 = vmul.f32 0.5, %v133_v49 }
  0x9e   :  { %v189_v55 = vmul.f32 0.7978846, %v181_v51  ;;  %v300_v61 = vpop.eup %299 }
  0x9f   :  { %v162_v57 = vmul.f32 %v154_v52, %v133_v49  ;;  %v204_v7 = vadd.f32 1.0, %v300_v61 }
  0xa0   :  { %301 = vtanh.f32 %v189_v55 }
  0xa1   :  { %v170_v59 = vmul.f32 %v162_v57, %v133_v49  ;;  %v212_v18 = vmul.f32 %v204_v7, %v148_v10 }
  0xa2   :  { %v134_v62 = vpop.f32.mrf.mxu2 }
  0xa3   :  { %v135_v1 = vadd.f32 %v134_v62, %v68_v21  ;;  %v178_v4 = vadd.f32 %v170_v59, %v133_v49  ;;  %v185_v21 = vmul.f32 0.7978846, %v177_v8  ;;  %v143_v49 = vmul.f32 0.5, %v408_v41  ;;  %v230_v41 = vpop.permute.xlu0 %229 }
  0xa5   :  { %v155_v6 = vmul.f32 0.044715, %v135_v1  ;;  %v186_v16 = vmul.f32 0.7978846, %v178_v4  ;;  %v147_v35 = vmul.f32 0.5, %v135_v1 }
  0xa6   :  { %v302_v9 = vpop.eup %301 }
  0xa7   :  { %v205_v14 = vadd.f32 1.0, %v302_v9  ;;  %v163_v15 = vmul.f32 %v155_v6, %v135_v1  ;;  %303 = vtanh.f32 %v186_v16 }
  0xa8   :  { %305 = vtanh.f32 %v185_v21 }
  0xa9   :  { %v213_v19 = vmul.f32 %v205_v14, %v149_v13  ;;  %v171_v20 = vmul.f32 %v163_v15, %v135_v1  ;;  %307 = vtanh.f32 %v184_v22 }
  0xab   :  { %v219_v23 = vpack.c.bf16 %v213_v19, %v212_v18  ;;  %v179_v24 = vadd.f32 %v171_v20, %v135_v1 }
  0xad   :  { %245 = vmatpush.bf16.msra.mxu1 %v219_v23  ;;  %v187_v26 = vmul.f32 0.7978846, %v179_v24  ;;  %v304_v29 = vpop.eup %303 }
  0xae   :  { %v306_v30 = vpop.eup %305  ;;  %v202_v32 = vadd.f32 1.0, %v304_v29 }
  0xaf   :  { %309 = vtanh.f32 %v187_v26  ;;  %v308_v31 = vpop.eup %307  ;;  %v201_v39 = vadd.f32 1.0, %v306_v30 }
  0xb0   :  { %311 = vtanh.f32 %v183_v27  ;;  %v210_v42 = vmul.f32 %v202_v32, %v146_v34  ;;  %v200_v46 = vadd.f32 1.0, %v308_v31 }
  0xb1   :  { %313 = vtanh.f32 %v182_v28  ;;  %v209_v51 = vmul.f32 %v201_v39, %v145_v44 }
  0xb2   :  { %v208_v53 = vmul.f32 %v200_v46, %v144_v50 }
  0xb4   :  { %v217_v56 = vpack.c.bf16 %v209_v51, %v208_v53 }
  0xb5   :  { %v310_v33 = vpop.eup %309 }
  0xb6   :  { %v203_v36 = vadd.f32 1.0, %v310_v33  ;;  %v312_v40 = vpop.eup %311 }
  0xb7   :  { %v314_v47 = vpop.eup %313  ;;  %v199_v52 = vadd.f32 1.0, %v312_v40 }
  0xb8   :  { %v211_v43 = vmul.f32 %v203_v36, %v147_v35  ;;  %v198_v55 = vadd.f32 1.0, %v314_v47 }
  0xb9   :  { %v207_v57 = vmul.f32 %v199_v52, %v143_v49 }
  0xba   :  { %v218_v48 = vpack.c.bf16 %v211_v43, %v210_v42  ;;  %v206_v58 = vmul.f32 %v198_v55, %v142_v54 }
  0xbc   :  { %246 = vmatpush.bf16.msra.mxu1 %v218_v48  ;;  %v216_v59 = vpack.c.bf16 %v207_v57, %v206_v58 }
  0xc0   :  { %247 = vmatpush.bf16.msra.mxu1 %v217_v56 }
  0xc4   :  { %248 = vmatpush.bf16.msra.mxu1 %v216_v59 }
  0xc7   :  { %287 = vmatmul.msk.bf16.vlgmr.msra.gmra.mxu1 %vm237_vm1, %v292_v37 }
 0x144   :  { %v250_v60 = vpop.f32.mrf.mxu1 }
 0x145   :  { %v251_v61 = vadd.f32 %v250_v60, %v225_v38 }
 0x147   :  { %v255_v45 = vadd.f32 %v251_v61, %v352_v2 }
 0x149   :  { %257 = vst [vmem:[%s448_s5] sm:$0xff] %v255_v45 }
 0x14c   :  { %v252_v62 = vpop.f32.mrf.mxu1 }
 0x14d   :  { %v253_v63 = vadd.f32 %v252_v62, %v230_v41 }
 0x14f   :  { %v256_v0 = vadd.f32 %v253_v63, %v357_v3 }
 0x151   :  { %258 = vst [vmem:[%s448_s5 + $0x8] sm:$0xff] %v256_v0 }

// kernel: _lambda_.7
= control target key start
LH: loop header
LB: loop body
LE: loop exit
PB: predicated region body
PF: predicated region fallthrough
CT: control target
= control target key end

     0   :  { %s771_s18 = smov 0   ;;  %s851_s0 = inlined_call_operand.vmem [shape: f32[2,16,128], index: 0, kind: input, shape index: {}]   ;;  %s852_s1 = inlined_call_operand.vmem [shape: bf16[2,64,16], index: 1, kind: input, shape index: {}]   ;;  %s853_s2 = inlined_call_operand.vmem [shape: f32[2,64,1], index: 2, kind: input, shape index: {}]   ;;  %s854_s3 = inlined_call_operand.vmem [shape: bf16[2,16,64], index: 3, kind: input, shape index: {}]   ;;  %s855_s4 = inlined_call_operand.vmem [shape: f32[2,16,1], index: 4, kind: input, shape index: {}]   ;;  %s856_s5 = inlined_call_operand.vmem [shape: f32[2,16,128], index: 5, kind: output, shape index: {}]  }
   0x1 LB: > { %s647_s19 = sadd.s32 4294967295, %s738_s18   ;;  %p651_p0 = scmp.ge.s32.totalorder %s738_s18, 1  ;;  %s738_s18 = sphi %s771_s18, %s15_s18  }
   0x2   : > { %p227_p1 = scmp.lt.s32.totalorder %s738_s18, 3 }
   0x4   : > { %p228_p2 = pnand %p651_p0, %p227_p1 }
   0x5   : > { %p275_p3 = scmp.lt.s32.totalorder (!%p228_p2), %s647_s19, 1 }
   0x6   : > { %231 = sbr.rel (%p228_p2) target bundleno = 351 (0x15f), region = 40 }
   0xb   : > { %v740_v0 = vmov 0   ;;  %s858_s19 = smov (!%p275_p3, %s647_s19), 1  ;;  %vm385_vm0 = vcmask 130048   ;;  %vm522_vm1 = vcmask 523264  }
   0xc   : > { %713 = vset.pattern.permute.xlu0 %v740_v0  ;;  %714 = vset.pattern.permute.xlu1 %v740_v0  ;;  %s693_s20 = sshll.u32 %s858_s19, 6  ;;  %s783_s21 = sshll.u32 %s858_s19, 4 }
   0xd   : > { %715 = vset.pattern.permute.xlu2 %v740_v0  ;;  %s289_s24 = scalar_lea.vmem %s853_s2, %s693_s20  ;;  %s279_s27 = scalar_lea.vmem %s851_s0, %s783_s21 }
   0xe   : > { %v323_v1 = vld [vmem:[%s289_s24 + $0x30] sm:$0xff]  ;;  %v792_v2 = vld [vmem:[%s279_s27] sm:$0xff]  ;;  %v794_v3 = vld [vmem:[%s279_s27 + $0x8] sm:$0xff]  ;;  %s692_s28 = sshll.u32 %s858_s19, 5  ;;  %s299_s9 = scalar_lea.vmem %s855_s4, %s783_s21 }
   0xf   : > { %357 = vperm.xlu0 %713, %v323_v1   ;;  %v308_v4 = vpack.c.bf16 %v794_v3, %v792_v2  ;;  %s284_s6 = scalar_lea.vmem %s852_s1, %s692_s28  ;;  %v321_v5 = vld [vmem:[%s289_s24 + $0x20] sm:$0xff]  ;;  %v319_v9 = vld [vmem:[%s289_s24 + $0x10] sm:$0xff]  ;;  %v324_v10 = vld [vmem:[%s289_s24 + $0x38] sm:$0xff]  ;;  %s694_s10 = sshll.u32 %s858_s19, 3 }
  0x10   : > { %v697_v6 = vld [vmem:[%s284_s6] sm:$0xff]  ;;  %v698_v7 = vld [vmem:[%s284_s6 + $0x8] sm:$0xff]  ;;  %347 = vperm.xlu1 %714, %v321_v5   ;;  %v700_v8 = vld [vmem:[%s284_s6 + $0x18] sm:$0xff]  ;;  %337 = vperm.xlu2 %715, %v319_v9   ;;  %s294_s13 = scalar_lea.vmem %s854_s3, %s694_s10  ;;  %s304_s16 = scalar_lea.vmem %s856_s5, %s783_s21 }
  0x11   : > { %405 = vmatpush.bf16.msra.mxu0 %v308_v4  ;;  %702 = vmatpush.bf16.msra.mxu2 %v308_v4  ;;  %v322_v11 = vld [vmem:[%s289_s24 + $0x28] sm:$0xff]  ;;  %v320_v12 = vld [vmem:[%s289_s24 + $0x18] sm:$0xff]  ;;  %v317_v13 = vld [vmem:[%s289_s24] sm:$0xff] }
  0x12   : > { %703 = vmatpush.bf16.msra.mxu3 %v308_v4  ;;  %v318_v14 = vld [vmem:[%s289_s24 + $0x8] sm:$0xff]  ;;  %v699_v15 = vld [vmem:[%s284_s6 + $0x10] sm:$0xff]  ;;  %v505_v16 = vld [vmem:[%s299_s9] sm:$0xff] }
  0x13   : > { %v506_v17 = vld [vmem:[%s299_s9 + $0x8] sm:$0xff] }
  0x14   : > { %680 = vmatmul.msk.bf16.vlgmr.msra.gmra.mxu0 %vm385_vm0, %v697_v6  ;;  %681 = vmatmul.msk.bf16.vlgmr.msra.gmra.mxu2 %vm385_vm0, %v698_v7 }
  0x15   : > { %683 = vmatmul.msk.bf16.vlgmr.msra.gmra.mxu3 %vm385_vm0, %v700_v8 }
  0x17   : > { %362 = vperm.xlu0 %713, %v324_v10  }
  0x18   : > { %352 = vperm.xlu1 %714, %v322_v11   ;;  %342 = vperm.xlu2 %715, %v320_v12  }
  0x1f   : > { %327 = vperm.xlu0 %713, %v317_v13  }
  0x20   : > { %332 = vperm.xlu1 %714, %v318_v14   ;;  %509 = vperm.xlu2 %715, %v505_v16  }
  0x24   : > { %682 = vmatmul.msk.bf16.gmra.mxu2 %vm385_vm0, %v699_v15 }
  0x27   : > { %514 = vperm.xlu0 %713, %v506_v17  }
  0x6a   : > { %v338_v20 = vpop.permute.xlu2 %337 }
  0x72   : > { %v343_v29 = vpop.permute.xlu2 %342 }
  0x81   : > { %v358_v19 = vpop.permute.xlu0 %357 }
  0x82   : > { %v348_v18 = vpop.permute.xlu1 %347 }
  0x89   : > { %v363_v26 = vpop.permute.xlu0 %362 }
  0x8a   : > { %v353_v21 = vpop.permute.xlu1 %352 }
  0x91   : > { %v407_v23 = vpop.f32.mrf.mxu0  ;;  %v328_v40 = vpop.permute.xlu0 %327 }
  0x92   : > { %v333_v35 = vpop.permute.xlu1 %332  ;;  %v817_v45 = vadd.f32 %v407_v23, %v328_v40 }
  0x94   : > { %v435_v54 = vmul.f32 0.044715, %v817_v45 }
  0x96   : > { %v443_v0 = vmul.f32 %v435_v54, %v817_v45 }
  0x97   : > { %v412_v22 = vpop.f32.mrf.mxu2 }
  0x98   : > { %v422_v24 = vpop.f32.mrf.mxu3  ;;  %v812_v38 = vadd.f32 %v412_v22, %v338_v20  ;;  %v451_v12 = vmul.f32 %v443_v0, %v817_v45 }
  0x99   : > { %v423_v25 = vadd.f32 %v422_v24, %v358_v19  ;;  %v409_v36 = vpop.f32.mrf.mxu0 }
  0x9a   : > { %v814_v41 = vadd.f32 %v409_v36, %v333_v35  ;;  %v437_v46 = vmul.f32 0.044715, %v812_v38 }
  0x9b   : > { %v441_v27 = vmul.f32 0.044715, %v423_v25  ;;  %v433_v10 = vmul.f32 0.5, %v423_v25 }
  0x9c   : > { %v436_v50 = vmul.f32 0.044715, %v814_v41  ;;  %v445_v56 = vmul.f32 %v437_v46, %v812_v38  ;;  %v428_v54 = vmul.f32 0.5, %v814_v41 }
  0x9d   : > { %v449_v28 = vmul.f32 %v441_v27, %v423_v25 }
  0x9e   : > { %v444_v58 = vmul.f32 %v436_v50, %v814_v41  ;;  %v453_v63 = vmul.f32 %v445_v56, %v812_v38  ;;  %v429_v50 = vmul.f32 0.5, %v812_v38 }
  0x9f   : > { %v414_v30 = vpop.f32.mrf.mxu2  ;;  %v457_v31 = vmul.f32 %v449_v28, %v423_v25 }
  0xa0   : > { %v424_v32 = vpop.f32.mrf.mxu3  ;;  %v810_v37 = vadd.f32 %v414_v30, %v343_v29  ;;  %v452_v5 = vmul.f32 %v444_v58, %v814_v41  ;;  %v461_v11 = vadd.f32 %v453_v63, %v812_v38  ;;  %v701_v58 = vld [vmem:[%s294_s13] sm:$0xff] }
  0xa1   : > { %v425_v33 = vadd.f32 %v424_v32, %v363_v26  ;;  %v465_v34 = vadd.f32 %v457_v31, %v423_v25  ;;  %v459_v25 = vadd.f32 %v451_v12, %v817_v45 }
  0xa2   : > { %v438_v44 = vmul.f32 0.044715, %v810_v37  ;;  %v460_v17 = vadd.f32 %v452_v5, %v814_v41  ;;  %v469_v22 = vmul.f32 0.7978846, %v461_v11 }
  0xa3   : > { %v442_v39 = vmul.f32 0.044715, %v425_v33  ;;  %v473_v43 = vmul.f32 0.7978846, %v465_v34  ;;  %v434_v13 = vmul.f32 0.5, %v425_v33 }
  0xa4   : > { %v446_v53 = vmul.f32 %v438_v44, %v810_v37  ;;  %v468_v27 = vmul.f32 0.7978846, %v460_v17  ;;  %v467_v28 = vmul.f32 0.7978846, %v459_v25  ;;  %v430_v44 = vmul.f32 0.5, %v810_v37 }
  0xa5   : > { %v450_v42 = vmul.f32 %v442_v39, %v425_v33  ;;  %716 = vtanh.f32 %v473_v43 }
  0xa6   : > { %v454_v60 = vmul.f32 %v446_v53, %v810_v37 }
  0xa7   : > { %v417_v47 = vpop.f32.mrf.mxu2  ;;  %v458_v48 = vmul.f32 %v450_v42, %v425_v33 }
  0xa8   : > { %v418_v49 = vadd.f32 %v417_v47, %v348_v18  ;;  %v462_v8 = vadd.f32 %v454_v60, %v810_v37 }
  0xa9   : > { %v466_v51 = vadd.f32 %v458_v48, %v425_v33 }
  0xaa   : > { %v439_v52 = vmul.f32 0.044715, %v418_v49  ;;  %v431_v34 = vmul.f32 0.5, %v418_v49 }
  0xab   : > { %v474_v55 = vmul.f32 0.7978846, %v466_v51  ;;  %v717_v61 = vpop.eup %716 }
  0xac   : > { %v447_v57 = vmul.f32 %v439_v52, %v418_v49  ;;  %v489_v7 = vadd.f32 1.0, %v717_v61  ;;  %v515_v61 = vpop.permute.xlu0 %514 }
  0xad   : > { %718 = vtanh.f32 %v474_v55 }
  0xae   : > { %v455_v59 = vmul.f32 %v447_v57, %v418_v49  ;;  %v497_v18 = vmul.f32 %v489_v7, %v433_v10 }
  0xaf   : > { %v419_v62 = vpop.f32.mrf.mxu2 }
  0xb0   : > { %v420_v1 = vadd.f32 %v419_v62, %v353_v21  ;;  %v463_v4 = vadd.f32 %v455_v59, %v418_v49  ;;  %v470_v21 = vmul.f32 0.7978846, %v462_v8  ;;  %v427_v49 = vmul.f32 0.5, %v817_v45  ;;  %v510_v59 = vpop.permute.xlu2 %509 }
  0xb2   : > { %v440_v6 = vmul.f32 0.044715, %v420_v1  ;;  %v471_v16 = vmul.f32 0.7978846, %v463_v4  ;;  %v432_v35 = vmul.f32 0.5, %v420_v1 }
  0xb3   : > { %v719_v9 = vpop.eup %718 }
  0xb4   : > { %v490_v14 = vadd.f32 1.0, %v719_v9  ;;  %v448_v15 = vmul.f32 %v440_v6, %v420_v1  ;;  %720 = vtanh.f32 %v471_v16 }
  0xb5   : > { %722 = vtanh.f32 %v470_v21 }
  0xb6   : > { %v498_v19 = vmul.f32 %v490_v14, %v434_v13  ;;  %v456_v20 = vmul.f32 %v448_v15, %v420_v1  ;;  %724 = vtanh.f32 %v469_v22 }
  0xb8   : > { %v504_v23 = vpack.c.bf16 %v498_v19, %v497_v18  ;;  %v464_v24 = vadd.f32 %v456_v20, %v420_v1 }
  0xba   : > { %530 = vmatpush.bf16.msra.mxu1 %v504_v23  ;;  %v472_v26 = vmul.f32 0.7978846, %v464_v24  ;;  %v721_v29 = vpop.eup %720 }
  0xbb   : > { %v723_v30 = vpop.eup %722  ;;  %v487_v32 = vadd.f32 1.0, %v721_v29 }
  0xbc   : > { %726 = vtanh.f32 %v472_v26  ;;  %v725_v31 = vpop.eup %724  ;;  %v486_v39 = vadd.f32 1.0, %v723_v30 }
  0xbd   : > { %728 = vtanh.f32 %v468_v27  ;;  %v495_v42 = vmul.f32 %v487_v32, %v431_v34  ;;  %v485_v46 = vadd.f32 1.0, %v725_v31 }
  0xbe   : > { %730 = vtanh.f32 %v467_v28  ;;  %v494_v51 = vmul.f32 %v486_v39, %v430_v44 }
  0xbf   : > { %v493_v53 = vmul.f32 %v485_v46, %v429_v50 }
  0xc1   : > { %v502_v56 = vpack.c.bf16 %v494_v51, %v493_v53 }
  0xc2   : > { %v727_v33 = vpop.eup %726 }
  0xc3   : > { %v488_v36 = vadd.f32 1.0, %v727_v33  ;;  %v729_v40 = vpop.eup %728 }
  0xc4   : > { %v731_v47 = vpop.eup %730  ;;  %v484_v52 = vadd.f32 1.0, %v729_v40 }
  0xc5   : > { %v496_v43 = vmul.f32 %v488_v36, %v432_v35  ;;  %v483_v55 = vadd.f32 1.0, %v731_v47 }
  0xc6   : > { %v492_v57 = vmul.f32 %v484_v52, %v428_v54 }
  0xc7   : > { %v503_v48 = vpack.c.bf16 %v496_v43, %v495_v42  ;;  %v491_v37 = vmul.f32 %v483_v55, %v427_v49 }
  0xc9   : > { %531 = vmatpush.bf16.msra.mxu1 %v503_v48  ;;  %v501_v38 = vpack.c.bf16 %v492_v57, %v491_v37 }
  0xcd   : > { %532 = vmatpush.bf16.msra.mxu1 %v502_v56 }
  0xd1   : > { %533 = vmatpush.bf16.msra.mxu1 %v501_v38 }
  0xd4   : > { %688 = vmatmul.msk.bf16.vlgmr.msra.gmra.mxu1 %vm522_vm1, %v701_v58 }
 0x151   : > { %v535_v45 = vpop.f32.mrf.mxu1 }
 0x152   : > { %v536_v60 = vadd.f32 %v535_v45, %v510_v59 }
 0x154   : > { %v540_v41 = vadd.f32 %v536_v60, %v792_v2 }
 0x156   : > { %542 = vst [vmem:[%s304_s16] sm:$0xff] %v540_v41 }
 0x159   : > { %v537_v62 = vpop.f32.mrf.mxu1 }
 0x15a   : > { %v538_v63 = vadd.f32 %v537_v62, %v515_v61 }
 0x15c   : > { %v541_v0 = vadd.f32 %v538_v63, %v794_v3 }
 0x15e   : > { %543 = vst [vmem:[%s304_s16 + $0x8] sm:$0xff] %v541_v0 }
 0x15f PF: > { %s15_s18 = sadd.s32 1, %s738_s18  }
 0x160   : > { %p12_p4 = scmp.ge.s32.totalorder %s15_s18, 4  }
 0x162   :  { %14 = sbr.rel (!%p12_p4) target bundleno = 1 (0x1), region = 82 }

// kernel: _lambda_.4
= control target key start
LH: loop header
LB: loop body
LE: loop exit
PB: predicated region body
PF: predicated region fallthrough
CT: control target
= control target key end

     0   :  { %s2169_s21 = smov 0   ;;  %s2822_s0 = inlined_call_operand.vmem [shape: f32[2,4,16,16], index: 0, kind: input, shape index: {}]   ;;  %s2823_s1 = inlined_call_operand.vmem [shape: f32[4,4,16,16], index: 1, kind: input, shape index: {}]   ;;  %s2824_s2 = inlined_call_operand.vmem [shape: bf16[16,48], index: 2, kind: input, shape index: {}]   ;;  %s2825_s3 = inlined_call_operand.vmem [shape: f32[1,48], index: 3, kind: input, shape index: {}]   ;;  %s2826_s4 = inlined_call_operand.vmem [shape: bf16[16,16], index: 4, kind: input, shape index: {}]   ;;  %s2827_s5 = inlined_call_operand.vmem [shape: f32[1,16], index: 5, kind: input, shape index: {}]   ;;  %s2828_s6 = inlined_call_operand.vmem [shape: f32[2,4,16,16], index: 6, kind: output, shape index: {}]  }
   0x1 LB: > { %s1826_s22 = sadd.s32 4294967295, %s2118_s21   ;;  %p1830_p0 = scmp.ge.s32.totalorder %s2118_s21, 1  ;;  %s2118_s21 = sphi %s2169_s21, %s16_s21  }
   0x2   : > { %p212_p1 = scmp.lt.s32.totalorder %s2118_s21, 3 }
   0x4   : > { %p213_p2 = pnand %p1830_p0, %p212_p1 }
   0x5   : > { %p242_p3 = scmp.lt.s32.totalorder (!%p213_p2), %s1826_s22, 1  ;;  %s2120_s7 = smov (!%p213_p2), 112  }
   0x6   : > { %216 = sbr.rel (%p213_p2) target bundleno = 2541 (0x9ed), region = 44  ;;  %s2121_s8 = smov (!%p213_p2), 96  }
   0x7   : > { %s2122_s29 = smov (!%p213_p2), 108   ;;  %s2123_s30 = smov (!%p213_p2), 124  }
   0x8   : > { %s2125_s24 = smov (!%p213_p2), 104   ;;  %s2128_s26 = smov (!%p213_p2), 116  }
   0x9   : > { %s2129_s27 = smov (!%p213_p2), 100   ;;  %s2130_s23 = smov (!%p213_p2), 84  }
   0xb   : > { %v1887_v0 = vld [vmem:[%s2824_s2] sm:$0xff]  ;;  %s2830_s22 = smov (!%p242_p3, %s1826_s22), 1  ;;  %vm277_vm0 = vcmask 130048   ;;  %vm387_vm1 = vcmask 31744   ;;  %vm1680_vm2 = vcmask 64512   ;;  %vm1689_vm3 = vcmask 97280  }
   0xc   : > { %1889 = vmatpush.bf16.msra.mxu1 %v1887_v0  ;;  %1891 = vmatpush.bf16.msra.mxu3 %v1887_v0  ;;  %s1885_s25 = sshll.u32 %s2830_s22, 6  ;;  %v1974_v13 = vld [vmem:[%s2825_s3] ss:$0 sm:$0xff] }
   0xd   : > { %297 = vmatpush.bf16.msra.mxu0 %v1887_v0  ;;  %1890 = vmatpush.bf16.msra.mxu2 %v1887_v0  ;;  %s2188_s28 = scalar_lea.vmem %s2822_s0, %s1885_s25  ;;  %s2768_s11 = scalar_lea.vmem %s2828_s6, %s1885_s25 }
   0xe   : > { %v255_v1 = vld [vmem:[%s2188_s28 + $0x10] sm:$0xff]  ;;  %v256_v2 = vld [vmem:[%s2188_s28 + $0x18] sm:$0xff]  ;;  %v253_v6 = vld [vmem:[%s2188_s28] sm:$0xff] }
   0xf   : > { %v259_v3 = vld [vmem:[%s2188_s28 + $0x30] sm:$0xff]  ;;  %v265_v4 = vpack.c.bf16 %v256_v2, %v255_v1  ;;  %v260_v5 = vld [vmem:[%s2188_s28 + $0x38] sm:$0xff]  ;;  %v254_v7 = vld [vmem:[%s2188_s28 + $0x8] sm:$0xff] }
  0x10   : > { %v267_v8 = vpack.c.bf16 %v260_v5, %v259_v3  ;;  %v264_v9 = vpack.c.bf16 %v254_v7, %v253_v6  ;;  %v257_v10 = vld [vmem:[%s2188_s28 + $0x20] sm:$0xff]  ;;  %v258_v11 = vld [vmem:[%s2188_s28 + $0x28] sm:$0xff] }
  0x11   : > { %1840 = vmatmul.msk.bf16.vlgmr.msra.gmra.mxu1 %vm277_vm0, %v265_v4  ;;  %v266_v12 = vpack.c.bf16 %v258_v11, %v257_v10 }
  0x12   : > { %1842 = vmatmul.msk.bf16.vlgmr.msra.gmra.mxu3 %vm277_vm0, %v267_v8  ;;  %1839 = vmatmul.msk.bf16.vlgmr.msra.gmra.mxu0 %vm277_vm0, %v264_v9 }
  0x13   : > { %1841 = vmatmul.msk.bf16.vlgmr.msra.gmra.mxu2 %vm277_vm0, %v266_v12 }
  0x8e   : > { %v304_v14 = vpop.f32.mrf.mxu1 }
  0x8f   : > { %v299_v15 = vpop.f32.mrf.mxu0  ;;  %v305_v16 = vadd.f32 %v1974_v13, %v304_v14 }
  0x90   : > { %v300_v17 = vadd.f32 %v1974_v13, %v299_v15 }
  0x91   : > { %v321_v19 = vmul.f32 0.5, %v305_v16  ;;  %v369_v24 = vpack.c.bf16 %v305_v16, %v305_v16 }
  0x92   : > { %v319_v18 = vmul.f32 0.5, %v300_v17  ;;  %v367_v21 = vpack.c.bf16 %v300_v17, %v300_v17 }
  0x93   : > { %v361_v30 = vpack.c.bf16 %v321_v19, %v321_v19  ;;  %v415_v38 = vunpack.c.l.b16 %v369_v24 }
  0x94   : > { %v359_v28 = vpack.c.bf16 %v319_v18, %v319_v18  ;;  %v382_v35 = vunpack.c.l.b16 %v367_v21 }
  0x95   : > { %v314_v20 = vpop.f32.mrf.mxu3  ;;  %v410_v46 = vunpack.c.l.b16 %v361_v30 }
  0x96   : > { %v306_v22 = vpop.f32.mrf.mxu1  ;;  %v309_v23 = vpop.f32.mrf.mxu2  ;;  %v315_v27 = vadd.f32 %v1974_v13, %v314_v20  ;;  %v377_v43 = vunpack.c.l.b16 %v359_v28 }
  0x97   : > { %v307_v25 = vadd.f32 %v1974_v13, %v306_v22  ;;  %v301_v26 = vpop.f32.mrf.mxu0  ;;  %v310_v33 = vadd.f32 %v1974_v13, %v309_v23  ;;  %v335_v23 = vld [vmem:[%s2823_s1 + $0x40] sm:$0xff] }
  0x98   : > { %v302_v29 = vadd.f32 %v1974_v13, %v301_v26  ;;  %v325_v34 = vmul.f32 0.5, %v315_v27  ;;  %v373_v42 = vpack.c.bf16 %v315_v27, %v315_v27 }
  0x99   : > { %v322_v31 = vmul.f32 0.5, %v307_v25  ;;  %v370_v32 = vpack.c.bf16 %v307_v25, %v307_v25  ;;  %v323_v41 = vmul.f32 0.5, %v310_v33  ;;  %v371_v62 = vpack.c.bf16 %v310_v33, %v310_v33  ;;  %v327_v25 = vld [vmem:[%s2823_s1] sm:$0xff]  ;;  %v328_v33 = vld [vmem:[%s2823_s1 + $0x8] sm:$0xff] }
  0x9a   : > { %v320_v36 = vmul.f32 0.5, %v302_v29  ;;  %v368_v37 = vpack.c.bf16 %v302_v29, %v302_v29  ;;  %v365_v50 = vpack.c.bf16 %v325_v34, %v325_v34  ;;  %v479_v58 = vunpack.c.l.b16 %v373_v42 }
  0x9b   : > { %v362_v39 = vpack.c.bf16 %v322_v31, %v322_v31  ;;  %v416_v40 = vunpack.c.l.b16 %v370_v32  ;;  %v363_v56 = vpack.c.bf16 %v323_v41, %v323_v41  ;;  %v447_v9 = vunpack.c.l.b16 %v371_v62  ;;  %v336_v31 = vld [vmem:[%s2823_s1 + $0x48] sm:$0xff] }
  0x9c   : > { %v360_v44 = vpack.c.bf16 %v320_v36, %v320_v36  ;;  %v383_v45 = vunpack.c.l.b16 %v368_v37  ;;  %v474_v0 = vunpack.c.l.b16 %v365_v50 }
  0x9d   : > { %v411_v47 = vunpack.c.l.b16 %v362_v39  ;;  %v2205_v48 = vpack.c.b16 %v416_v40, %v415_v38  ;;  %v316_v49 = vpop.f32.mrf.mxu3  ;;  %v442_v4 = vunpack.c.l.b16 %v363_v56  ;;  %v343_v39 = vld [vmem:[%s2823_s1 + $0x80] sm:$0xff] }
  0x9e   : > { %v317_v51 = vadd.f32 %v1974_v13, %v316_v49  ;;  %v378_v52 = vunpack.c.l.b16 %v360_v44  ;;  %v2207_v53 = vpack.c.b16 %v383_v45, %v382_v35  ;;  %v311_v54 = vpop.f32.mrf.mxu2 }
  0x9f   : > { %v2209_v55 = vpack.c.b16 %v411_v47, %v410_v46  ;;  %418 = vrot.lane.b32.xlu0 %v2205_v48, %s2120_s7  ;;  %v312_v57 = vadd.f32 %v1974_v13, %v311_v54  ;;  %v344_v47 = vld [vmem:[%s2823_s1 + $0x88] sm:$0xff] }
  0xa0   : > { %v326_v59 = vmul.f32 0.5, %v317_v51  ;;  %v374_v60 = vpack.c.bf16 %v317_v51, %v317_v51  ;;  %v2212_v61 = vpack.c.b16 %v378_v52, %v377_v43  ;;  %605 = vrot.lane.b32.xlu2 %v2207_v53, %s2121_s8  ;;  %v351_v43 = vld [vmem:[%s2823_s1 + $0xc0] sm:$0xff]  ;;  %v352_v52 = vld [vmem:[%s2823_s1 + $0xc8] sm:$0xff] }
  0xa1   : > { %v324_v63 = vmul.f32 0.5, %v312_v57  ;;  %v372_v3 = vpack.c.bf16 %v312_v57, %v312_v57 }
  0xa2   : > { %v366_v1 = vpack.c.bf16 %v326_v59, %v326_v59  ;;  %v480_v2 = vunpack.c.l.b16 %v374_v60 }
  0xa3   : > { %v364_v5 = vpack.c.bf16 %v324_v63, %v324_v63  ;;  %v448_v11 = vunpack.c.l.b16 %v372_v3 }
  0xa4   : > { %v475_v6 = vunpack.c.l.b16 %v366_v1  ;;  %v2216_v7 = vpack.c.b16 %v480_v2, %v479_v58 }
  0xa5   : > { %v443_v8 = vunpack.c.l.b16 %v364_v5  ;;  %v2224_v13 = vpack.c.b16 %v448_v11, %v447_v9 }
  0xa6   : > { %v2218_v10 = vpack.c.b16 %v475_v6, %v474_v0  ;;  %482 = vrot.lane.b32.xlu1 %v2216_v7, %s2120_s7 }
  0xa7   : > { %v2221_v12 = vpack.c.b16 %v443_v8, %v442_v4  ;;  %385 = vrot.lane.b32.xlu0 %v2207_v53, %s2120_s7 }
  0xae   : > { %450 = vrot.lane.b32.xlu1 %v2224_v13, %s2120_s7  ;;  %s2124_s7 = smov 92  }
  0xfa   : > { %v606_v15 = vpop.permute.xlu2 %605 }
 0x111   : > { %v419_v14 = vpop.permute.xlu0 %418 }
 0x112   : > { %v424_v16 = vsel %vm387_vm1, %v419_v14, 0 }
 0x113   : > { %433 = vmatpush.bf16.xpose.msrb.mxu2 %v424_v16 }
 0x118   : > { %v483_v17 = vpop.permute.xlu1 %482 }
 0x119   : > { %v488_v18 = vsel %vm387_vm1, %v483_v17, 0  ;;  %v386_v19 = vpop.permute.xlu0 %385 }
 0x11a   : > { %1844 = vmatmul.msk.bf16.vlgmr.msrb.gmra.mxu2 %vm387_vm1, %v2209_v55  ;;  %v392_v20 = vsel %vm387_vm1, %v386_v19, 0 }
 0x11b   : > { %618 = vmatpush.bf16.msra.mxu2 %v606_v15  ;;  %401 = vmatpush.bf16.xpose.msrb.mxu1 %v392_v20 }
 0x120   : > { %v451_v21 = vpop.permute.xlu1 %450 }
 0x121   : > { %v456_v22 = vsel %vm387_vm1, %v451_v21, 0 }
 0x122   : > { %465 = vmatpush.bf16.xpose.msrb.mxu3 %v456_v22  ;;  %1843 = vmatmul.msk.bf16.vlgmr.msrb.gmra.mxu1 %vm387_vm1, %v2212_v61 }
 0x123   : > { %497 = vmatpush.bf16.xpose.msra.mxu1 %v488_v18 }
 0x129   : > { %1845 = vmatmul.msk.bf16.vlgmr.msrb.gmra.mxu3 %vm387_vm1, %v2221_v12 }
 0x132   : > { %1846 = vmatmul.msk.bf16.vlgmr.msra.gmra.mxu1 %vm387_vm1, %v2218_v10 }
 0x19d   : > { %v435_v24 = vpop.f32.mrf.mxu2 }
 0x19e   : > { %v436_v26 = vadd.f32 %v435_v24, %v335_v23 }
 0x19f   : > { %v403_v27 = vpop.f32.mrf.mxu1 }
 0x1a0   : > { %v404_v28 = vadd.f32 %v403_v27, %v327_v25  ;;  %v510_v29 = vsel %vm277_vm0, %v436_v26, -inf }
 0x1a1   : > { %511 = vmax.xlane.f32.xlu0 %v510_v29 }
 0x1a2   : > { %v504_v30 = vsel %vm277_vm0, %v404_v28, -inf }
 0x1a3   : > { %505 = vmax.xlane.f32.xlu2 %v504_v30 }
 0x1a5   : > { %v437_v32 = vpop.f32.mrf.mxu2 }
 0x1a6   : > { %v438_v34 = vadd.f32 %v437_v32, %v336_v31 }
 0x1a7   : > { %v405_v35 = vpop.f32.mrf.mxu1 }
 0x1a8   : > { %v2253_v36 = vadd.f32 %v405_v35, %v328_v33  ;;  %v513_v37 = vsel %vm277_vm0, %v438_v34, -inf }
 0x1a9   : > { %514 = vmax.xlane.f32.xlu1 %v513_v37 }
 0x1aa   : > { %v507_v38 = vsel %vm277_vm0, %v2253_v36, -inf }
 0x1ab   : > { %508 = vmax.xlane.f32.xlu2 %v507_v38 }
 0x1ac   : > { %v467_v40 = vpop.f32.mrf.mxu3 }
 0x1ad   : > { %v468_v41 = vadd.f32 %v467_v40, %v343_v39 }
 0x1af   : > { %v516_v42 = vsel %vm277_vm0, %v468_v41, -inf  ;;  %v499_v44 = vpop.f32.mrf.mxu1 }
 0x1b0   : > { %v500_v45 = vadd.f32 %v499_v44, %v351_v43 }
 0x1b2   : > { %v522_v46 = vsel %vm277_vm0, %v500_v45, -inf }
 0x1b3   : > { %517 = vmax.xlane.f32.xlu2 %v516_v42 }
 0x1b4   : > { %v469_v49 = vpop.f32.mrf.mxu3 }
 0x1b5   : > { %v2269_v50 = vadd.f32 %v469_v49, %v344_v47 }
 0x1b7   : > { %v519_v51 = vsel %vm277_vm0, %v2269_v50, -inf  ;;  %v501_v54 = vpop.f32.mrf.mxu1 }
 0x1b8   : > { %v502_v56 = vadd.f32 %v501_v54, %v352_v52 }
 0x1ba   : > { %v525_v57 = vsel %vm277_vm0, %v502_v56, -inf }
 0x1bb   : > { %523 = vmax.xlane.f32.xlu2 %v522_v46 }
 0x1c2   : > { %680 = vrot.lane.b32.xlu1 %v2216_v7, %s2121_s8 }
 0x1c3   : > { %520 = vmax.xlane.f32.xlu2 %v519_v51 }
 0x1ca   : > { %726 = vrot.lane.b32.xlu1 %v2205_v48, %s2122_s29 }
 0x1cb   : > { %526 = vmax.xlane.f32.xlu2 %v525_v57 }
 0x214   : > { %v512_v58 = vpop.xlane.xlu0 %511 }
 0x215   : > { %v530_v59 = vsub.f32 %v436_v26, %v512_v58 }
 0x216   : > { %v506_v60 = vpop.xlane.xlu2 %505 }
 0x217   : > { %v540_v62 = vmul.f32 1.442695, %v530_v59  ;;  %v528_v63 = vsub.f32 %v404_v28, %v506_v60 }
 0x219   : > { %1976 = vpow2.f32 %v540_v62  ;;  %v536_v0 = vmul.f32 1.442695, %v528_v63 }
 0x21b   : > { %1978 = vpow2.f32 %v536_v0 }
 0x21c   : > { %v515_v6 = vpop.xlane.xlu1 %514 }
 0x21d   : > { %v531_v11 = vsub.f32 %v438_v34, %v515_v6 }
 0x21e   : > { %v509_v1 = vpop.xlane.xlu2 %508 }
 0x21f   : > { %v2281_v2 = vpop.eup %1976  ;;  %v542_v15 = vmul.f32 1.442695, %v531_v11  ;;  %v529_v37 = vsub.f32 %v2253_v36, %v509_v1 }
 0x220   : > { %v558_v3 = vsel %vm277_vm0, %v2281_v2, 0.0 }
 0x221   : > { %v2285_v4 = vpop.eup %1978  ;;  %559 = vadd.xlane.f32.xlu0 %v558_v3  ;;  %v538_v38 = vmul.f32 1.442695, %v529_v37 }
 0x222   : > { %v552_v5 = vsel %vm277_vm0, %v2285_v4, 0.0 }
 0x223   : > { %553 = vadd.xlane.f32.xlu2 %v552_v5 }
 0x226   : > { %v518_v8 = vpop.xlane.xlu2 %517 }
 0x227   : > { %v532_v9 = vsub.f32 %v468_v41, %v518_v8 }
 0x229   : > { %v544_v14 = vmul.f32 1.442695, %v532_v9 }
 0x22b   : > { %1980 = vpow2.f32 %v544_v14 }
 0x22c   : > { %1982 = vpow2.f32 %v542_v15 }
 0x22e   : > { %v524_v16 = vpop.xlane.xlu2 %523 }
 0x22f   : > { %v534_v18 = vsub.f32 %v500_v45, %v524_v16 }
 0x231   : > { %v2289_v17 = vpop.eup %1980  ;;  %v548_v21 = vmul.f32 1.442695, %v534_v18 }
 0x232   : > { %v564_v19 = vsel %vm277_vm0, %v2289_v17, 0.0  ;;  %v1983_v23 = vpop.eup %1982 }
 0x233   : > { %565 = vadd.xlane.f32.xlu1 %v564_v19  ;;  %1984 = vpow2.f32 %v548_v21  ;;  %v561_v24 = vsel %vm277_vm0, %v1983_v23, 0.0 }
 0x234   : > { %v681_v20 = vpop.permute.xlu1 %680 }
 0x235   : > { %693 = vmatpush.bf16.msrb.mxu2 %v681_v20  ;;  %630 = vrot.lane.b32.xlu0 %v2205_v48, %s2121_s8 }
 0x236   : > { %v521_v22 = vpop.xlane.xlu2 %520 }
 0x237   : > { %v533_v32 = vsub.f32 %v2269_v50, %v521_v22 }
 0x239   : > { %v2298_v26 = vpop.eup %1984  ;;  %v546_v33 = vmul.f32 1.442695, %v533_v32 }
 0x23a   : > { %v570_v29 = vsel %vm277_vm0, %v2298_v26, 0.0 }
 0x23b   : > { %702 = vrot.lane.b32.xlu2 %v2207_v53, %s2122_s29  ;;  %562 = vadd.xlane.f32.xlu1 %v561_v24 }
 0x23c   : > { %v727_v41 = vpop.permute.xlu1 %726 }
 0x23d   : > { %v732_v52 = vsel %vm387_vm1, %v727_v41, 0 }
 0x23e   : > { %v527_v25 = vpop.xlane.xlu2 %526 }
 0x23f   : > { %v535_v27 = vsub.f32 %v502_v56, %v527_v25 }
 0x241   : > { %v550_v28 = vmul.f32 1.442695, %v535_v27 }
 0x243   : > { %1986 = vpow2.f32 %v550_v28  ;;  %700 = vrot.lane.b32.xlu2 %v2212_v61, %s2123_s30  ;;  %571 = vadd.xlane.f32.xlu1 %v570_v29 }
 0x244   : > { %1988 = vpow2.f32 %v546_v33 }
 0x245   : > { %1990 = vpow2.f32 %v538_v38 }
 0x249   : > { %v2303_v30 = vpop.eup %1986 }
 0x24a   : > { %v573_v31 = vsel %vm277_vm0, %v2303_v30, 0.0  ;;  %v1989_v34 = vpop.eup %1988 }
 0x24b   : > { %655 = vrot.lane.b32.xlu2 %v2224_v13, %s2121_s8  ;;  %574 = vadd.xlane.f32.xlu1 %v573_v31  ;;  %v567_v35 = vsel %vm277_vm0, %v1989_v34, 0.0  ;;  %v2315_v39 = vpop.eup %1990 }
 0x24c   : > { %v555_v40 = vsel %vm277_vm0, %v2315_v39, 0.0 }
 0x25f   : > { %568 = vadd.xlane.f32.xlu0 %v567_v35 }
 0x264   : > { %724 = vrot.lane.b32.xlu1 %v2209_v55, %s2123_s30 }
 0x26c   : > { %897 = vrot.lane.b32.xlu1 %v2207_v53, %s2124_s7 }
 0x273   : > { %774 = vrot.lane.b32.xlu0 %v2216_v7, %s2122_s29 }
 0x274   : > { %556 = vadd.xlane.f32.xlu2 %v555_v40 }
 0x28c   : > { %750 = vrot.lane.b32.xlu2 %v2224_v13, %s2122_s29  ;;  %s2126_s29 = smov 120  }
 0x294   : > { %748 = vrot.lane.b32.xlu2 %v2221_v12, %s2123_s30  ;;  %v560_v43 = vpop.xlane.xlu0 %559 }
 0x295   : > { %1992 = vrcp.f32 %v560_v43 }
 0x296   : > { %v554_v36 = vpop.xlane.xlu2 %553 }
 0x29b   : > { %v1993_v51 = vpop.eup %1992 }
 0x29c   : > { %772 = vrot.lane.b32.xlu2 %v2218_v10, %s2123_s30  ;;  %v586_v54 = vmul.f32 %v1993_v51, %v2281_v2  ;;  %s2127_s30 = smov 88  }
 0x29e   : > { %v703_v42 = vpop.permute.xlu2 %702  ;;  %v594_v57 = vpack.c.bf16 %v586_v54, %v586_v54 }
 0x29f   : > { %v708_v47 = vsel %vm387_vm1, %v703_v42, 0 }
 0x2a0   : > { %v627_v60 = vunpack.c.l.b16 %v594_v57 }
 0x2a6   : > { %v566_v44 = vpop.xlane.xlu1 %565  ;;  %v701_v45 = vpop.permute.xlu2 %700 }
 0x2a7   : > { %v631_v46 = vpop.permute.xlu0 %630 }
 0x2a8   : > { %643 = vmatpush.bf16.msra.mxu3 %v631_v46 }
 0x2ac   : > { %717 = vmatpush.bf16.xpose.msrb.mxu3 %v708_v47 }
 0x2ae   : > { %v563_v49 = vpop.xlane.xlu1 %562  ;;  %v656_v50 = vpop.permute.xlu2 %655 }
 0x2af   : > { %1994 = vrcp.f32 %v563_v49  ;;  %668 = vmatpush.bf16.msrb.mxu1 %v656_v50 }
 0x2b0   : > { %1996 = vrcp.f32 %v566_v44 }
 0x2b3   : > { %741 = vmatpush.bf16.xpose.msra.mxu1 %v732_v52  ;;  %v337_v52 = vld [vmem:[%s2823_s1 + $0x50] sm:$0xff] }
 0x2b5   : > { %v1995_v56 = vpop.eup %1994 }
 0x2b6   : > { %v587_v58 = vmul.f32 %v1995_v56, %v1983_v23  ;;  %v572_v0 = vpop.xlane.xlu1 %571  ;;  %v1997_v5 = vpop.eup %1996 }
 0x2b7   : > { %v588_v6 = vmul.f32 %v1997_v5, %v2289_v17 }
 0x2b8   : > { %v595_v59 = vpack.c.bf16 %v587_v58, %v587_v58  ;;  %v330_v58 = vld [vmem:[%s2823_s1 + $0x18] sm:$0xff] }
 0x2b9   : > { %v596_v9 = vpack.c.bf16 %v588_v6, %v588_v6 }
 0x2ba   : > { %v628_v62 = vunpack.c.l.b16 %v595_v59 }
 0x2bb   : > { %v652_v15 = vunpack.c.l.b16 %v596_v9  ;;  %v345_v9 = vld [vmem:[%s2823_s1 + $0x90] sm:$0xff] }
 0x2bc   : > { %v629_v63 = vpack.c.b16 %v628_v62, %v627_v60  ;;  %v338_v60 = vld [vmem:[%s2823_s1 + $0x58] sm:$0xff] }
 0x2be   : > { %1848 = vmatmul.msk.bf16.vlgmr.msra.gmra.mxu3 %vm277_vm0, %v629_v63  ;;  %v575_v1 = vpop.xlane.xlu1 %574 }
 0x2ce   : > { %1851 = vmatmul.msk.bf16.vlgmr.msrb.gmra.mxu3 %vm387_vm1, %v701_v45 }
 0x2d2   : > { %v569_v3 = vpop.xlane.xlu0 %568 }
 0x2d3   : > { %1998 = vrcp.f32 %v569_v3 }
 0x2d4   : > { %2000 = vrcp.f32 %v554_v36 }
 0x2d6   : > { %v725_v2 = vpop.permute.xlu1 %724 }
 0x2d9   : > { %v1999_v8 = vpop.eup %1998 }
 0x2da   : > { %v589_v11 = vmul.f32 %v1999_v8, %v1989_v34  ;;  %v2001_v23 = vpop.eup %2000 }
 0x2db   : > { %v584_v17 = vmul.f32 %v2001_v23, %v2285_v4 }
 0x2dc   : > { %v597_v14 = vpack.c.bf16 %v589_v11, %v589_v11 }
 0x2dd   : > { %v592_v25 = vpack.c.bf16 %v584_v17, %v584_v17 }
 0x2de   : > { %v653_v16 = vunpack.c.l.b16 %v597_v14  ;;  %v898_v18 = vpop.permute.xlu1 %897 }
 0x2df   : > { %910 = vmatpush.bf16.msrb.mxu0 %v898_v18  ;;  %v602_v31 = vunpack.c.l.b16 %v592_v25  ;;  %v346_v18 = vld [vmem:[%s2823_s1 + $0x98] sm:$0xff]  ;;  %v353_v25 = vld [vmem:[%s2823_s1 + $0xd0] sm:$0xff] }
 0x2e0   : > { %v654_v19 = vpack.c.b16 %v653_v16, %v652_v15 }
 0x2e2   : > { %1849 = vmatmul.msk.bf16.vlgmr.msrb.gmra.mxu1 %vm277_vm0, %v654_v19 }
 0x2e5   : > { %v775_v20 = vpop.permute.xlu0 %774 }
 0x2e6   : > { %v780_v21 = vsel %vm387_vm1, %v775_v20, 0 }
 0x2e7   : > { %789 = vmatpush.bf16.xpose.msra.mxu3 %v780_v21  ;;  %v557_v22 = vpop.xlane.xlu2 %556 }
 0x2e8   : > { %2002 = vrcp.f32 %v557_v22  ;;  %v354_v22 = vld [vmem:[%s2823_s1 + $0xd8] sm:$0xff] }
 0x2e9   : > { %2004 = vrcp.f32 %v575_v1 }
 0x2ea   : > { %2006 = vrcp.f32 %v572_v0 }
 0x2ee   : > { %v2003_v24 = vpop.eup %2002 }
 0x2ef   : > { %v585_v27 = vmul.f32 %v2003_v24, %v2315_v39  ;;  %v751_v28 = vpop.permute.xlu2 %750  ;;  %v2005_v34 = vpop.eup %2004 }
 0x2f0   : > { %v756_v35 = vsel %vm387_vm1, %v751_v28, 0  ;;  %v2007_v4 = vpop.eup %2006  ;;  %v591_v38 = vmul.f32 %v2005_v34, %v2303_v30 }
 0x2f1   : > { %v593_v29 = vpack.c.bf16 %v585_v27, %v585_v27  ;;  %v590_v39 = vmul.f32 %v2007_v4, %v2298_v26  ;;  %v329_v26 = vld [vmem:[%s2823_s1 + $0x10] sm:$0xff] }
 0x2f2   : > { %1852 = vmatmul.msk.bf16.vlgmr.msra.gmra.mxu1 %vm387_vm1, %v725_v2  ;;  %v599_v40 = vpack.c.bf16 %v591_v38, %v591_v38 }
 0x2f3   : > { %v603_v32 = vunpack.c.l.b16 %v593_v29  ;;  %v598_v36 = vpack.c.bf16 %v590_v39, %v590_v39 }
 0x2f4   : > { %v678_v42 = vunpack.c.l.b16 %v599_v40 }
 0x2f5   : > { %v604_v33 = vpack.c.b16 %v603_v32, %v602_v31  ;;  %v677_v43 = vunpack.c.l.b16 %v598_v36 }
 0x2f7   : > { %1847 = vmatmul.msk.bf16.vlgmr.msra.gmra.mxu2 %vm277_vm0, %v604_v33  ;;  %v749_v37 = vpop.permute.xlu2 %748  ;;  %v679_v44 = vpack.c.b16 %v678_v42, %v677_v43 }
 0x2f8   : > { %765 = vmatpush.bf16.xpose.msra.mxu2 %v756_v35 }
 0x2ff   : > { %v773_v41 = vpop.permute.xlu2 %772 }
 0x300   : > { %1854 = vmatmul.msk.bf16.vlgmr.msra.gmra.mxu3 %vm387_vm1, %v773_v41 }
 0x307   : > { %1850 = vmatmul.msk.bf16.vlgmr.msrb.gmra.mxu2 %vm277_vm0, %v679_v44 }
 0x317   : > { %1853 = vmatmul.msk.bf16.vlgmr.msra.gmra.mxu2 %vm387_vm1, %v749_v37 }
 0x341   : > { %v2343_v45 = vpop.f32.mrf.mxu3 }
 0x349   : > { %v2345_v46 = vpop.f32.mrf.mxu3 }
 0x351   : > { %v719_v30 = vpop.f32.mrf.mxu3 }
 0x352   : > { %v720_v47 = vadd.f32 %v719_v30, %v329_v26 }
 0x354   : > { %v796_v49 = vsel %vm277_vm0, %v720_v47, -inf }
 0x355   : > { %797 = vmax.xlane.f32.xlu1 %v796_v49 }
 0x359   : > { %v721_v59 = vpop.f32.mrf.mxu3 }
 0x35a   : > { %v722_v62 = vadd.f32 %v721_v59, %v330_v58 }
 0x35c   : > { %v799_v5 = vsel %vm277_vm0, %v722_v62, -inf }
 0x35f   : > { %v2351_v50 = vpop.f32.mrf.mxu1 }
 0x367   : > { %v2353_v51 = vpop.f32.mrf.mxu1 }
 0x36f   : > { %v743_v54 = vpop.f32.mrf.mxu1 }
 0x370   : > { %v744_v56 = vadd.f32 %v743_v54, %v337_v52 }
 0x372   : > { %v802_v57 = vsel %vm277_vm0, %v744_v56, -inf }
 0x373   : > { %803 = vmax.xlane.f32.xlu2 %v802_v57 }
 0x377   : > { %v745_v63 = vpop.f32.mrf.mxu1 }
 0x378   : > { %v746_v0 = vadd.f32 %v745_v63, %v338_v60 }
 0x37a   : > { %v2365_v1 = vpop.f32.mrf.mxu2  ;;  %v805_v3 = vsel %vm277_vm0, %v746_v0, -inf }
 0x37b   : > { %806 = vmax.xlane.f32.xlu1 %v805_v3  ;;  %800 = vmax.xlane.f32.xlu2 %v799_v5 }
 0x382   : > { %v2369_v6 = vpop.f32.mrf.mxu2 }
 0x383   : > { %v791_v15 = vpop.f32.mrf.mxu3 }
 0x384   : > { %v2394_v27 = vadd.f32 %v791_v15, %v353_v25 }
 0x386   : > { %v814_v28 = vsel %vm277_vm0, %v2394_v27, -inf }
 0x38a   : > { %v2371_v2 = vpop.f32.mrf.mxu2 }
 0x38b   : > { %v793_v23 = vpop.f32.mrf.mxu3 }
 0x38c   : > { %v794_v17 = vadd.f32 %v793_v23, %v354_v22 }
 0x38e   : > { %v817_v24 = vsel %vm277_vm0, %v794_v17, -inf }
 0x392   : > { %v2373_v8 = vpop.f32.mrf.mxu2 }
 0x393   : > { %947 = vrot.lane.b32.xlu2 %v2224_v13, %s2124_s7 }
 0x39a   : > { %v767_v11 = vpop.f32.mrf.mxu2 }
 0x39b   : > { %v768_v14 = vadd.f32 %v767_v11, %v345_v9 }
 0x39d   : > { %v808_v16 = vsel %vm277_vm0, %v768_v14, -inf }
 0x39e   : > { %809 = vmax.xlane.f32.xlu0 %v808_v16 }
 0x3a2   : > { %v769_v19 = vpop.f32.mrf.mxu2 }
 0x3a3   : > { %v770_v20 = vadd.f32 %v769_v19, %v346_v18 }
 0x3a5   : > { %v811_v21 = vsel %vm277_vm0, %v770_v20, -inf }
 0x3a6   : > { %812 = vmax.xlane.f32.xlu1 %v811_v21 }
 0x3ae   : > { %818 = vmax.xlane.f32.xlu1 %v817_v24 }
 0x3b2   : > { %994 = vrot.lane.b32.xlu0 %v2207_v53, %s2125_s24 }
 0x3bc   : > { %815 = vmax.xlane.f32.xlu2 %v814_v28 }
 0x3c7   : > { %922 = vrot.lane.b32.xlu1 %v2205_v48, %s2124_s7 }
 0x3c8   : > { %v798_v29 = vpop.xlane.xlu1 %797 }
 0x3c9   : > { %v820_v31 = vsub.f32 %v720_v47, %v798_v29 }
 0x3cb   : > { %v828_v32 = vmul.f32 1.442695, %v820_v31 }
 0x3cd   : > { %2008 = vpow2.f32 %v828_v32 }
 0x3d3   : > { %v2402_v33 = vpop.eup %2008 }
 0x3d4   : > { %992 = vrot.lane.b32.xlu2 %v2212_v61, %s2126_s29  ;;  %v844_v34 = vsel %vm277_vm0, %v2402_v33, 0.0 }
 0x3dc   : > { %845 = vadd.xlane.f32.xlu0 %v844_v34  ;;  %1042 = vrot.lane.b32.xlu2 %v2224_v13, %s2125_s24 }
 0x3e4   : > { %1018 = vrot.lane.b32.xlu2 %v2205_v48, %s2125_s24 }
 0x3e6   : > { %v804_v35 = vpop.xlane.xlu2 %803 }
 0x3e7   : > { %v822_v37 = vsub.f32 %v744_v56, %v804_v35 }
 0x3e9   : > { %v832_v4 = vmul.f32 1.442695, %v822_v37 }
 0x3eb   : > { %2010 = vpow2.f32 %v832_v4 }
 0x3ec   : > { %972 = vrot.lane.b32.xlu2 %v2216_v7, %s2124_s7 }
 0x3ee   : > { %v801_v38 = vpop.xlane.xlu2 %800  ;;  %v807_v43 = vpop.xlane.xlu1 %806 }
 0x3ef   : > { %v821_v41 = vsub.f32 %v722_v62, %v801_v38  ;;  %v823_v44 = vsub.f32 %v746_v0, %v807_v43 }
 0x3f1   : > { %v2412_v39 = vpop.eup %2010  ;;  %v830_v42 = vmul.f32 1.442695, %v821_v41  ;;  %v834_v26 = vmul.f32 1.442695, %v823_v44 }
 0x3f2   : > { %v850_v40 = vsel %vm277_vm0, %v2412_v39, 0.0 }
 0x3f3   : > { %851 = vadd.xlane.f32.xlu0 %v850_v40  ;;  %2012 = vpow2.f32 %v830_v42 }
 0x3f4   : > { %2014 = vpow2.f32 %v834_v26 }
 0x3f6   : > { %v948_v36 = vpop.permute.xlu2 %947 }
 0x3f7   : > { %960 = vmatpush.bf16.msrb.mxu2 %v948_v36 }
 0x3f9   : > { %v2416_v30 = vpop.eup %2012 }
 0x3fa   : > { %v847_v54 = vsel %vm277_vm0, %v2416_v30, 0.0  ;;  %v2420_v56 = vpop.eup %2014 }
 0x3fb   : > { %v853_v62 = vsel %vm277_vm0, %v2420_v56, 0.0 }
 0x411   : > { %v810_v47 = vpop.xlane.xlu0 %809 }
 0x412   : > { %v824_v49 = vsub.f32 %v768_v14, %v810_v47 }
 0x414   : > { %v836_v52 = vmul.f32 1.442695, %v824_v49 }
 0x415   : > { %848 = vadd.xlane.f32.xlu2 %v847_v54 }
 0x416   : > { %2016 = vpow2.f32 %v836_v52 }
 0x419   : > { %v813_v57 = vpop.xlane.xlu1 %812 }
 0x41a   : > { %v825_v58 = vsub.f32 %v770_v20, %v813_v57 }
 0x41c   : > { %v2422_v59 = vpop.eup %2016  ;;  %v838_v60 = vmul.f32 1.442695, %v825_v58 }
 0x41d   : > { %854 = vadd.xlane.f32.xlu2 %v853_v62  ;;  %v856_v63 = vsel %vm277_vm0, %v2422_v59, 0.0 }
 0x41e   : > { %2018 = vpow2.f32 %v838_v60  ;;  %857 = vadd.xlane.f32.xlu0 %v856_v63 }
 0x421   : > { %v819_v0 = vpop.xlane.xlu1 %818 }
 0x422   : > { %v827_v3 = vsub.f32 %v794_v17, %v819_v0 }
 0x424   : > { %v2428_v5 = vpop.eup %2018  ;;  %v842_v9 = vmul.f32 1.442695, %v827_v3  ;;  %v995_v11 = vpop.permute.xlu0 %994 }
 0x425   : > { %v1000_v14 = vsel %vm387_vm1, %v995_v11, 0  ;;  %v859_v15 = vsel %vm277_vm0, %v2428_v5, 0.0 }
 0x426   : > { %2020 = vpow2.f32 %v842_v9  ;;  %1009 = vmatpush.bf16.xpose.msra.mxu0 %v1000_v14  ;;  %860 = vadd.xlane.f32.xlu2 %v859_v15 }
 0x42c   : > { %v2433_v16 = vpop.eup %2020 }
 0x42d   : > { %v865_v18 = vsel %vm277_vm0, %v2433_v16, 0.0 }
 0x42e   : > { %866 = vadd.xlane.f32.xlu0 %v865_v18 }
 0x42f   : > { %v816_v19 = vpop.xlane.xlu2 %815 }
 0x430   : > { %v826_v20 = vsub.f32 %v2394_v27, %v816_v19 }
 0x432   : > { %v840_v21 = vmul.f32 1.442695, %v826_v20 }
 0x434   : > { %2022 = vpow2.f32 %v840_v21 }
 0x437   : > { %v993_v22 = vpop.permute.xlu2 %992 }
 0x439   : > { %v923_v23 = vpop.permute.xlu1 %922 }
 0x43a   : > { %v2438_v17 = vpop.eup %2022  ;;  %935 = vmatpush.bf16.msrb.mxu1 %v923_v23 }
 0x43b   : > { %v862_v24 = vsel %vm277_vm0, %v2438_v17, 0.0 }
 0x43c   : > { %863 = vadd.xlane.f32.xlu1 %v862_v24 }
 0x43e   : > { %1016 = vrot.lane.b32.xlu2 %v2209_v55, %s2126_s29 }
 0x43f   : > { %v1043_v25 = vpop.permute.xlu2 %1042 }
 0x440   : > { %v1048_v28 = vsel %vm387_vm1, %v1043_v25, 0 }
 0x441   : > { %1057 = vmatpush.bf16.xpose.msra.mxu2 %v1048_v28 }
 0x442   : > { %1066 = vrot.lane.b32.xlu0 %v2216_v7, %s2125_s24  ;;  %s2131_s24 = smov 4  }
 0x446   : > { %1064 = vrot.lane.b32.xlu2 %v2218_v10, %s2126_s29 }
 0x447   : > { %v1019_v27 = vpop.permute.xlu2 %1018 }
 0x448   : > { %v1024_v29 = vsel %vm387_vm1, %v1019_v27, 0 }
 0x449   : > { %1033 = vmatpush.bf16.xpose.msra.mxu1 %v1024_v29 }
 0x44a   : > { %1189 = vrot.lane.b32.xlu0 %v2207_v53, %s2127_s30 }
 0x44f   : > { %v973_v31 = vpop.permute.xlu2 %972  ;;  %v846_v32 = vpop.xlane.xlu0 %845 }
 0x450   : > { %985 = vmatpush.bf16.msrb.mxu3 %v973_v31  ;;  %2024 = vrcp.f32 %v846_v32 }
 0x455   : > { %1040 = vrot.lane.b32.xlu1 %v2221_v12, %s2126_s29 }
 0x456   : > { %v2025_v37 = vpop.eup %2024 }
 0x457   : > { %v876_v4 = vmul.f32 %v2025_v37, %v2402_v33 }
 0x459   : > { %v884_v40 = vpack.c.bf16 %v876_v4, %v876_v4 }
 0x45b   : > { %v894_v26 = vunpack.c.l.b16 %v884_v40  ;;  %v331_v40 = vld [vmem:[%s2823_s1 + $0x20] sm:$0xff] }
 0x466   : > { %v852_v34 = vpop.xlane.xlu0 %851 }
 0x488   : > { %v849_v35 = vpop.xlane.xlu2 %848 }
 0x489   : > { %2026 = vrcp.f32 %v849_v35 }
 0x48a   : > { %2028 = vrcp.f32 %v852_v34 }
 0x48f   : > { %v2027_v38 = vpop.eup %2026 }
 0x490   : > { %v877_v36 = vmul.f32 %v2027_v38, %v2416_v30  ;;  %v855_v41 = vpop.xlane.xlu2 %854  ;;  %v2029_v42 = vpop.eup %2028 }
 0x491   : > { %2030 = vrcp.f32 %v855_v41  ;;  %v858_v43 = vpop.xlane.xlu0 %857  ;;  %v878_v47 = vmul.f32 %v2029_v42, %v2412_v39 }
 0x492   : > { %v885_v44 = vpack.c.bf16 %v877_v36, %v877_v36  ;;  %2032 = vrcp.f32 %v858_v43 }
 0x493   : > { %v886_v57 = vpack.c.bf16 %v878_v47, %v878_v47  ;;  %v339_v47 = vld [vmem:[%s2823_s1 + $0x60] sm:$0xff] }
 0x494   : > { %v895_v49 = vunpack.c.l.b16 %v885_v44 }
 0x495   : > { %v919_v62 = vunpack.c.l.b16 %v886_v57 }
 0x496   : > { %v896_v52 = vpack.c.b16 %v895_v49, %v894_v26  ;;  %v332_v26 = vld [vmem:[%s2823_s1 + $0x28] sm:$0xff] }
 0x497   : > { %v2031_v54 = vpop.eup %2030 }
 0x498   : > { %v879_v58 = vmul.f32 %v2031_v54, %v2420_v56  ;;  %1855 = vmatmul.msk.bf16.vlgmr.msrb.gmra.mxu0 %vm277_vm0, %v896_v52  ;;  %v2033_v60 = vpop.eup %2032 }
 0x499   : > { %v861_v33 = vpop.xlane.xlu2 %860  ;;  %v880_v0 = vmul.f32 %v2033_v60, %v2422_v59 }
 0x49a   : > { %v887_v30 = vpack.c.bf16 %v879_v58, %v879_v58  ;;  %2034 = vrcp.f32 %v861_v33 }
 0x49b   : > { %v888_v39 = vpack.c.bf16 %v880_v0, %v880_v0 }
 0x49c   : > { %v920_v63 = vunpack.c.l.b16 %v887_v30  ;;  %v340_v30 = vld [vmem:[%s2823_s1 + $0x68] sm:$0xff] }
 0x49d   : > { %v944_v15 = vunpack.c.l.b16 %v888_v39 }
 0x49e   : > { %v921_v3 = vpack.c.b16 %v920_v63, %v919_v62 }
 0x4a0   : > { %v2035_v9 = vpop.eup %2034  ;;  %1856 = vmatmul.msk.bf16.vlgmr.msrb.gmra.mxu1 %vm277_vm0, %v921_v3 }
 0x4a1   : > { %v881_v11 = vmul.f32 %v2035_v9, %v2428_v5  ;;  %v867_v19 = vpop.xlane.xlu0 %866  ;;  %v1017_v20 = vpop.permute.xlu2 %1016 }
 0x4a2   : > { %2036 = vrcp.f32 %v867_v19 }
 0x4a3   : > { %v889_v14 = vpack.c.bf16 %v881_v11, %v881_v11  ;;  %v347_v11 = vld [vmem:[%s2823_s1 + $0xa0] sm:$0xff] }
 0x4a5   : > { %v945_v56 = vunpack.c.l.b16 %v889_v14 }
 0x4a7   : > { %v946_v18 = vpack.c.b16 %v945_v56, %v944_v15 }
 0x4a8   : > { %1859 = vmatmul.msk.bf16.vlgmr.msra.gmra.mxu0 %vm387_vm1, %v993_v22  ;;  %v2037_v59 = vpop.eup %2036 }
 0x4a9   : > { %1857 = vmatmul.msk.bf16.vlgmr.msrb.gmra.mxu2 %vm277_vm0, %v946_v18  ;;  %v883_v23 = vmul.f32 %v2037_v59, %v2433_v16  ;;  %v1065_v16 = vpop.permute.xlu2 %1064 }
 0x4ab   : > { %v891_v28 = vpack.c.bf16 %v883_v23, %v883_v23 }
 0x4ad   : > { %v970_v29 = vunpack.c.l.b16 %v891_v28 }
 0x4af   : > { %v864_v21 = vpop.xlane.xlu1 %863 }
 0x4b0   : > { %2038 = vrcp.f32 %v864_v21  ;;  %1860 = vmatmul.msk.bf16.vlgmr.msra.gmra.mxu1 %vm387_vm1, %v1017_v20  ;;  %v355_v20 = vld [vmem:[%s2823_s1 + $0xe0] sm:$0xff]  ;;  %v348_v21 = vld [vmem:[%s2823_s1 + $0xa8] sm:$0xff] }
 0x4b4   : > { %v1067_v24 = vpop.permute.xlu0 %1066 }
 0x4b5   : > { %v1072_v5 = vsel %vm387_vm1, %v1067_v24, 0 }
 0x4b6   : > { %v2039_v25 = vpop.eup %2038  ;;  %1081 = vmatpush.bf16.xpose.msra.mxu3 %v1072_v5 }
 0x4b7   : > { %v882_v27 = vmul.f32 %v2039_v25, %v2438_v17 }
 0x4b9   : > { %v890_v22 = vpack.c.bf16 %v882_v27, %v882_v27  ;;  %v356_v27 = vld [vmem:[%s2823_s1 + $0xe8] sm:$0xff] }
 0x4bb   : > { %v969_v31 = vunpack.c.l.b16 %v890_v22 }
 0x4bc   : > { %v1190_v32 = vpop.permute.xlu0 %1189 }
 0x4bd   : > { %v971_v34 = vpack.c.b16 %v970_v29, %v969_v31  ;;  %1202 = vmatpush.bf16.msrb.mxu0 %v1190_v32 }
 0x4bf   : > { %1858 = vmatmul.msk.bf16.vlgmr.msrb.gmra.mxu3 %vm277_vm0, %v971_v34 }
 0x4c7   : > { %v1041_v35 = vpop.permute.xlu1 %1040 }
 0x4c8   : > { %1861 = vmatmul.msk.bf16.vlgmr.msra.gmra.mxu2 %vm387_vm1, %v1041_v35 }
 0x4cf   : > { %1862 = vmatmul.msk.bf16.vlgmr.msra.gmra.mxu3 %vm387_vm1, %v1065_v16 }
 0x515   : > { %v2471_v37 = vpop.f32.mrf.mxu0 }
 0x51d   : > { %v2473_v4 = vpop.f32.mrf.mxu0  ;;  %v2475_v38 = vpop.f32.mrf.mxu1 }
 0x51e   : > { %v1914_v17 = vpack.i.bf16 %v2473_v4, %v2471_v37 }
 0x525   : > { %v2482_v36 = vpop.f32.mrf.mxu1  ;;  %v1011_v41 = vpop.f32.mrf.mxu0 }
 0x526   : > { %v1929_v42 = vpack.i.bf16 %v2482_v36, %v2475_v38  ;;  %v1012_v43 = vadd.f32 %v1011_v41, %v331_v40 }
 0x528   : > { %v1088_v44 = vsel %vm277_vm0, %v1012_v43, -inf }
 0x529   : > { %1089 = vmax.xlane.f32.xlu2 %v1088_v44 }
 0x52c   : > { %v2493_v49 = vpop.f32.mrf.mxu2 }
 0x52d   : > { %v1013_v52 = vpop.f32.mrf.mxu0  ;;  %v1035_v54 = vpop.f32.mrf.mxu1 }
 0x52e   : > { %v1014_v57 = vadd.f32 %v1013_v52, %v332_v26  ;;  %v2495_v58 = vadd.f32 %v1035_v54, %v339_v47 }
 0x530   : > { %v1091_v33 = vsel %vm277_vm0, %v1014_v57, -inf  ;;  %v1094_v60 = vsel %vm277_vm0, %v2495_v58, -inf }
 0x531   : > { %1092 = vmax.xlane.f32.xlu0 %v1091_v33  ;;  %1095 = vmax.xlane.f32.xlu1 %v1094_v60 }
 0x534   : > { %v2503_v62 = vpop.f32.mrf.mxu2 }
 0x535   : > { %v1944_v63 = vpack.i.bf16 %v2503_v62, %v2493_v49  ;;  %v1037_v0 = vpop.f32.mrf.mxu1 }
 0x536   : > { %v1038_v3 = vadd.f32 %v1037_v0, %v340_v30 }
 0x538   : > { %v1097_v9 = vsel %vm277_vm0, %v1038_v3, -inf }
 0x539   : > { %1098 = vmax.xlane.f32.xlu2 %v1097_v9 }
 0x542   : > { %v2508_v39 = vpop.f32.mrf.mxu3 }
 0x54a   : > { %v2513_v14 = vpop.f32.mrf.mxu3 }
 0x54b   : > { %v1959_v15 = vpack.i.bf16 %v2513_v14, %v2508_v39  ;;  %v1059_v56 = vpop.f32.mrf.mxu2 }
 0x54c   : > { %v2517_v18 = vadd.f32 %v1059_v56, %v347_v11 }
 0x54e   : > { %v1100_v19 = vsel %vm277_vm0, %v2517_v18, -inf }
 0x54f   : > { %1101 = vmax.xlane.f32.xlu0 %v1100_v19 }
 0x552   : > { %v1083_v59 = vpop.f32.mrf.mxu3 }
 0x553   : > { %v1084_v23 = vadd.f32 %v1083_v59, %v355_v20  ;;  %v1061_v24 = vpop.f32.mrf.mxu2 }
 0x554   : > { %v1062_v5 = vadd.f32 %v1061_v24, %v348_v21 }
 0x555   : > { %v1106_v25 = vsel %vm277_vm0, %v1084_v23, -inf }
 0x556   : > { %1107 = vmax.xlane.f32.xlu1 %v1106_v25  ;;  %v1103_v28 = vsel %vm277_vm0, %v1062_v5, -inf }
 0x557   : > { %1104 = vmax.xlane.f32.xlu2 %v1103_v28 }
 0x55a   : > { %v1085_v22 = vpop.f32.mrf.mxu3 }
 0x55b   : > { %v2532_v29 = vadd.f32 %v1085_v22, %v356_v27 }
 0x55d   : > { %v1109_v31 = vsel %vm277_vm0, %v2532_v29, -inf }
 0x55e   : > { %1110 = vmax.xlane.f32.xlu0 %v1109_v31 }
 0x56f   : > { %1214 = vrot.lane.b32.xlu1 %v2205_v48, %s2127_s30 }
 0x572   : > { %1284 = vrot.lane.b32.xlu0 %v2212_v61, %s2128_s26 }
 0x577   : > { %1310 = vrot.lane.b32.xlu1 %v2205_v48, %s2129_s27 }
 0x57a   : > { %1239 = vrot.lane.b32.xlu0 %v2224_v13, %s2127_s30 }
 0x57f   : > { %1334 = vrot.lane.b32.xlu1 %v2224_v13, %s2129_s27 }
 0x587   : > { %1308 = vrot.lane.b32.xlu1 %v2209_v55, %s2128_s26 }
 0x58f   : > { %1264 = vrot.lane.b32.xlu1 %v2216_v7, %s2127_s30 }
 0x59c   : > { %v1090_v32 = vpop.xlane.xlu2 %1089 }
 0x59d   : > { %v1112_v34 = vsub.f32 %v1012_v43, %v1090_v32 }
 0x59f   : > { %v1120_v35 = vmul.f32 1.442695, %v1112_v34 }
 0x5a1   : > { %2040 = vpow2.f32 %v1120_v35 }
 0x5a4   : > { %v1093_v61 = vpop.xlane.xlu0 %1092  ;;  %v1096_v33 = vpop.xlane.xlu1 %1095 }
 0x5a5   : > { %v1113_v40 = vsub.f32 %v1014_v57, %v1093_v61 }
 0x5a7   : > { %v2550_v16 = vpop.eup %2040  ;;  %v1122_v44 = vmul.f32 1.442695, %v1113_v40 }
 0x5a8   : > { %v1136_v41 = vsel %vm277_vm0, %v2550_v16, 0.0 }
 0x5a9   : > { %1137 = vadd.xlane.f32.xlu2 %v1136_v41  ;;  %2042 = vpow2.f32 %v1122_v44 }
 0x5ac   : > { %v1099_v26 = vpop.xlane.xlu2 %1098 }
 0x5ad   : > { %v1115_v47 = vsub.f32 %v1038_v3, %v1099_v26 }
 0x5af   : > { %v1126_v55 = vmul.f32 1.442695, %v1115_v47  ;;  %v2554_v52 = vpop.eup %2042 }
 0x5b0   : > { %v1139_v43 = vsel %vm277_vm0, %v2554_v52, 0.0 }
 0x5b1   : > { %2044 = vpow2.f32 %v1126_v55 }
 0x5b7   : > { %v2558_v54 = vpop.eup %2044 }
 0x5b8   : > { %v1145_v57 = vsel %vm277_vm0, %v2558_v54, 0.0 }
 0x5b9   : > { %1140 = vadd.xlane.f32.xlu1 %v1139_v43 }
 0x5c1   : > { %1286 = vrot.lane.b32.xlu2 %v2207_v53, %s2129_s27  ;;  %1146 = vadd.xlane.f32.xlu1 %v1145_v57 }
 0x5c2   : > { %v1102_v19 = vpop.xlane.xlu0 %1101 }
 0x5c3   : > { %v1116_v25 = vsub.f32 %v2517_v18, %v1102_v19 }
 0x5c5   : > { %v1128_v27 = vmul.f32 1.442695, %v1116_v25 }
 0x5c9   : > { %v1108_v60 = vpop.xlane.xlu1 %1107 }
 0x5ca   : > { %v1118_v30 = vsub.f32 %v1084_v23, %v1108_v60  ;;  %v1105_v0 = vpop.xlane.xlu2 %1104  ;;  %v1114_v23 = vsub.f32 %v2495_v58, %v1096_v33 }
 0x5cb   : > { %v1117_v3 = vsub.f32 %v1062_v5, %v1105_v0 }
 0x5cc   : > { %v1132_v9 = vmul.f32 1.442695, %v1118_v30  ;;  %v1124_v24 = vmul.f32 1.442695, %v1114_v23 }
 0x5cd   : > { %v1130_v11 = vmul.f32 1.442695, %v1117_v3 }
 0x5ce   : > { %2046 = vpow2.f32 %v1132_v9 }
 0x5cf   : > { %2048 = vpow2.f32 %v1130_v11 }
 0x5d0   : > { %2050 = vpow2.f32 %v1124_v24 }
 0x5d1   : > { %v1111_v5 = vpop.xlane.xlu0 %1110  ;;  %2052 = vpow2.f32 %v1128_v27 }
 0x5d2   : > { %v1119_v32 = vsub.f32 %v2532_v29, %v1111_v5 }
 0x5d4   : > { %v2564_v56 = vpop.eup %2046  ;;  %v1134_v58 = vmul.f32 1.442695, %v1119_v32 }
 0x5d5   : > { %v2566_v20 = vpop.eup %2048  ;;  %v1154_v21 = vsel %vm277_vm0, %v2564_v56, 0.0 }
 0x5d6   : > { %1155 = vadd.xlane.f32.xlu0 %v1154_v21  ;;  %v1151_v59 = vsel %vm277_vm0, %v2566_v20, 0.0  ;;  %v2051_v31 = vpop.eup %2050  ;;  %2054 = vpow2.f32 %v1134_v58 }
 0x5d7   : > { %1152 = vadd.xlane.f32.xlu1 %v1151_v59  ;;  %v1142_v35 = vsel %vm277_vm0, %v2051_v31, 0.0  ;;  %v2053_v40 = vpop.eup %2052 }
 0x5d8   : > { %v1148_v29 = vsel %vm277_vm0, %v2053_v40, 0.0 }
 0x5dc   : > { %v2583_v26 = vpop.eup %2054 }
 0x5dd   : > { %v1157_v55 = vsel %vm277_vm0, %v2583_v26, 0.0 }
 0x5e1   : > { %v1215_v28 = vpop.permute.xlu1 %1214 }
 0x5e2   : > { %1227 = vmatpush.bf16.msrb.mxu1 %v1215_v28 }
 0x5e4   : > { %v1285_v22 = vpop.permute.xlu0 %1284 }
 0x5e9   : > { %v1311_v34 = vpop.permute.xlu1 %1310 }
 0x5ea   : > { %v1316_v61 = vsel %vm387_vm1, %v1311_v34, 0  ;;  %1358 = vrot.lane.b32.xlu0 %v2216_v7, %s2129_s27  ;;  %1143 = vadd.xlane.f32.xlu2 %v1142_v35  ;;  %s2133_s27 = smov 12  }
 0x5eb   : > { %1325 = vmatpush.bf16.xpose.msra.mxu1 %v1316_v61 }
 0x5ec   : > { %v1240_v18 = vpop.permute.xlu0 %1239 }
 0x5ed   : > { %1252 = vmatpush.bf16.msrb.mxu2 %v1240_v18 }
 0x5f0   : > { %1332 = vrot.lane.b32.xlu1 %v2221_v12, %s2128_s26 }
 0x5f1   : > { %v1335_v41 = vpop.permute.xlu1 %1334 }
 0x5f2   : > { %v1340_v44 = vsel %vm387_vm1, %v1335_v41, 0  ;;  %1149 = vadd.xlane.f32.xlu2 %v1148_v29 }
 0x5f3   : > { %1349 = vmatpush.bf16.xpose.msra.mxu2 %v1340_v44 }
 0x5f9   : > { %v2585_v47 = vpop.permute.xlu1 %1308 }
 0x5fa   : > { %1158 = vadd.xlane.f32.xlu2 %v1157_v55 }
 0x601   : > { %v1265_v43 = vpop.permute.xlu1 %1264 }
 0x602   : > { %1277 = vmatpush.bf16.msrb.mxu3 %v1265_v43 }
 0x612   : > { %1356 = vrot.lane.b32.xlu2 %v2218_v10, %s2128_s26  ;;  %s2132_s26 = smov 8  }
 0x61c   : > { %v1138_v12 = vpop.xlane.xlu2 %1137 }
 0x61d   : > { %2056 = vrcp.f32 %v1138_v12 }
 0x623   : > { %v2057_v30 = vpop.eup %2056 }
 0x624   : > { %v1287_v57 = vpop.permute.xlu2 %1286  ;;  %v1168_v0 = vmul.f32 %v2057_v30, %v2550_v16 }
 0x625   : > { %v1292_v33 = vsel %vm387_vm1, %v1287_v57, 0 }
 0x626   : > { %1301 = vmatpush.bf16.xpose.msra.mxu0 %v1292_v33  ;;  %v1176_v9 = vpack.c.bf16 %v1168_v0, %v1168_v0 }
 0x628   : > { %v1186_v21 = vunpack.c.l.b16 %v1176_v9 }
 0x62c   : > { %v1141_v60 = vpop.xlane.xlu1 %1140 }
 0x62d   : > { %2058 = vrcp.f32 %v1141_v60 }
 0x633   : > { %v2059_v3 = vpop.eup %2058 }
 0x634   : > { %v1169_v11 = vmul.f32 %v2059_v3, %v2554_v52  ;;  %v1147_v24 = vpop.xlane.xlu1 %1146 }
 0x635   : > { %2060 = vrcp.f32 %v1147_v24  ;;  %v333_v24 = vld [vmem:[%s2823_s1 + $0x30] sm:$0xff] }
 0x636   : > { %v1177_v19 = vpack.c.bf16 %v1169_v11, %v1169_v11 }
 0x638   : > { %v1187_v59 = vunpack.c.l.b16 %v1177_v19 }
 0x63a   : > { %v1188_v23 = vpack.c.b16 %v1187_v59, %v1186_v21 }
 0x63b   : > { %v2061_v27 = vpop.eup %2060 }
 0x63c   : > { %1863 = vmatmul.msk.bf16.vlgmr.msrb.gmra.mxu0 %vm277_vm0, %v1188_v23  ;;  %v1171_v52 = vmul.f32 %v2061_v27, %v2558_v54 }
 0x63e   : > { %v1179_v34 = vpack.c.bf16 %v1171_v52, %v1171_v52 }
 0x640   : > { %v1212_v18 = vunpack.c.l.b16 %v1179_v34 }
 0x649   : > { %v1156_v10 = vpop.xlane.xlu0 %1155 }
 0x64a   : > { %v1153_v25 = vpop.xlane.xlu1 %1152 }
 0x64c   : > { %1867 = vmatmul.msk.bf16.vlgmr.msra.gmra.mxu0 %vm387_vm1, %v1285_v22 }
 0x65c   : > { %v1359_v5 = vpop.permute.xlu0 %1358 }
 0x65d   : > { %v1364_v28 = vsel %vm387_vm1, %v1359_v5, 0  ;;  %v1144_v16 = vpop.xlane.xlu2 %1143 }
 0x65e   : > { %2062 = vrcp.f32 %v1144_v16  ;;  %1373 = vmatpush.bf16.xpose.msra.mxu3 %v1364_v28  ;;  %v334_v28 = vld [vmem:[%s2823_s1 + $0x38] sm:$0xff] }
 0x65f   : > { %2064 = vrcp.f32 %v1153_v25 }
 0x662   : > { %v1333_v59 = vpop.permute.xlu1 %1332 }
 0x664   : > { %v2063_v32 = vpop.eup %2062 }
 0x665   : > { %v1170_v35 = vmul.f32 %v2063_v32, %v2051_v31  ;;  %v1150_v61 = vpop.xlane.xlu2 %1149  ;;  %v2065_v58 = vpop.eup %2064 }
 0x666   : > { %2066 = vrcp.f32 %v1150_v61  ;;  %v1173_v41 = vmul.f32 %v2065_v58, %v2566_v20  ;;  %v341_v58 = vld [vmem:[%s2823_s1 + $0x70] sm:$0xff] }
 0x667   : > { %v1178_v22 = vpack.c.bf16 %v1170_v35, %v1170_v35  ;;  %2068 = vrcp.f32 %v1156_v10 }
 0x668   : > { %v1181_v43 = vpack.c.bf16 %v1173_v41, %v1173_v41 }
 0x669   : > { %v1211_v29 = vunpack.c.l.b16 %v1178_v22 }
 0x66a   : > { %v1237_v60 = vunpack.c.l.b16 %v1181_v43 }
 0x66b   : > { %v1213_v44 = vpack.c.b16 %v1212_v18, %v1211_v29 }
 0x66c   : > { %v2067_v55 = vpop.eup %2066 }
 0x66d   : > { %v1172_v12 = vmul.f32 %v2067_v55, %v2053_v40  ;;  %1864 = vmatmul.msk.bf16.vlgmr.msrb.gmra.mxu1 %vm277_vm0, %v1213_v44  ;;  %v1159_v57 = vpop.xlane.xlu2 %1158  ;;  %v2069_v54 = vpop.eup %2068  ;;  %v342_v55 = vld [vmem:[%s2823_s1 + $0x78] sm:$0xff] }
 0x66e   : > { %2070 = vrcp.f32 %v1159_v57  ;;  %v1174_v31 = vmul.f32 %v2069_v54, %v2564_v56 }
 0x66f   : > { %v1180_v33 = vpack.c.bf16 %v1172_v12, %v1172_v12 }
 0x670   : > { %v1182_v9 = vpack.c.bf16 %v1174_v31, %v1174_v31 }
 0x671   : > { %v1236_v30 = vunpack.c.l.b16 %v1180_v33  ;;  %v349_v33 = vld [vmem:[%s2823_s1 + $0xb0] sm:$0xff] }
 0x672   : > { %v1261_v19 = vunpack.c.l.b16 %v1182_v9  ;;  %v350_v9 = vld [vmem:[%s2823_s1 + $0xb8] sm:$0xff] }
 0x673   : > { %v1238_v0 = vpack.c.b16 %v1237_v60, %v1236_v30 }
 0x674   : > { %v2071_v3 = vpop.eup %2070 }
 0x675   : > { %v1175_v20 = vmul.f32 %v2071_v3, %v2583_v26  ;;  %1865 = vmatmul.msk.bf16.vlgmr.msrb.gmra.mxu2 %vm277_vm0, %v1238_v0  ;;  %v1357_v56 = vpop.permute.xlu2 %1356 }
 0x677   : > { %v1183_v11 = vpack.c.bf16 %v1175_v20, %v1175_v20  ;;  %v357_v20 = vld [vmem:[%s2823_s1 + $0xf0] sm:$0xff] }
 0x679   : > { %v1262_v40 = vunpack.c.l.b16 %v1183_v11 }
 0x67b   : > { %v1263_v21 = vpack.c.b16 %v1262_v40, %v1261_v19 }
 0x67d   : > { %1866 = vmatmul.msk.bf16.vlgmr.msrb.gmra.mxu3 %vm277_vm0, %v1263_v21  ;;  %1868 = vmatmul.msk.bf16.vlgmr.msra.gmra.mxu1 %vm387_vm1, %v2585_v47 }
 0x685   : > { %1869 = vmatmul.msk.bf16.vlgmr.msra.gmra.mxu2 %vm387_vm1, %v1333_v59 }
 0x68d   : > { %1870 = vmatmul.msk.bf16.vlgmr.msra.gmra.mxu3 %vm387_vm1, %v1357_v56 }
 0x6b9   : > { %v2608_v23 = vpop.f32.mrf.mxu0 }
 0x6c1   : > { %v2610_v26 = vpop.f32.mrf.mxu0 }
 0x6c2   : > { %v1919_v10 = vpack.i.bf16 %v2610_v26, %v2608_v23 }
 0x6c9   : > { %v1303_v5 = vpop.f32.mrf.mxu0 }
 0x6ca   : > { %v1304_v25 = vadd.f32 %v1303_v5, %v333_v24  ;;  %v358_v24 = vld [vmem:[%s2823_s1 + $0xf8] sm:$0xff] }
 0x6cc   : > { %v1380_v47 = vsel %vm277_vm0, %v1304_v25, -inf }
 0x6cd   : > { %1381 = vmax.xlane.f32.xlu1 %v1380_v47 }
 0x6d1   : > { %v1305_v16 = vpop.f32.mrf.mxu0 }
 0x6d2   : > { %v1306_v27 = vadd.f32 %v1305_v16, %v334_v28 }
 0x6d4   : > { %v1383_v52 = vsel %vm277_vm0, %v1306_v27, -inf }
 0x6d5   : > { %1384 = vmax.xlane.f32.xlu0 %v1383_v52 }
 0x6ea   : > { %v2622_v32 = vpop.f32.mrf.mxu1 }
 0x6f2   : > { %v2624_v34 = vpop.f32.mrf.mxu1 }
 0x6f3   : > { %v1934_v35 = vpack.i.bf16 %v2624_v34, %v2622_v32 }
 0x6f8   : > { %v2628_v61 = vpop.f32.mrf.mxu2 }
 0x6fa   : > { %v1327_v22 = vpop.f32.mrf.mxu1 }
 0x6fb   : > { %v1328_v18 = vadd.f32 %v1327_v22, %v341_v58 }
 0x6fd   : > { %v1386_v41 = vsel %vm277_vm0, %v1328_v18, -inf }
 0x6fe   : > { %1387 = vmax.xlane.f32.xlu2 %v1386_v41 }
 0x700   : > { %v2634_v29 = vpop.f32.mrf.mxu2  ;;  %v2636_v44 = vpop.f32.mrf.mxu3 }
 0x701   : > { %v1949_v43 = vpack.i.bf16 %v2634_v29, %v2628_v61 }
 0x702   : > { %v1329_v12 = vpop.f32.mrf.mxu1 }
 0x703   : > { %v1330_v57 = vadd.f32 %v1329_v12, %v342_v55 }
 0x705   : > { %v1389_v54 = vsel %vm277_vm0, %v1330_v57, -inf }
 0x706   : > { %1390 = vmax.xlane.f32.xlu1 %v1389_v54 }
 0x708   : > { %v2647_v31 = vpop.f32.mrf.mxu3  ;;  %v1351_v60 = vpop.f32.mrf.mxu2 }
 0x709   : > { %v1964_v30 = vpack.i.bf16 %v2647_v31, %v2636_v44  ;;  %v1352_v0 = vadd.f32 %v1351_v60, %v349_v33 }
 0x70b   : > { %v1392_v3 = vsel %vm277_vm0, %v1352_v0, -inf }
 0x70e   : > { %1393 = vmax.xlane.f32.xlu1 %v1392_v3 }
 0x710   : > { %v1353_v11 = vpop.f32.mrf.mxu2  ;;  %v1375_v19 = vpop.f32.mrf.mxu3 }
 0x711   : > { %v2658_v40 = vadd.f32 %v1353_v11, %v350_v9  ;;  %v1376_v21 = vadd.f32 %v1375_v19, %v357_v20 }
 0x713   : > { %v1395_v59 = vsel %vm277_vm0, %v2658_v40, -inf  ;;  %v1398_v56 = vsel %vm277_vm0, %v1376_v21, -inf }
 0x714   : > { %1396 = vmax.xlane.f32.xlu0 %v1395_v59 }
 0x716   : > { %1399 = vmax.xlane.f32.xlu1 %v1398_v56 }
 0x718   : > { %v1377_v5 = vpop.f32.mrf.mxu3 }
 0x719   : > { %v1378_v47 = vadd.f32 %v1377_v5, %v358_v24 }
 0x71b   : > { %v1401_v28 = vsel %vm277_vm0, %v1378_v47, -inf }
 0x71c   : > { %1402 = vmax.xlane.f32.xlu2 %v1401_v28 }
 0x734   : > { %1481 = vrot.lane.b32.xlu2 %v2207_v53, %s2130_s23 }
 0x740   : > { %v1382_v16 = vpop.xlane.xlu1 %1381 }
 0x741   : > { %v1404_v52 = vsub.f32 %v1304_v25, %v1382_v16 }
 0x743   : > { %v1412_v58 = vmul.f32 1.442695, %v1404_v52 }
 0x745   : > { %2072 = vpow2.f32 %v1412_v58 }
 0x748   : > { %v1385_v22 = vpop.xlane.xlu0 %1384 }
 0x749   : > { %v1405_v41 = vsub.f32 %v1306_v27, %v1385_v22 }
 0x74b   : > { %v2073_v55 = vpop.eup %2072  ;;  %v1414_v12 = vmul.f32 1.442695, %v1405_v41 }
 0x74c   : > { %v1428_v54 = vsel %vm277_vm0, %v2073_v55, 0.0 }
 0x74d   : > { %2074 = vpow2.f32 %v1414_v12  ;;  %1429 = vadd.xlane.f32.xlu0 %v1428_v54 }
 0x753   : > { %v2075_v33 = vpop.eup %2074 }
 0x754   : > { %v1431_v60 = vsel %vm277_vm0, %v2075_v33, 0.0 }
 0x755   : > { %1432 = vadd.xlane.f32.xlu1 %v1431_v60 }
 0x771   : > { %v1388_v3 = vpop.xlane.xlu2 %1387 }
 0x772   : > { %v1406_v9 = vsub.f32 %v1328_v18, %v1388_v3 }
 0x774   : > { %v1416_v20 = vmul.f32 1.442695, %v1406_v9 }
 0x776   : > { %2076 = vpow2.f32 %v1416_v20 }
 0x779   : > { %v1391_v53 = vpop.xlane.xlu1 %1390 }
 0x77a   : > { %v1407_v25 = vsub.f32 %v1330_v57, %v1391_v53 }
 0x77c   : > { %v2671_v11 = vpop.eup %2076  ;;  %v1418_v19 = vmul.f32 1.442695, %v1407_v25 }
 0x77d   : > { %v1434_v27 = vsel %vm277_vm0, %v2671_v11, 0.0 }
 0x77e   : > { %2078 = vpow2.f32 %v1418_v19  ;;  %1435 = vadd.xlane.f32.xlu0 %v1434_v27 }
 0x781   : > { %v1394_v59 = vpop.xlane.xlu1 %1393 }
 0x782   : > { %v1408_v56 = vsub.f32 %v1352_v0, %v1394_v59 }
 0x784   : > { %v2079_v24 = vpop.eup %2078  ;;  %v1420_v5 = vmul.f32 1.442695, %v1408_v56 }
 0x785   : > { %v1437_v28 = vsel %vm277_vm0, %v2079_v24, 0.0 }
 0x786   : > { %2080 = vpow2.f32 %v1420_v5  ;;  %1438 = vadd.xlane.f32.xlu1 %v1437_v28 }
 0x789   : > { %v1400_v18 = vpop.xlane.xlu1 %1399 }
 0x78a   : > { %v1410_v16 = vsub.f32 %v1376_v21, %v1400_v18  ;;  %v1397_v21 = vpop.xlane.xlu0 %1396 }
 0x78b   : > { %v1409_v54 = vsub.f32 %v2658_v40, %v1397_v21 }
 0x78c   : > { %v2676_v52 = vpop.eup %2080  ;;  %v1424_v57 = vmul.f32 1.442695, %v1410_v16 }
 0x78d   : > { %v1440_v58 = vsel %vm277_vm0, %v2676_v52, 0.0  ;;  %v1422_v3 = vmul.f32 1.442695, %v1409_v54 }
 0x78e   : > { %2082 = vpow2.f32 %v1424_v57  ;;  %1441 = vadd.xlane.f32.xlu0 %v1440_v58 }
 0x78f   : > { %v1403_v22 = vpop.xlane.xlu2 %1402  ;;  %2084 = vpow2.f32 %v1422_v3 }
 0x790   : > { %v1411_v60 = vsub.f32 %v1378_v47, %v1403_v22 }
 0x792   : > { %v1426_v9 = vmul.f32 1.442695, %v1411_v60 }
 0x794   : > { %v2680_v41 = vpop.eup %2082  ;;  %2086 = vpow2.f32 %v1426_v9 }
 0x795   : > { %v1446_v0 = vsel %vm277_vm0, %v2680_v41, 0.0  ;;  %v2085_v53 = vpop.eup %2084 }
 0x796   : > { %1447 = vadd.xlane.f32.xlu2 %v1446_v0  ;;  %v1443_v27 = vsel %vm277_vm0, %v2085_v53, 0.0 }
 0x797   : > { %v1482_v12 = vpop.permute.xlu2 %1481 }
 0x798   : > { %1494 = vmatpush.bf16.msrb.mxu0 %v1482_v12 }
 0x79a   : > { %v2087_v25 = vpop.eup %2086 }
 0x79f   : > { %1531 = vrot.lane.b32.xlu1 %v2224_v13, %s2130_s23 }
 0x7a2   : > { %1506 = vrot.lane.b32.xlu0 %v2205_v48, %s2130_s23  ;;  %v1449_v48 = vsel %vm277_vm0, %v2087_v25, 0.0 }
 0x7c0   : > { %v1430_v20 = vpop.xlane.xlu0 %1429 }
 0x7c1   : > { %2088 = vrcp.f32 %v1430_v20 }
 0x7c7   : > { %v2089_v59 = vpop.eup %2088 }
 0x7c8   : > { %v1433_v19 = vpop.xlane.xlu1 %1432  ;;  %v1460_v13 = vmul.f32 %v2089_v59, %v2073_v55 }
 0x7c9   : > { %2090 = vrcp.f32 %v1433_v19  ;;  %1444 = vadd.xlane.f32.xlu1 %v1443_v27 }
 0x7ca   : > { %v1468_v47 = vpack.c.bf16 %v1460_v13, %v1460_v13 }
 0x7cc   : > { %1450 = vadd.xlane.f32.xlu0 %v1449_v48  ;;  %v1478_v28 = vunpack.c.l.b16 %v1468_v47 }
 0x7cf   : > { %v2091_v40 = vpop.eup %2090 }
 0x7d0   : > { %v1461_v56 = vmul.f32 %v2091_v40, %v2075_v33 }
 0x7d2   : > { %v1469_v5 = vpack.c.bf16 %v1461_v56, %v1461_v56 }
 0x7d4   : > { %v1479_v18 = vunpack.c.l.b16 %v1469_v5 }
 0x7d6   : > { %v1480_v16 = vpack.c.b16 %v1479_v18, %v1478_v28 }
 0x7d8   : > { %1871 = vmatmul.msk.bf16.vlgmr.msrb.gmra.mxu0 %vm277_vm0, %v1480_v16 }
 0x7e2   : > { %1556 = vrot.lane.b32.xlu1 %v2216_v7, %s2130_s23 }
 0x7ea   : > { %1915 = vrot.lane.b32.xlu1 %v1914_v17, %s2131_s24 }
 0x7f1   : > { %v1436_v33 = vpop.xlane.xlu0 %1435 }
 0x7f2   : > { %1920 = vrot.lane.b32.xlu1 %v1919_v10, %s2132_s26 }
 0x7f9   : > { %v1439_v55 = vpop.xlane.xlu1 %1438 }
 0x7fa   : > { %1930 = vrot.lane.b32.xlu1 %v1929_v42, %s2131_s24  ;;  %2092 = vrcp.f32 %v1439_v55 }
 0x7fb   : > { %2094 = vrcp.f32 %v1436_v33 }
 0x800   : > { %v2093_v7 = vpop.eup %2092 }
 0x801   : > { %v2095_v37 = vpop.eup %2094  ;;  %v1463_v4 = vmul.f32 %v2093_v7, %v2079_v24  ;;  %v1442_v17 = vpop.xlane.xlu0 %1441 }
 0x802   : > { %1935 = vrot.lane.b32.xlu1 %v1934_v35, %s2132_s26  ;;  %v1462_v38 = vmul.f32 %v2095_v37, %v2671_v11  ;;  %2096 = vrcp.f32 %v1442_v17 }
 0x803   : > { %v1471_v36 = vpack.c.bf16 %v1463_v4, %v1463_v4 }
 0x804   : > { %v1470_v42 = vpack.c.bf16 %v1462_v38, %v1462_v38 }
 0x805   : > { %v1504_v26 = vunpack.c.l.b16 %v1471_v36 }
 0x806   : > { %v1503_v10 = vunpack.c.l.b16 %v1470_v42 }
 0x808   : > { %v1505_v34 = vpack.c.b16 %v1504_v26, %v1503_v10  ;;  %v2097_v24 = vpop.eup %2096 }
 0x809   : > { %v1464_v62 = vmul.f32 %v2097_v24, %v2676_v52 }
 0x80a   : > { %1945 = vrot.lane.b32.xlu1 %v1944_v63, %s2131_s24  ;;  %v1448_v63 = vpop.xlane.xlu2 %1447 }
 0x80b   : > { %v1472_v57 = vpack.c.bf16 %v1464_v62, %v1464_v62 }
 0x80d   : > { %v1528_v12 = vunpack.c.l.b16 %v1472_v57 }
 0x811   : > { %v1532_v23 = vpop.permute.xlu1 %1531 }
 0x812   : > { %1544 = vmatpush.bf16.msrb.mxu2 %v1532_v23 }
 0x814   : > { %v1507_v32 = vpop.permute.xlu0 %1506 }
 0x815   : > { %1519 = vmatpush.bf16.msrb.mxu1 %v1507_v32 }
 0x818   : > { %1872 = vmatmul.msk.bf16.vlgmr.msrb.gmra.mxu1 %vm277_vm0, %v1505_v34 }
 0x83c   : > { %v1445_v35 = vpop.xlane.xlu1 %1444 }
 0x83d   : > { %2098 = vrcp.f32 %v1445_v35 }
 0x83f   : > { %v1451_v49 = vpop.xlane.xlu0 %1450 }
 0x840   : > { %2100 = vrcp.f32 %v1451_v49 }
 0x841   : > { %2102 = vrcp.f32 %v1448_v63 }
 0x843   : > { %v2099_v11 = vpop.eup %2098 }
 0x844   : > { %v1465_v58 = vmul.f32 %v2099_v11, %v2085_v53 }
 0x846   : > { %v1473_v22 = vpack.c.bf16 %v1465_v58, %v1465_v58  ;;  %v2101_v0 = vpop.eup %2100 }
 0x847   : > { %v2103_v54 = vpop.eup %2102  ;;  %v1467_v3 = vmul.f32 %v2101_v0, %v2087_v25  ;;  %v1888_v25 = vld [vmem:[%s2826_s4] sm:$0xff] }
 0x848   : > { %v1529_v21 = vunpack.c.l.b16 %v1473_v22  ;;  %v1466_v9 = vmul.f32 %v2103_v54, %v2680_v41  ;;  %1733 = vmatpush.bf16.msra.mxu0 %v1888_v25 }
 0x849   : > { %v1475_v20 = vpack.c.bf16 %v1467_v3, %v1467_v3 }
 0x84a   : > { %v1530_v60 = vpack.c.b16 %v1529_v21, %v1528_v12  ;;  %v1474_v19 = vpack.c.bf16 %v1466_v9, %v1466_v9  ;;  %v2104_v12 = vld [vmem:[%s2188_s28] sm:$0xff] }
 0x84b   : > { %v1554_v52 = vunpack.c.l.b16 %v1475_v20  ;;  %v2105_v20 = vld [vmem:[%s2188_s28 + $0x8] sm:$0xff] }
 0x84c   : > { %1873 = vmatmul.msk.bf16.vlgmr.msrb.gmra.mxu2 %vm277_vm0, %v1530_v60  ;;  %v1553_v27 = vunpack.c.l.b16 %v1474_v19 }
 0x84e   : > { %v1555_v13 = vpack.c.b16 %v1554_v52, %v1553_v27 }
 0x854   : > { %v1557_v59 = vpop.permute.xlu1 %1556 }
 0x855   : > { %v1496_v48 = vpop.f32.mrf.mxu0  ;;  %1569 = vmatpush.bf16.msrb.mxu3 %v1557_v59 }
 0x858   : > { %1874 = vmatmul.msk.bf16.vlgmr.msrb.gmra.mxu3 %vm277_vm0, %v1555_v13 }
 0x85c   : > { %v1916_v5 = vpop.permute.xlu1 %1915 }
 0x85d   : > { %v1498_v53 = vpop.f32.mrf.mxu0  ;;  %v1918_v18 = vunpack.i.h.bf16 %v1916_v5  ;;  %v1917_v61 = vunpack.i.l.bf16 %v1916_v5 }
 0x85e   : > { %v1924_v40 = vpack.i.bf16 %v1498_v53, %v1496_v48 }
 0x85f   : > { %v1673_v14 = vsel %vm387_vm1, %v2369_v6, %v1918_v18 }
 0x860   : > { %1925 = vrot.lane.b32.xlu2 %v1924_v40, %s2133_s27 }
 0x864   : > { %v1921_v28 = vpop.permute.xlu1 %1920 }
 0x865   : > { %v1923_v29 = vunpack.i.h.bf16 %v1921_v28 }
 0x867   : > { %v1682_v7 = vsel %vm1680_vm2, %v1673_v14, %v1923_v29 }
 0x868   : > { %1950 = vrot.lane.b32.xlu2 %v1949_v43, %s2132_s26  ;;  %v1922_v43 = vunpack.i.l.bf16 %v1921_v28 }
 0x86c   : > { %v1931_v26 = vpop.permute.xlu1 %1930 }
 0x86d   : > { %v1933_v32 = vunpack.i.h.bf16 %v1931_v26  ;;  %v1932_v34 = vunpack.i.l.bf16 %v1931_v26 }
 0x86f   : > { %v1675_v62 = vsel %vm387_vm1, %v2345_v46, %v1933_v32  ;;  %v1674_v44 = vsel %vm387_vm1, %v2343_v45, %v1932_v34  ;;  %v2760_v46 = vld [vmem:[%s2827_s5] ss:$0 sm:$0xff] }
 0x870   : > { %1960 = vrot.lane.b32.xlu2 %v1959_v15, %s2131_s24  ;;  %v1672_v15 = vsel %vm387_vm1, %v2365_v1, %v1917_v61  ;;  %v2108_v34 = vld [vmem:[%s2188_s28 + $0x20] sm:$0xff] }
 0x871   : > { %v1681_v33 = vsel %vm1680_vm2, %v1672_v15, %v1922_v43 }
 0x874   : > { %v1936_v10 = vpop.permute.xlu1 %1935 }
 0x875   : > { %v1938_v35 = vunpack.i.h.bf16 %v1936_v10  ;;  %v1937_v24 = vunpack.i.l.bf16 %v1936_v10 }
 0x877   : > { %v1683_v63 = vsel %vm1680_vm2, %v1674_v44, %v1937_v24  ;;  %v1684_v11 = vsel %vm1680_vm2, %v1675_v62, %v1938_v35  ;;  %v2109_v62 = vld [vmem:[%s2188_s28 + $0x28] sm:$0xff] }
 0x87c   : > { %v1946_v54 = vpop.permute.xlu1 %1945 }
 0x87d   : > { %v1948_v52 = vunpack.i.h.bf16 %v1946_v54  ;;  %v1947_v27 = vunpack.i.l.bf16 %v1946_v54 }
 0x87f   : > { %v1677_v53 = vsel %vm387_vm1, %v2353_v51, %v1948_v52  ;;  %v1676_v40 = vsel %vm387_vm1, %v2351_v50, %v1947_v27 }
 0x895   : > { %v1521_v41 = vpop.f32.mrf.mxu1 }
 0x89d   : > { %v1523_v47 = vpop.f32.mrf.mxu1 }
 0x89e   : > { %v1939_v56 = vpack.i.bf16 %v1523_v47, %v1521_v41 }
 0x8a0   : > { %1940 = vrot.lane.b32.xlu0 %v1939_v56, %s2133_s27 }
 0x8ba   : > { %v1926_v39 = vpop.permute.xlu2 %1925 }
 0x8bb   : > { %v1928_v16 = vunpack.i.h.bf16 %v1926_v39  ;;  %v1927_v55 = vunpack.i.l.bf16 %v1926_v39 }
 0x8bd   : > { %v1691_v37 = vsel %vm1689_vm3, %v1682_v7, %v1928_v16  ;;  %v1690_v4 = vsel %vm1689_vm3, %v1681_v33, %v1927_v55 }
 0x8be   : > { %v1701_v38 = vpack.c.bf16 %v1691_v37, %v1690_v4 }
 0x8c0   : > { %1879 = vmatmul.msk.bf16.vlgmr.msra.gmra.mxu0 %vm277_vm0, %v1701_v38 }
 0x8c2   : > { %v1951_v9 = vpop.permute.xlu2 %1950 }
 0x8c3   : > { %v1953_v59 = vunpack.i.h.bf16 %v1951_v9  ;;  %v1952_v48 = vunpack.i.l.bf16 %v1951_v9 }
 0x8c5   : > { %v1686_v47 = vsel %vm1680_vm2, %v1677_v53, %v1953_v59  ;;  %v1685_v56 = vsel %vm1680_vm2, %v1676_v40, %v1952_v48 }
 0x8ca   : > { %v1961_v61 = vpop.permute.xlu2 %1960 }
 0x8cb   : > { %v1963_v43 = vunpack.i.h.bf16 %v1961_v61  ;;  %v1962_v51 = vunpack.i.l.bf16 %v1961_v61 }
 0x8cd   : > { %v1679_v55 = vsel %vm387_vm1, %v2373_v8, %v1963_v43  ;;  %v1678_v33 = vsel %vm387_vm1, %v2371_v2, %v1962_v51 }
 0x8cf   : > { %v1546_v17 = vpop.f32.mrf.mxu2 }
 0x8d7   : > { %v1548_v36 = vpop.f32.mrf.mxu2 }
 0x8d8   : > { %v1954_v42 = vpack.i.bf16 %v1548_v36, %v1546_v17 }
 0x8da   : > { %1955 = vrot.lane.b32.xlu1 %v1954_v42, %s2133_s27  ;;  %v2106_v42 = vld [vmem:[%s2188_s28 + $0x10] sm:$0xff] }
 0x8db   : > { %v1571_v6 = vpop.f32.mrf.mxu3 }
 0x8e2   : > { %1965 = vrot.lane.b32.xlu1 %v1964_v30, %s2132_s26 }
 0x8e3   : > { %v1573_v1 = vpop.f32.mrf.mxu3 }
 0x8e4   : > { %v1969_v23 = vpack.i.bf16 %v1573_v1, %v1571_v6 }
 0x8e6   : > { %1970 = vrot.lane.b32.xlu0 %v1969_v23, %s2133_s27  ;;  %v2107_v23 = vld [vmem:[%s2188_s28 + $0x18] sm:$0xff] }
 0x912   : > { %v1941_v49 = vpop.permute.xlu0 %1940 }
 0x913   : > { %v1943_v31 = vunpack.i.h.bf16 %v1941_v49  ;;  %v1942_v30 = vunpack.i.l.bf16 %v1941_v49 }
 0x915   : > { %v1692_v57 = vsel %vm1689_vm3, %v1683_v63, %v1942_v30  ;;  %v1693_v58 = vsel %vm1689_vm3, %v1684_v11, %v1943_v31  ;;  %v2110_v63 = vld [vmem:[%s2188_s28 + $0x30] sm:$0xff] }
 0x916   : > { %v1702_v22 = vpack.c.bf16 %v1693_v58, %v1692_v57 }
 0x918   : > { %1880 = vmatmul.msk.bf16.gmra.mxu0 %vm277_vm0, %v1702_v22  ;;  %v2111_v22 = vld [vmem:[%s2188_s28 + $0x38] sm:$0xff] }
 0x93d   : > { %v1735_v45 = vpop.f32.mrf.mxu0 }
 0x93e   : > { %v1736_v0 = vadd.f32 %v2760_v46, %v1735_v45 }
 0x940   : > { %v1755_v21 = vadd.f32 %v2104_v12, %v1736_v0 }
 0x942   : > { %1763 = vst.msk [vmem:[%s2768_s11] sm:$0xff] %vm277_vm0, %v1755_v21 }
 0x945   : > { %v1737_v60 = vpop.f32.mrf.mxu0 }
 0x946   : > { %v1738_v3 = vadd.f32 %v2760_v46, %v1737_v60 }
 0x948   : > { %v1756_v19 = vadd.f32 %v2105_v20, %v1738_v3 }
 0x94a   : > { %1764 = vst.msk [vmem:[%s2768_s11 + $0x8] sm:$0xff] %vm277_vm0, %v1756_v19 }
 0x94c   : > { %v1956_v13 = vpop.permute.xlu1 %1955 }
 0x94d   : > { %v1958_v41 = vunpack.i.h.bf16 %v1956_v13  ;;  %v1957_v25 = vunpack.i.l.bf16 %v1956_v13 }
 0x94f   : > { %v1694_v5 = vsel %vm1689_vm3, %v1685_v56, %v1957_v25  ;;  %v1695_v28 = vsel %vm1689_vm3, %v1686_v47, %v1958_v41 }
 0x950   : > { %v1703_v18 = vpack.c.bf16 %v1695_v28, %v1694_v5 }
 0x952   : > { %1881 = vmatmul.msk.bf16.gmra.mxu0 %vm277_vm0, %v1703_v18 }
 0x954   : > { %v1966_v29 = vpop.permute.xlu1 %1965 }
 0x955   : > { %v1968_v39 = vunpack.i.h.bf16 %v1966_v29  ;;  %v1967_v50 = vunpack.i.l.bf16 %v1966_v29 }
 0x957   : > { %v1687_v7 = vsel %vm1680_vm2, %v1678_v33, %v1967_v50  ;;  %v1688_v37 = vsel %vm1680_vm2, %v1679_v55, %v1968_v39 }
 0x958   : > { %v1971_v14 = vpop.permute.xlu0 %1970 }
 0x959   : > { %v1973_v15 = vunpack.i.h.bf16 %v1971_v14  ;;  %v1972_v16 = vunpack.i.l.bf16 %v1971_v14 }
 0x95b   : > { %v1696_v4 = vsel %vm1689_vm3, %v1687_v7, %v1972_v16  ;;  %v1697_v38 = vsel %vm1689_vm3, %v1688_v37, %v1973_v15 }
 0x95c   : > { %v1704_v17 = vpack.c.bf16 %v1697_v38, %v1696_v4 }
 0x962   : > { %1882 = vmatmul.msk.bf16.gmra.mxu0 %vm277_vm0, %v1704_v17 }
 0x995   : > { %v1740_v36 = vpop.f32.mrf.mxu0 }
 0x996   : > { %v1741_v8 = vadd.f32 %v2760_v46, %v1740_v36 }
 0x998   : > { %v1757_v2 = vadd.f32 %v2106_v42, %v1741_v8 }
 0x99a   : > { %1765 = vst.msk [vmem:[%s2768_s11 + $0x10] sm:$0xff] %vm277_vm0, %v1757_v2 }
 0x99d   : > { %v1742_v6 = vpop.f32.mrf.mxu0 }
 0x99e   : > { %v1743_v1 = vadd.f32 %v2760_v46, %v1742_v6 }
 0x9a0   : > { %v1758_v26 = vadd.f32 %v2107_v23, %v1743_v1 }
 0x9a2   : > { %1766 = vst.msk [vmem:[%s2768_s11 + $0x18] sm:$0xff] %vm277_vm0, %v1758_v26 }
 0x9cf   : > { %v1745_v10 = vpop.f32.mrf.mxu0 }
 0x9d0   : > { %v1746_v32 = vadd.f32 %v2760_v46, %v1745_v10 }
 0x9d2   : > { %v1759_v35 = vadd.f32 %v2108_v34, %v1746_v32 }
 0x9d4   : > { %1767 = vst.msk [vmem:[%s2768_s11 + $0x20] sm:$0xff] %vm277_vm0, %v1759_v35 }
 0x9d7   : > { %v1747_v24 = vpop.f32.mrf.mxu0 }
 0x9d8   : > { %v1748_v49 = vadd.f32 %v2760_v46, %v1747_v24 }
 0x9da   : > { %v1760_v44 = vadd.f32 %v2109_v62, %v1748_v49 }
 0x9dc   : > { %1768 = vst.msk [vmem:[%s2768_s11 + $0x28] sm:$0xff] %vm277_vm0, %v1760_v44 }
 0x9df   : > { %v1750_v31 = vpop.f32.mrf.mxu0 }
 0x9e0   : > { %v1751_v30 = vadd.f32 %v2760_v46, %v1750_v31 }
 0x9e2   : > { %v1761_v11 = vadd.f32 %v2110_v63, %v1751_v30 }
 0x9e4   : > { %1769 = vst.msk [vmem:[%s2768_s11 + $0x30] sm:$0xff] %vm277_vm0, %v1761_v11 }
 0x9e7   : > { %v1752_v57 = vpop.f32.mrf.mxu0 }
 0x9e8   : > { %v1753_v58 = vadd.f32 %v2760_v46, %v1752_v57 }
 0x9ea   : > { %v1762_v45 = vadd.f32 %v2111_v22, %v1753_v58 }
 0x9ec   : > { %1770 = vst.msk [vmem:[%s2768_s11 + $0x38] sm:$0xff] %vm277_vm0, %v1762_v45 }
 0x9ed PF: > { %s16_s21 = sadd.s32 1, %s2118_s21  }
 0x9ee   : > { %p13_p4 = scmp.ge.s32.totalorder %s16_s21, 4  }
 0x9f0   :  { %15 = sbr.rel (!%p13_p4) target bundleno = 1 (0x1), region = 74 }

// kernel: _lambda_.6
= control target key start
LH: loop header
LB: loop body
LE: loop exit
PB: predicated region body
PF: predicated region fallthrough
CT: control target
= control target key end

     0   :  { %s3152_s17 = smov 0   ;;  %s4176_s0 = inlined_call_operand.vmem [shape: f32[2,4,16,16], index: 0, kind: input, shape index: {}]   ;;  %s4177_s1 = inlined_call_operand.vmem [shape: f32[2,4,16,16], index: 1, kind: input, shape index: {}]   ;;  %s4178_s2 = inlined_call_operand.vmem [shape: f32[2,4,16,16], index: 2, kind: input, shape index: {}]   ;;  %s4179_s3 = inlined_call_operand.vmem [shape: f32[4,4,16,16], index: 3, kind: input, shape index: {}]   ;;  %s4180_s4 = inlined_call_operand.vmem [shape: bf16[16,32], index: 4, kind: input, shape index: {}]   ;;  %s4181_s5 = inlined_call_operand.vmem [shape: f32[1,32], index: 5, kind: input, shape index: {}]   ;;  %s4182_s6 = inlined_call_operand.vmem [shape: bf16[16,16], index: 6, kind: input, shape index: {}]   ;;  %s4183_s7 = inlined_call_operand.vmem [shape: f32[1,16], index: 7, kind: input, shape index: {}]   ;;  %s4184_s8 = inlined_call_operand.vmem [shape: bf16[16,16], index: 8, kind: input, shape index: {}]   ;;  %s4185_s9 = inlined_call_operand.vmem [shape: f32[1,16], index: 9, kind: input, shape index: {}]   ;;  %s4186_s10 = inlined_call_operand.vmem [shape: f32[2,4,16,16], index: 10, kind: output, shape index: {0}]   ;;  %s4187_s11 = inlined_call_operand.vmem [shape: f32[2,4,16,16], index: 11, kind: output, shape index: {1}]  }
   0x1 LB: > { %s2682_s18 = sadd.s32 4294967295, %s3080_s17   ;;  %p2686_p0 = scmp.ge.s32.totalorder %s3080_s17, 1  ;;  %s3080_s17 = sphi %s3152_s17, %s22_s17  }
   0x2   : > { %p360_p1 = scmp.lt.s32.totalorder %s3080_s17, 3 }
   0x4   : > { %p361_p2 = pnand %p2686_p0, %p360_p1 }
   0x6   : > { %364 = sbr.rel (%p361_p2) target bundleno = 2552 (0x9f8), region = 60 }
   0xb   : > { %v2784_v0 = vld [vmem:[%s4180_s4] sm:$0xff]  ;;  %p415_p3 = scmp.lt.s32.totalorder %s2682_s18, 1  ;;  %vm481_vm0 = vcmask 130048   ;;  %s3082_s13 = smov 112   ;;  %vm693_vm1 = vcmask 31744   ;;  %vm2307_vm2 = vcmask 97280  }
   0xc   : > { %501 = vmatpush.bf16.msra.mxu0 %v2784_v0  ;;  %2787 = vmatpush.bf16.msra.mxu2 %v2784_v0  ;;  %v3176_v13 = vld [vmem:[%s4181_s5] ss:$0 sm:$0xff]  ;;  %s3083_s16 = smov 124   ;;  %s3084_s22 = smov 108   ;;  %vm2298_vm3 = vcmask 64512  }
   0xd   : > { %s4223_s18 = smov (!%p415_p3, %s2682_s18), 1  ;;  %v2785_v20 = vld [vmem:[%s4182_s6] sm:$0xff]  ;;  %s3085_s19 = smov 104  }
   0xe   : > { %s3163_s21 = sshll.u32 %s4223_s18, 6  ;;  %2788 = vmatpush.bf16.msra.mxu3 %v2785_v20  ;;  %566 = vmatpush.bf16.msra.mxu1 %v2785_v20  ;;  %s3086_s26 = smov 120  }
   0xf   : > { %s419_s24 = scalar_lea.vmem %s4176_s0, %s3163_s21  ;;  %s3183_s29 = scalar_lea.vmem %s4177_s1, %s3163_s21 }
  0x10   : > { %v441_v1 = vld [vmem:[%s419_s24] sm:$0xff]  ;;  %v442_v2 = vld [vmem:[%s419_s24 + $0x8] sm:$0xff]  ;;  %v443_v7 = vld [vmem:[%s419_s24 + $0x10] sm:$0xff]  ;;  %611 = vmatpush.bf16.msrb.mxu2 %v2785_v20  ;;  %s3311_s20 = scalar_lea.vmem %s4178_s2, %s3163_s21  ;;  %s3088_s30 = smov 116  }
  0x11   : > { %v468_v3 = vpack.c.bf16 %v442_v2, %v441_v1  ;;  %v445_v4 = vld [vmem:[%s419_s24 + $0x20] sm:$0xff]  ;;  %v446_v5 = vld [vmem:[%s419_s24 + $0x28] sm:$0xff]  ;;  %v444_v8 = vld [vmem:[%s419_s24 + $0x18] sm:$0xff]  ;;  %s3090_s14 = smov 8   ;;  %s4079_s25 = scalar_lea.vmem %s4186_s10, %s3163_s21 }
  0x12   : > { %v470_v6 = vpack.c.bf16 %v446_v5, %v445_v4  ;;  %v447_v9 = vld [vmem:[%s419_s24 + $0x30] sm:$0xff]  ;;  %v448_v10 = vld [vmem:[%s419_s24 + $0x38] sm:$0xff]  ;;  %v469_v11 = vpack.c.bf16 %v444_v8, %v443_v7  ;;  %v453_v21 = vld [vmem:[%s3183_s29 + $0x20] sm:$0xff]  ;;  %s4111_s28 = scalar_lea.vmem %s4187_s11, %s3163_s21 }
  0x13   : > { %2701 = vmatmul.msk.bf16.vlgmr.msra.gmra.mxu0 %vm481_vm0, %v468_v3  ;;  %v471_v12 = vpack.c.bf16 %v448_v10, %v447_v9  ;;  %v454_v22 = vld [vmem:[%s3183_s29 + $0x28] sm:$0xff]  ;;  %v455_v51 = vld [vmem:[%s3183_s29 + $0x30] sm:$0xff]  ;;  %v456_v52 = vld [vmem:[%s3183_s29 + $0x38] sm:$0xff] }
  0x14   : > { %2703 = vmatmul.msk.bf16.vlgmr.msra.gmra.mxu2 %vm481_vm0, %v470_v6  ;;  %v536_v25 = vpack.c.bf16 %v454_v22, %v453_v21  ;;  %v537_v59 = vpack.c.bf16 %v456_v52, %v455_v51  ;;  %v633_v51 = vld [vmem:[%s4179_s3] sm:$0xff] }
  0x16   : > { %2711 = vmatmul.msk.bf16.vlgmr.msra.gmra.mxu3 %vm481_vm0, %v536_v25 }
  0x23   : > { %2702 = vmatmul.msk.bf16.gmra.mxu0 %vm481_vm0, %v469_v11 }
  0x24   : > { %2704 = vmatmul.msk.bf16.gmra.mxu2 %vm481_vm0, %v471_v12 }
  0x26   : > { %2712 = vmatmul.msk.bf16.gmra.mxu3 %vm481_vm0, %v537_v59 }
  0x90   : > { %v503_v14 = vpop.f32.mrf.mxu0 }
  0x91   : > { %v504_v15 = vadd.f32 %v3176_v13, %v503_v14 }
  0x93   : > { %v523_v16 = vmul.f32 0.5, %v504_v15  ;;  %v673_v23 = vpack.c.bf16 %v504_v15, %v504_v15 }
  0x95   : > { %v665_v26 = vpack.c.bf16 %v523_v16, %v523_v16  ;;  %v688_v30 = vunpack.c.l.b16 %v673_v23 }
  0x97   : > { %v513_v17 = vpop.f32.mrf.mxu2  ;;  %v683_v34 = vunpack.c.l.b16 %v665_v26 }
  0x98   : > { %v505_v18 = vpop.f32.mrf.mxu0  ;;  %v514_v19 = vadd.f32 %v3176_v13, %v513_v17 }
  0x99   : > { %v506_v24 = vadd.f32 %v3176_v13, %v505_v18 }
  0x9a   : > { %v527_v29 = vmul.f32 0.5, %v514_v19  ;;  %v677_v33 = vpack.c.bf16 %v514_v19, %v514_v19 }
  0x9b   : > { %v524_v27 = vmul.f32 0.5, %v506_v24  ;;  %v674_v28 = vpack.c.bf16 %v506_v24, %v506_v24 }
  0x9c   : > { %v669_v39 = vpack.c.bf16 %v527_v29, %v527_v29  ;;  %v753_v42 = vunpack.c.l.b16 %v677_v33  ;;  %v3236_v29 = vld [vmem:[%s4183_s7] ss:$0 sm:$0xff] }
  0x9d   : > { %v666_v31 = vpack.c.bf16 %v524_v27, %v524_v27  ;;  %v689_v32 = vunpack.c.l.b16 %v674_v28 }
  0x9e   : > { %v748_v46 = vunpack.c.l.b16 %v669_v39 }
  0x9f   : > { %v684_v35 = vunpack.c.l.b16 %v666_v31  ;;  %v3193_v36 = vpack.c.b16 %v689_v32, %v688_v30  ;;  %v515_v37 = vpop.f32.mrf.mxu2  ;;  %v578_v30 = vpop.f32.mrf.mxu3 }
  0xa0   : > { %v508_v38 = vpop.f32.mrf.mxu0  ;;  %v516_v40 = vadd.f32 %v3176_v13, %v515_v37  ;;  %v579_v31 = vadd.f32 %v3236_v29, %v578_v30 }
  0xa1   : > { %v3196_v41 = vpack.c.b16 %v684_v35, %v683_v34  ;;  %691 = vrot.lane.b32.xlu0 %v3193_v36, %s3082_s13  ;;  %v509_v45 = vadd.f32 %v3176_v13, %v508_v38 }
  0xa2   : > { %v528_v43 = vmul.f32 0.5, %v516_v40  ;;  %v678_v44 = vpack.c.bf16 %v516_v40, %v516_v40  ;;  %v910_v32 = vpack.c.bf16 %v579_v31, %v579_v31  ;;  %v459_v31 = vld [vmem:[%s3311_s20 + $0x10] sm:$0xff] }
  0xa3   : > { %v525_v53 = vmul.f32 0.5, %v509_v45  ;;  %v675_v57 = vpack.c.bf16 %v509_v45, %v509_v45 }
  0xa4   : > { %v670_v47 = vpack.c.bf16 %v528_v43, %v528_v43  ;;  %v754_v48 = vunpack.c.l.b16 %v678_v44  ;;  %v977_v35 = vunpack.c.l.b16 %v910_v32  ;;  %v460_v32 = vld [vmem:[%s3311_s20 + $0x18] sm:$0xff] }
  0xa5   : > { %v667_v61 = vpack.c.bf16 %v525_v53, %v525_v53  ;;  %v721_v1 = vunpack.c.l.b16 %v675_v57 }
  0xa6   : > { %v749_v49 = vunpack.c.l.b16 %v670_v47  ;;  %v3201_v50 = vpack.c.b16 %v754_v48, %v753_v42 }
  0xa7   : > { %v518_v54 = vpop.f32.mrf.mxu2  ;;  %v716_v5 = vunpack.c.l.b16 %v667_v61  ;;  %v580_v33 = vpop.f32.mrf.mxu3 }
  0xa8   : > { %v510_v55 = vpop.f32.mrf.mxu0  ;;  %v3205_v56 = vpack.c.b16 %v749_v49, %v748_v46  ;;  %756 = vrot.lane.b32.xlu1 %v3201_v50, %s3082_s13  ;;  %v519_v60 = vadd.f32 %v3176_v13, %v518_v54  ;;  %v581_v34 = vadd.f32 %v3236_v29, %v580_v33  ;;  %v589_v33 = vpack.c.bf16 %v460_v32, %v459_v31 }
  0xa9   : > { %v511_v58 = vadd.f32 %v3176_v13, %v510_v55  ;;  %v634_v55 = vld [vmem:[%s4179_s3 + $0x8] sm:$0xff] }
  0xaa   : > { %v529_v0 = vmul.f32 0.5, %v519_v60  ;;  %v679_v4 = vpack.c.bf16 %v519_v60, %v519_v60  ;;  %v911_v37 = vpack.c.bf16 %v581_v34, %v581_v34  ;;  %v641_v60 = vld [vmem:[%s4179_s3 + $0x40] sm:$0xff]  ;;  %v451_v34 = vld [vmem:[%s3183_s29 + $0x10] sm:$0xff] }
  0xab   : > { %v526_v62 = vmul.f32 0.5, %v511_v58  ;;  %v676_v63 = vpack.c.bf16 %v511_v58, %v511_v58 }
  0xac   : > { %v671_v9 = vpack.c.bf16 %v529_v0, %v529_v0  ;;  %v785_v12 = vunpack.c.l.b16 %v679_v4  ;;  %v978_v38 = vunpack.c.l.b16 %v911_v37  ;;  %v642_v0 = vld [vmem:[%s4179_s3 + $0x48] sm:$0xff]  ;;  %v649_v4 = vld [vmem:[%s4179_s3 + $0x80] sm:$0xff] }
  0xad   : > { %v668_v2 = vpack.c.bf16 %v526_v62, %v526_v62  ;;  %v722_v3 = vunpack.c.l.b16 %v676_v63 }
  0xae   : > { %v780_v16 = vunpack.c.l.b16 %v671_v9  ;;  %v3240_v39 = vpack.c.b16 %v978_v38, %v977_v35  ;;  %v650_v9 = vld [vmem:[%s4179_s3 + $0x88] sm:$0xff]  ;;  %v452_v35 = vld [vmem:[%s3183_s29 + $0x18] sm:$0xff] }
  0xaf   : > { %v717_v6 = vunpack.c.l.b16 %v668_v2  ;;  %v3212_v7 = vpack.c.b16 %v722_v3, %v721_v1  ;;  %v520_v8 = vpop.f32.mrf.mxu2  ;;  %v583_v40 = vpop.f32.mrf.mxu3  ;;  %v535_v37 = vpack.c.bf16 %v452_v35, %v451_v34 }
  0xb0   : > { %v521_v10 = vadd.f32 %v3176_v13, %v520_v8  ;;  %991 = vmatpush.bf16.msra.mxu2 %v3240_v39  ;;  %v584_v42 = vadd.f32 %v3236_v29, %v583_v40  ;;  %v461_v40 = vld [vmem:[%s3311_s20 + $0x20] sm:$0xff] }
  0xb1   : > { %v3215_v11 = vpack.c.b16 %v717_v6, %v716_v5  ;;  %724 = vrot.lane.b32.xlu0 %v3212_v7, %s3082_s13 }
  0xb2   : > { %v530_v14 = vmul.f32 0.5, %v521_v10  ;;  %v680_v15 = vpack.c.bf16 %v521_v10, %v521_v10  ;;  %v912_v43 = vpack.c.bf16 %v584_v42, %v584_v42  ;;  %v462_v42 = vld [vmem:[%s3311_s20 + $0x28] sm:$0xff] }
  0xb4   : > { %v672_v17 = vpack.c.bf16 %v530_v14, %v530_v14  ;;  %v786_v18 = vunpack.c.l.b16 %v680_v15  ;;  %v1005_v46 = vunpack.c.l.b16 %v912_v43  ;;  %v657_v15 = vld [vmem:[%s4179_s3 + $0xc0] sm:$0xff] }
  0xb6   : > { %v781_v19 = vunpack.c.l.b16 %v672_v17  ;;  %v3219_v20 = vpack.c.b16 %v786_v18, %v785_v12 }
  0xb7   : > { %v585_v44 = vpop.f32.mrf.mxu3 }
  0xb8   : > { %v3221_v21 = vpack.c.b16 %v781_v19, %v780_v16  ;;  %788 = vrot.lane.b32.xlu1 %v3219_v20, %s3082_s13  ;;  %v586_v45 = vadd.f32 %v3236_v29, %v585_v44  ;;  %v658_v19 = vld [vmem:[%s4179_s3 + $0xc8] sm:$0xff]  ;;  %v590_v44 = vpack.c.bf16 %v462_v42, %v461_v40  ;;  %s3089_s13 = smov 4  }
  0xba   : > { %v913_v47 = vpack.c.bf16 %v586_v45, %v586_v45 }
  0xbc   : > { %v1006_v48 = vunpack.c.l.b16 %v913_v47 }
  0xbe   : > { %v3247_v49 = vpack.c.b16 %v1006_v48, %v1005_v46 }
 0x113   : > { %v692_v13 = vpop.permute.xlu0 %691 }
 0x114   : > { %v698_v22 = vsel %vm693_vm1, %v692_v13, 0 }
 0x115   : > { %707 = vmatpush.bf16.xpose.msrb.mxu3 %v698_v22 }
 0x11a   : > { %v757_v23 = vpop.permute.xlu1 %756 }
 0x11b   : > { %v762_v25 = vsel %vm693_vm1, %v757_v23, 0 }
 0x11c   : > { %2717 = vmatmul.msk.bf16.vlgmr.msrb.gmra.mxu3 %vm693_vm1, %v3196_v41 }
 0x123   : > { %v725_v24 = vpop.permute.xlu0 %724 }
 0x124   : > { %v730_v26 = vsel %vm693_vm1, %v725_v24, 0  ;;  %v457_v24 = vld [vmem:[%s3311_s20] sm:$0xff] }
 0x125   : > { %739 = vmatpush.bf16.xpose.msra.mxu3 %v730_v26 }
 0x12a   : > { %v789_v27 = vpop.permute.xlu1 %788 }
 0x12b   : > { %v794_v28 = vsel %vm693_vm1, %v789_v27, 0  ;;  %v449_v27 = vld [vmem:[%s3183_s29] sm:$0xff] }
 0x12c   : > { %2718 = vmatmul.msk.bf16.vlgmr.msra.gmra.mxu3 %vm693_vm1, %v3215_v11 }
 0x12d   : > { %771 = vmatpush.bf16.xpose.msrb.mxu3 %v762_v25  ;;  %v458_v25 = vld [vmem:[%s3311_s20 + $0x8] sm:$0xff] }
 0x12e   : > { %v588_v26 = vpack.c.bf16 %v458_v25, %v457_v24 }
 0x130   : > { %2713 = vmatmul.msk.bf16.vlgmr.msrb.gmra.mxu2 %vm481_vm0, %v588_v26 }
 0x135   : > { %803 = vmatpush.bf16.xpose.msra.mxu3 %v794_v28  ;;  %v450_v28 = vld [vmem:[%s3183_s29 + $0x8] sm:$0xff] }
 0x136   : > { %v534_v30 = vpack.c.bf16 %v450_v28, %v449_v27 }
 0x138   : > { %2709 = vmatmul.msk.bf16.vlgmr.msra.gmra.mxu1 %vm481_vm0, %v534_v30 }
 0x13c   : > { %2719 = vmatmul.msk.bf16.vlgmr.msrb.gmra.mxu3 %vm693_vm1, %v3205_v56 }
 0x13d   : > { %1019 = vmatpush.bf16.msrb.mxu3 %v3247_v49 }
 0x140   : > { %2714 = vmatmul.msk.bf16.gmra.mxu2 %vm481_vm0, %v589_v33 }
 0x148   : > { %2710 = vmatmul.msk.bf16.gmra.mxu1 %vm481_vm0, %v535_v37 }
 0x14c   : > { %2720 = vmatmul.msk.bf16.vlgmr.msra.gmra.mxu3 %vm693_vm1, %v3221_v21 }
 0x150   : > { %2715 = vmatmul.msk.bf16.gmra.mxu2 %vm481_vm0, %v590_v44 }
 0x19f   : > { %v709_v52 = vpop.f32.mrf.mxu3 }
 0x1a0   : > { %v710_v53 = vadd.f32 %v709_v52, %v633_v51 }
 0x1a2   : > { %v810_v54 = vsel %vm481_vm0, %v710_v53, -inf }
 0x1a3   : > { %811 = vmax.xlane.f32.xlu2 %v810_v54 }
 0x1a7   : > { %v711_v57 = vpop.f32.mrf.mxu3 }
 0x1a8   : > { %v3259_v58 = vadd.f32 %v711_v57, %v634_v55 }
 0x1aa   : > { %v813_v59 = vsel %vm481_vm0, %v3259_v58, -inf }
 0x1ab   : > { %814 = vmax.xlane.f32.xlu2 %v813_v59 }
 0x1af   : > { %v741_v61 = vpop.f32.mrf.mxu3 }
 0x1b0   : > { %v3266_v62 = vadd.f32 %v741_v61, %v641_v60 }
 0x1b2   : > { %v816_v63 = vsel %vm481_vm0, %v3266_v62, -inf }
 0x1b3   : > { %817 = vmax.xlane.f32.xlu2 %v816_v63  ;;  %v613_v32 = vpop.f32.mrf.mxu2 }
 0x1b4   : > { %v614_v40 = vadd.f32 %v3236_v29, %v613_v32 }
 0x1b5   : > { %v568_v31 = vpop.f32.mrf.mxu1 }
 0x1b7   : > { %v743_v1 = vpop.f32.mrf.mxu3 }
 0x1b8   : > { %v3273_v2 = vadd.f32 %v743_v1, %v642_v0 }
 0x1ba   : > { %v819_v3 = vsel %vm481_vm0, %v3273_v2, -inf }
 0x1bb   : > { %820 = vmax.xlane.f32.xlu2 %v819_v3  ;;  %v615_v42 = vpop.f32.mrf.mxu2 }
 0x1bd   : > { %v570_v34 = vpop.f32.mrf.mxu1 }
 0x1be   : > { %v571_v35 = vadd.f32 %v3236_v29, %v570_v34 }
 0x1bf   : > { %v773_v5 = vpop.f32.mrf.mxu3 }
 0x1c0   : > { %v3280_v6 = vadd.f32 %v773_v5, %v649_v4 }
 0x1c2   : > { %v822_v8 = vsel %vm481_vm0, %v3280_v6, -inf }
 0x1c3   : > { %823 = vmax.xlane.f32.xlu0 %v822_v8 }
 0x1c7   : > { %v775_v10 = vpop.f32.mrf.mxu3 }
 0x1c8   : > { %v3287_v12 = vadd.f32 %v775_v10, %v650_v9  ;;  %v463_v9 = vld [vmem:[%s3311_s20 + $0x30] sm:$0xff]  ;;  %v464_v10 = vld [vmem:[%s3311_s20 + $0x38] sm:$0xff] }
 0x1ca   : > { %v825_v14 = vsel %vm481_vm0, %v3287_v12, -inf }
 0x1cb   : > { %826 = vmax.xlane.f32.xlu1 %v825_v14  ;;  %v591_v14 = vpack.c.bf16 %v464_v10, %v463_v9 }
 0x1cd   : > { %2716 = vmatmul.msk.bf16.gmra.mxu2 %vm481_vm0, %v591_v14 }
 0x1cf   : > { %v805_v16 = vpop.f32.mrf.mxu3 }
 0x1d0   : > { %v3294_v17 = vadd.f32 %v805_v16, %v657_v15 }
 0x1d2   : > { %v828_v18 = vsel %vm481_vm0, %v3294_v17, -inf }
 0x1d3   : > { %829 = vmax.xlane.f32.xlu2 %v828_v18 }
 0x1d7   : > { %v807_v13 = vpop.f32.mrf.mxu3 }
 0x1d8   : > { %v3301_v22 = vadd.f32 %v807_v13, %v658_v19 }
 0x1da   : > { %v831_v23 = vsel %vm481_vm0, %v3301_v22, -inf }
 0x1db   : > { %832 = vmax.xlane.f32.xlu2 %v831_v23 }
 0x1e4   : > { %1114 = vrot.lane.b32.xlu1 %v3196_v41, %s3083_s16 }
 0x216   : > { %v812_v38 = vpop.xlane.xlu2 %811 }
 0x217   : > { %v834_v43 = vsub.f32 %v710_v53, %v812_v38  ;;  %v907_v38 = vpack.c.bf16 %v571_v35, %v571_v35 }
 0x219   : > { %v842_v45 = vmul.f32 1.442695, %v834_v43  ;;  %v922_v43 = vunpack.c.l.b16 %v907_v38 }
 0x21b   : > { %2930 = vpow2.f32 %v842_v45  ;;  %v1026_v45 = vpack.c.bf16 %v614_v40, %v614_v40 }
 0x21e   : > { %v815_v46 = vpop.xlane.xlu2 %814 }
 0x21f   : > { %v835_v47 = vsub.f32 %v3259_v58, %v815_v46  ;;  %v573_v46 = vpop.f32.mrf.mxu1 }
 0x221   : > { %v3329_v48 = vpop.eup %2930  ;;  %v844_v51 = vmul.f32 1.442695, %v835_v47  ;;  %v616_v47 = vadd.f32 %v3236_v29, %v615_v42 }
 0x222   : > { %v858_v52 = vsel %vm481_vm0, %v3329_v48, 0.0 }
 0x223   : > { %2932 = vpow2.f32 %v844_v51  ;;  %859 = vadd.xlane.f32.xlu2 %v858_v52  ;;  %v574_v51 = vadd.f32 %v3236_v29, %v573_v46  ;;  %v1036_v52 = vunpack.c.l.b16 %v1026_v45 }
 0x226   : > { %v818_v54 = vpop.xlane.xlu2 %817 }
 0x227   : > { %v836_v55 = vsub.f32 %v3266_v62, %v818_v54  ;;  %v1027_v54 = vpack.c.bf16 %v616_v47, %v616_v47 }
 0x229   : > { %v3334_v53 = vpop.eup %2932  ;;  %v846_v57 = vmul.f32 1.442695, %v836_v55  ;;  %v618_v55 = vpop.f32.mrf.mxu2 }
 0x22a   : > { %v861_v59 = vsel %vm481_vm0, %v3334_v53, 0.0 }
 0x22b   : > { %2934 = vpow2.f32 %v846_v57  ;;  %862 = vadd.xlane.f32.xlu2 %v861_v59  ;;  %v1037_v57 = vunpack.c.l.b16 %v1027_v54  ;;  %v908_v59 = vpack.c.bf16 %v574_v51, %v574_v51 }
 0x22e   : > { %v821_v58 = vpop.xlane.xlu2 %820 }
 0x22f   : > { %v837_v60 = vsub.f32 %v3273_v2, %v821_v58  ;;  %v3394_v58 = vpack.c.b16 %v1037_v57, %v1036_v52 }
 0x231   : > { %v3339_v61 = vpop.eup %2934  ;;  %v848_v63 = vmul.f32 1.442695, %v837_v60  ;;  %v575_v60 = vpop.f32.mrf.mxu1 }
 0x232   : > { %v864_v0 = vsel %vm481_vm0, %v3339_v61, 0.0 }
 0x233   : > { %2936 = vpow2.f32 %v848_v63  ;;  %865 = vadd.xlane.f32.xlu2 %v864_v0  ;;  %v576_v63 = vadd.f32 %v3236_v29, %v575_v60  ;;  %v949_v0 = vunpack.c.l.b16 %v908_v59 }
 0x236   : > { %v824_v62 = vpop.xlane.xlu0 %823 }
 0x237   : > { %v838_v1 = vsub.f32 %v3280_v6, %v824_v62  ;;  %v909_v62 = vpack.c.bf16 %v576_v63, %v576_v63 }
 0x239   : > { %v3344_v3 = vpop.eup %2936  ;;  %v850_v4 = vmul.f32 1.442695, %v838_v1  ;;  %v619_v1 = vadd.f32 %v3236_v29, %v618_v55 }
 0x23a   : > { %v867_v5 = vsel %vm481_vm0, %v3344_v3, 0.0 }
 0x23b   : > { %2938 = vpow2.f32 %v850_v4  ;;  %868 = vadd.xlane.f32.xlu0 %v867_v5  ;;  %v620_v4 = vpop.f32.mrf.mxu2  ;;  %v950_v5 = vunpack.c.l.b16 %v909_v62  ;;  %v1028_v9 = vpack.c.bf16 %v619_v1, %v619_v1 }
 0x23c   : > { %v621_v10 = vadd.f32 %v3236_v29, %v620_v4 }
 0x23d   : > { %v1056_v14 = vunpack.c.l.b16 %v1028_v9 }
 0x23e   : > { %v827_v2 = vpop.xlane.xlu1 %826 }
 0x23f   : > { %v839_v8 = vsub.f32 %v3287_v12, %v827_v2 }
 0x241   : > { %v3351_v15 = vpop.eup %2938  ;;  %v852_v16 = vmul.f32 1.442695, %v839_v8  ;;  %v3401_v8 = vpack.c.b16 %v950_v5, %v949_v0 }
 0x242   : > { %v870_v6 = vsel %vm481_vm0, %v3351_v15, 0.0 }
 0x243   : > { %2940 = vpow2.f32 %v852_v16  ;;  %871 = vadd.xlane.f32.xlu0 %v870_v6  ;;  %963 = vmatpush.bf16.msrb.mxu1 %v3401_v8  ;;  %v1029_v16 = vpack.c.bf16 %v621_v10, %v621_v10  ;;  %v623_v6 = vpop.f32.mrf.mxu2 }
 0x246   : > { %v830_v18 = vpop.xlane.xlu2 %829 }
 0x247   : > { %v840_v19 = vsub.f32 %v3294_v17, %v830_v18 }
 0x249   : > { %v3357_v13 = vpop.eup %2940  ;;  %v854_v23 = vmul.f32 1.442695, %v840_v19  ;;  %v1057_v19 = vunpack.c.l.b16 %v1029_v16 }
 0x24a   : > { %v873_v12 = vsel %vm481_vm0, %v3357_v13, 0.0 }
 0x24b   : > { %2942 = vpow2.f32 %v854_v23  ;;  %874 = vadd.xlane.f32.xlu1 %v873_v12  ;;  %1164 = vrot.lane.b32.xlu2 %v3201_v50, %s3084_s22  ;;  %v3405_v12 = vpack.c.b16 %v1057_v19, %v1056_v14 }
 0x24d   : > { %1067 = vmatpush.bf16.msra.mxu1 %v3405_v12 }
 0x24e   : > { %v833_v17 = vpop.xlane.xlu2 %832 }
 0x24f   : > { %v841_v26 = vsub.f32 %v3301_v22, %v833_v17  ;;  %v569_v22 = vadd.f32 %v3236_v29, %v568_v31  ;;  %v624_v17 = vadd.f32 %v3236_v29, %v623_v6 }
 0x251   : > { %v3363_v24 = vpop.eup %2942  ;;  %v856_v27 = vmul.f32 1.442695, %v841_v26  ;;  %v906_v33 = vpack.c.bf16 %v569_v22, %v569_v22  ;;  %v1030_v26 = vpack.c.bf16 %v624_v17, %v624_v17 }
 0x252   : > { %v876_v25 = vsel %vm481_vm0, %v3363_v24, 0.0 }
 0x253   : > { %877 = vadd.xlane.f32.xlu1 %v876_v25  ;;  %2944 = vpow2.f32 %v856_v27  ;;  %v921_v37 = vunpack.c.l.b16 %v906_v33  ;;  %v625_v27 = vpop.f32.mrf.mxu2  ;;  %v1076_v34 = vunpack.c.l.b16 %v1030_v26 }
 0x254   : > { %v626_v31 = vadd.f32 %v3236_v29, %v625_v27 }
 0x255   : > { %v3387_v44 = vpack.c.b16 %v922_v43, %v921_v37 }
 0x256   : > { %v1031_v35 = vpack.c.bf16 %v626_v31, %v626_v31  ;;  %v1115_v51 = vpop.permute.xlu1 %1114 }
 0x257   : > { %1116 = vrot.lane.b32.xlu0 %v3193_v36, %s3084_s22  ;;  %935 = vmatpush.bf16.msrb.mxu0 %v3387_v44 }
 0x258   : > { %v1077_v38 = vunpack.c.l.b16 %v1031_v35 }
 0x259   : > { %v3376_v28 = vpop.eup %2944 }
 0x25a   : > { %v879_v30 = vsel %vm481_vm0, %v3376_v28, 0.0  ;;  %v3412_v42 = vpack.c.b16 %v1077_v38, %v1076_v34 }
 0x25b   : > { %1047 = vmatpush.bf16.msra.mxu0 %v3394_v58  ;;  %v628_v4 = vpop.f32.mrf.mxu2 }
 0x25c   : > { %1087 = vmatpush.bf16.msrb.mxu2 %v3412_v42  ;;  %v629_v10 = vadd.f32 %v3236_v29, %v628_v4 }
 0x25f   : > { %1140 = vrot.lane.b32.xlu0 %v3212_v7, %s3084_s22 }
 0x267   : > { %1138 = vrot.lane.b32.xlu0 %v3215_v11, %s3083_s16 }
 0x26c   : > { %1162 = vrot.lane.b32.xlu1 %v3205_v56, %s3083_s16 }
 0x274   : > { %1186 = vrot.lane.b32.xlu1 %v3221_v21, %s3083_s16  ;;  %880 = vadd.xlane.f32.xlu2 %v879_v30 }
 0x27c   : > { %1361 = vrot.lane.b32.xlu1 %v3240_v39, %s3083_s16 }
 0x28c   : > { %1188 = vrot.lane.b32.xlu2 %v3219_v20, %s3084_s22 }
 0x294   : > { %1311 = vrot.lane.b32.xlu2 %v3387_v44, %s3083_s16 }
 0x296   : > { %v860_v2 = vpop.xlane.xlu2 %859 }
 0x297   : > { %2946 = vrcp.f32 %v860_v2 }
 0x29d   : > { %v2947_v23 = vpop.eup %2946 }
 0x29e   : > { %v863_v18 = vpop.xlane.xlu2 %862  ;;  %v890_v25 = vmul.f32 %v2947_v23, %v3329_v48  ;;  %v1032_v23 = vpack.c.bf16 %v629_v10, %v629_v10 }
 0x29f   : > { %2948 = vrcp.f32 %v863_v18 }
 0x2a0   : > { %v898_v22 = vpack.c.bf16 %v890_v25, %v890_v25  ;;  %v1096_v26 = vunpack.c.l.b16 %v1032_v23 }
 0x2a2   : > { %v916_v40 = vunpack.c.l.b16 %v898_v22 }
 0x2a5   : > { %v2949_v30 = vpop.eup %2948 }
 0x2a6   : > { %v891_v32 = vmul.f32 %v2949_v30, %v3334_v53  ;;  %v866_v33 = vpop.xlane.xlu2 %865 }
 0x2a7   : > { %2950 = vrcp.f32 %v866_v33 }
 0x2a8   : > { %v899_v37 = vpack.c.bf16 %v891_v32, %v891_v32 }
 0x2aa   : > { %v917_v48 = vunpack.c.l.b16 %v899_v37 }
 0x2ac   : > { %v918_v43 = vpack.c.b16 %v917_v48, %v916_v40 }
 0x2ad   : > { %v2951_v46 = vpop.eup %2950 }
 0x2ae   : > { %v869_v45 = vpop.xlane.xlu0 %868  ;;  %2721 = vmatmul.msk.bf16.vlgmr.msrb.gmra.mxu0 %vm481_vm0, %v918_v43  ;;  %v892_v53 = vmul.f32 %v2951_v46, %v3339_v61  ;;  %v1165_v18 = vpop.permute.xlu2 %1164 }
 0x2af   : > { %2952 = vrcp.f32 %v869_v45  ;;  %v1170_v25 = vsel %vm693_vm1, %v1165_v18, 0 }
 0x2b0   : > { %v900_v52 = vpack.c.bf16 %v892_v53, %v892_v53 }
 0x2b2   : > { %v944_v59 = vunpack.c.l.b16 %v900_v52 }
 0x2b5   : > { %v2953_v47 = vpop.eup %2952 }
 0x2b6   : > { %v893_v54 = vmul.f32 %v2953_v47, %v3344_v3  ;;  %v872_v55 = vpop.xlane.xlu0 %871 }
 0x2b7   : > { %2954 = vrcp.f32 %v872_v55 }
 0x2b8   : > { %v901_v57 = vpack.c.bf16 %v893_v54, %v893_v54 }
 0x2ba   : > { %v945_v60 = vunpack.c.l.b16 %v901_v57 }
 0x2bc   : > { %v946_v63 = vpack.c.b16 %v945_v60, %v944_v59 }
 0x2bd   : > { %v2955_v62 = vpop.eup %2954 }
 0x2be   : > { %v875_v0 = vpop.xlane.xlu1 %874  ;;  %2722 = vmatmul.msk.bf16.vlgmr.msrb.gmra.mxu1 %vm481_vm0, %v946_v63  ;;  %2725 = vmatmul.msk.bf16.vlgmr.msra.gmra.mxu0 %vm481_vm0, %v918_v43  ;;  %v894_v61 = vmul.f32 %v2955_v62, %v3351_v15  ;;  %v630_v15 = vpop.f32.mrf.mxu2  ;;  %v635_v62 = vld [vmem:[%s4179_s3 + $0x10] sm:$0xff] }
 0x2bf   : > { %2956 = vrcp.f32 %v875_v0 }
 0x2c0   : > { %v902_v5 = vpack.c.bf16 %v894_v61, %v894_v61 }
 0x2c2   : > { %v972_v14 = vunpack.c.l.b16 %v902_v5 }
 0x2c5   : > { %v2957_v1 = vpop.eup %2956 }
 0x2c6   : > { %v895_v3 = vmul.f32 %v2957_v1, %v3357_v13  ;;  %v631_v13 = vadd.f32 %v3236_v29, %v630_v15  ;;  %v878_v32 = vpop.xlane.xlu1 %877 }
 0x2c7   : > { %2958 = vrcp.f32 %v878_v32 }
 0x2c8   : > { %v903_v2 = vpack.c.bf16 %v895_v3, %v895_v3  ;;  %v1033_v27 = vpack.c.bf16 %v631_v13, %v631_v13 }
 0x2c9   : > { %v1117_v9 = vpop.permute.xlu0 %1116 }
 0x2ca   : > { %v973_v16 = vunpack.c.l.b16 %v903_v2  ;;  %v1122_v6 = vsel %vm693_vm1, %v1117_v9, 0  ;;  %v1097_v31 = vunpack.c.l.b16 %v1033_v27  ;;  %v636_v2 = vld [vmem:[%s4179_s3 + $0x18] sm:$0xff] }
 0x2cb   : > { %1131 = vmatpush.bf16.xpose.msrb.mxu0 %v1122_v6  ;;  %v643_v6 = vld [vmem:[%s4179_s3 + $0x50] sm:$0xff] }
 0x2cc   : > { %v974_v19 = vpack.c.b16 %v973_v16, %v972_v14  ;;  %v3430_v22 = vpack.c.b16 %v1097_v31, %v1096_v26 }
 0x2cd   : > { %v2959_v37 = vpop.eup %2958 }
 0x2ce   : > { %2723 = vmatmul.msk.bf16.vlgmr.msra.gmra.mxu2 %vm481_vm0, %v974_v19  ;;  %2726 = vmatmul.msk.bf16.vlgmr.msra.gmra.mxu1 %vm481_vm0, %v946_v63  ;;  %v896_v38 = vmul.f32 %v2959_v37, %v3363_v24 }
 0x2cf   : > { %1179 = vmatpush.bf16.xpose.msra.mxu2 %v1170_v25  ;;  %1107 = vmatpush.bf16.msra.mxu3 %v3430_v22  ;;  %v644_v25 = vld [vmem:[%s4179_s3 + $0x58] sm:$0xff] }
 0x2d0   : > { %v904_v43 = vpack.c.bf16 %v896_v38, %v896_v38 }
 0x2d1   : > { %v1141_v17 = vpop.permute.xlu0 %1140 }
 0x2d2   : > { %v1146_v30 = vsel %vm693_vm1, %v1141_v17, 0  ;;  %2729 = vmatmul.msk.bf16.vlgmr.msrb.gmra.mxu0 %vm693_vm1, %v1115_v51  ;;  %v1000_v47 = vunpack.c.l.b16 %v904_v43 }
 0x2d3   : > { %1155 = vmatpush.bf16.xpose.msrb.mxu1 %v1146_v30  ;;  %v651_v30 = vld [vmem:[%s4179_s3 + $0x90] sm:$0xff] }
 0x2d9   : > { %v1139_v33 = vpop.permute.xlu0 %1138 }
 0x2de   : > { %2727 = vmatmul.msk.bf16.vlgmr.msrb.gmra.mxu2 %vm481_vm0, %v974_v19  ;;  %v1163_v34 = vpop.permute.xlu1 %1162  ;;  %2730 = vmatmul.msk.bf16.vlgmr.msrb.gmra.mxu1 %vm693_vm1, %v1139_v33 }
 0x2e6   : > { %v1187_v29 = vpop.permute.xlu1 %1186 }
 0x2e7   : > { %v881_v35 = vpop.xlane.xlu2 %880 }
 0x2e8   : > { %2960 = vrcp.f32 %v881_v35 }
 0x2ee   : > { %v2961_v40 = vpop.eup %2960  ;;  %v1362_v48 = vpop.permute.xlu1 %1361  ;;  %2731 = vmatmul.msk.bf16.vlgmr.msra.gmra.mxu2 %vm693_vm1, %v1163_v34  ;;  %v652_v34 = vld [vmem:[%s4179_s3 + $0x98] sm:$0xff] }
 0x2ef   : > { %v897_v45 = vmul.f32 %v2961_v40, %v3376_v28  ;;  %1374 = vmatpush.bf16.msrb.mxu2 %v1362_v48  ;;  %v1189_v46 = vpop.permute.xlu2 %1188 }
 0x2f0   : > { %v1194_v54 = vsel %vm693_vm1, %v1189_v46, 0 }
 0x2f1   : > { %v905_v53 = vpack.c.bf16 %v897_v45, %v897_v45  ;;  %v659_v45 = vld [vmem:[%s4179_s3 + $0xd0] sm:$0xff] }
 0x2f3   : > { %v1001_v51 = vunpack.c.l.b16 %v905_v53 }
 0x2f5   : > { %v1002_v52 = vpack.c.b16 %v1001_v51, %v1000_v47  ;;  %v660_v51 = vld [vmem:[%s4179_s3 + $0xd8] sm:$0xff] }
 0x2f7   : > { %2724 = vmatmul.msk.bf16.vlgmr.msrb.gmra.mxu3 %vm481_vm0, %v1002_v52  ;;  %v1312_v55 = vpop.permute.xlu2 %1311 }
 0x2f8   : > { %1203 = vmatpush.bf16.xpose.msrb.mxu3 %v1194_v54  ;;  %1324 = vmatpush.bf16.msra.mxu0 %v1312_v55 }
 0x307   : > { %2728 = vmatmul.msk.bf16.vlgmr.msra.gmra.mxu3 %vm481_vm0, %v1002_v52 }
 0x317   : > { %2732 = vmatmul.msk.bf16.vlgmr.msrb.gmra.mxu3 %vm693_vm1, %v1187_v29 }
 0x32b   : > { %v3442_v24 = vpop.f32.mrf.mxu0 }
 0x333   : > { %v3444_v28 = vpop.f32.mrf.mxu0 }
 0x33b   : > { %v3446_v57 = vpop.f32.mrf.mxu1  ;;  %v3448_v59 = vpop.f32.mrf.mxu0 }
 0x343   : > { %v3450_v60 = vpop.f32.mrf.mxu1  ;;  %v3452_v63 = vpop.f32.mrf.mxu0 }
 0x34b   : > { %v3454_v0 = vpop.f32.mrf.mxu1 }
 0x34c   : > { %4188 = vst [vmem:[#allocation2_spill] sm:$0xff] %v3454_v0 }
 0x34f   : > { %v1133_v61 = vpop.f32.mrf.mxu0 }
 0x350   : > { %v1134_v1 = vadd.f32 %v1133_v61, %v635_v62 }
 0x351   : > { %v3459_v4 = vpop.f32.mrf.mxu2 }
 0x352   : > { %4189 = vst [vmem:[#allocation3_spill] sm:$0xff] %v3459_v4  ;;  %v1210_v5 = vsel %vm481_vm0, %v1134_v1, -inf }
 0x353   : > { %1211 = vmax.xlane.f32.xlu0 %v1210_v5  ;;  %v3462_v3 = vpop.f32.mrf.mxu1 }
 0x357   : > { %v1135_v9 = vpop.f32.mrf.mxu0 }
 0x358   : > { %v1136_v10 = vadd.f32 %v1135_v9, %v636_v2 }
 0x359   : > { %v3467_v14 = vpop.f32.mrf.mxu2 }
 0x35a   : > { %4190 = vst [vmem:[#allocation4_spill] sm:$0xff] %v3467_v14  ;;  %v1213_v16 = vsel %vm481_vm0, %v1136_v10, -inf }
 0x35b   : > { %1214 = vmax.xlane.f32.xlu2 %v1213_v16  ;;  %v1157_v18 = vpop.f32.mrf.mxu1 }
 0x35c   : > { %v1158_v19 = vadd.f32 %v1157_v18, %v643_v6 }
 0x35e   : > { %v1216_v15 = vsel %vm481_vm0, %v1158_v19, -inf }
 0x361   : > { %v3473_v23 = vpop.f32.mrf.mxu2 }
 0x362   : > { %4191 = vst [vmem:[#allocation5_spill] sm:$0xff] %v3473_v23 }
 0x363   : > { %v1159_v13 = vpop.f32.mrf.mxu1  ;;  %1217 = vmax.xlane.f32.xlu2 %v1216_v15 }
 0x364   : > { %v1160_v17 = vadd.f32 %v1159_v13, %v644_v25 }
 0x366   : > { %v1219_v26 = vsel %vm481_vm0, %v1160_v17, -inf }
 0x367   : > { %1220 = vmax.xlane.f32.xlu1 %v1219_v26 }
 0x369   : > { %v3480_v27 = vpop.f32.mrf.mxu2 }
 0x36a   : > { %4192 = vst [vmem:[#allocation6_spill] sm:$0xff] %v3480_v27 }
 0x371   : > { %v1181_v31 = vpop.f32.mrf.mxu2 }
 0x372   : > { %v3485_v32 = vadd.f32 %v1181_v31, %v651_v30 }
 0x374   : > { %v1222_v33 = vsel %vm481_vm0, %v3485_v32, -inf }
 0x375   : > { %1223 = vmax.xlane.f32.xlu1 %v1222_v33 }
 0x379   : > { %v1183_v29 = vpop.f32.mrf.mxu2 }
 0x37a   : > { %v3492_v35 = vadd.f32 %v1183_v29, %v652_v34  ;;  %v3494_v37 = vpop.f32.mrf.mxu3 }
 0x37b   : > { %4193 = vst [vmem:[#allocation7_spill] sm:$0xff] %v3494_v37  ;;  %1406 = vrot.lane.b32.xlu2 %v3394_v58, %s3083_s16 }
 0x37c   : > { %v1225_v38 = vsel %vm481_vm0, %v3492_v35, -inf }
 0x37d   : > { %1226 = vmax.xlane.f32.xlu0 %v1225_v38 }
 0x382   : > { %v3500_v40 = vpop.f32.mrf.mxu3 }
 0x383   : > { %4194 = vst [vmem:[#allocation8_spill] sm:$0xff] %v3500_v40 }
 0x38a   : > { %v3502_v48 = vpop.f32.mrf.mxu3 }
 0x38b   : > { %4195 = vst [vmem:[#allocation9_spill] sm:$0xff] %v3502_v48 }
 0x38e   : > { %1476 = vrot.lane.b32.xlu1 %v3193_v36, %s3085_s19 }
 0x392   : > { %v3506_v43 = vpop.f32.mrf.mxu3 }
 0x393   : > { %4196 = vst [vmem:[#allocation10_spill] sm:$0xff] %v3506_v43 }
 0x396   : > { %1386 = vrot.lane.b32.xlu1 %v3247_v49, %s3083_s16 }
 0x39a   : > { %v1205_v46 = vpop.f32.mrf.mxu3 }
 0x39b   : > { %v3513_v53 = vadd.f32 %v1205_v46, %v659_v45 }
 0x39d   : > { %v1228_v47 = vsel %vm481_vm0, %v3513_v53, -inf }
 0x39e   : > { %1440 = vrot.lane.b32.xlu1 %v3412_v42, %s3083_s16  ;;  %1229 = vmax.xlane.f32.xlu0 %v1228_v47 }
 0x3a2   : > { %v1207_v52 = vpop.f32.mrf.mxu3 }
 0x3a3   : > { %v3522_v54 = vadd.f32 %v1207_v52, %v660_v51 }
 0x3a5   : > { %v1231_v55 = vsel %vm481_vm0, %v3522_v54, -inf }
 0x3a6   : > { %1423 = vrot.lane.b32.xlu1 %v3405_v12, %s3083_s16  ;;  %1232 = vmax.xlane.f32.xlu2 %v1231_v55 }
 0x3ae   : > { %1524 = vrot.lane.b32.xlu1 %v3201_v50, %s3085_s19 }
 0x3b2   : > { %1336 = vrot.lane.b32.xlu0 %v3401_v8, %s3083_s16 }
 0x3be   : > { %1474 = vrot.lane.b32.xlu2 %v3196_v41, %s3086_s26 }
 0x3c6   : > { %v1212_v62 = vpop.xlane.xlu0 %1211 }
 0x3c7   : > { %v1234_v61 = vsub.f32 %v1134_v1, %v1212_v62 }
 0x3c9   : > { %v1242_v5 = vmul.f32 1.442695, %v1234_v61 }
 0x3cb   : > { %2962 = vpow2.f32 %v1242_v5 }
 0x3ce   : > { %v1215_v2 = vpop.xlane.xlu2 %1214 }
 0x3cf   : > { %v1235_v9 = vsub.f32 %v1136_v10, %v1215_v2 }
 0x3d1   : > { %v1244_v16 = vmul.f32 1.442695, %v1235_v9  ;;  %v3534_v6 = vpop.eup %2962 }
 0x3d2   : > { %v1258_v15 = vsel %vm481_vm0, %v3534_v6, 0.0 }
 0x3d3   : > { %2964 = vpow2.f32 %v1244_v16 }
 0x3d6   : > { %v1218_v18 = vpop.xlane.xlu2 %1217 }
 0x3d7   : > { %v1236_v25 = vsub.f32 %v1158_v19, %v1218_v18 }
 0x3d8   : > { %1259 = vadd.xlane.f32.xlu1 %v1258_v15 }
 0x3d9   : > { %v3538_v13 = vpop.eup %2964  ;;  %v1246_v26 = vmul.f32 1.442695, %v1236_v25 }
 0x3da   : > { %v1221_v30 = vpop.xlane.xlu1 %1220  ;;  %v1261_v1 = vsel %vm481_vm0, %v3538_v13, 0.0 }
 0x3db   : > { %2966 = vpow2.f32 %v1246_v26  ;;  %v1237_v31 = vsub.f32 %v1160_v17, %v1221_v30 }
 0x3dc   : > { %1262 = vadd.xlane.f32.xlu0 %v1261_v1 }
 0x3dd   : > { %v1248_v10 = vmul.f32 1.442695, %v1237_v31 }
 0x3de   : > { %v1407_v33 = vpop.permute.xlu2 %1406 }
 0x3df   : > { %2968 = vpow2.f32 %v1248_v10  ;;  %1416 = vmatpush.bf16.msrb.mxu0 %v1407_v33 }
 0x3e1   : > { %v3542_v34 = vpop.eup %2966 }
 0x3e2   : > { %v1264_v19 = vsel %vm481_vm0, %v3542_v34, 0.0 }
 0x3e3   : > { %1265 = vadd.xlane.f32.xlu1 %v1264_v19 }
 0x3e5   : > { %v3546_v29 = vpop.eup %2968 }
 0x3e6   : > { %v1267_v38 = vsel %vm481_vm0, %v3546_v29, 0.0 }
 0x3e7   : > { %1268 = vadd.xlane.f32.xlu0 %v1267_v38 }
 0x3e8   : > { %v1224_v45 = vpop.xlane.xlu1 %1223 }
 0x3e9   : > { %v1238_v17 = vsub.f32 %v3485_v32, %v1224_v45 }
 0x3eb   : > { %v1250_v46 = vmul.f32 1.442695, %v1238_v17 }
 0x3ed   : > { %2970 = vpow2.f32 %v1250_v46 }
 0x3f0   : > { %v1227_v47 = vpop.xlane.xlu0 %1226 }
 0x3f1   : > { %v1239_v51 = vsub.f32 %v3492_v35, %v1227_v47 }
 0x3f3   : > { %v3552_v52 = vpop.eup %2970  ;;  %v1252_v55 = vmul.f32 1.442695, %v1239_v51 }
 0x3f4   : > { %v1270_v62 = vsel %vm481_vm0, %v3552_v52, 0.0 }
 0x3f5   : > { %2972 = vpow2.f32 %v1252_v55  ;;  %1271 = vadd.xlane.f32.xlu1 %v1270_v62 }
 0x3fb   : > { %v3556_v61 = vpop.eup %2972 }
 0x3fc   : > { %v1273_v5 = vsel %vm481_vm0, %v3556_v61, 0.0 }
 0x3fd   : > { %1274 = vadd.xlane.f32.xlu0 %v1273_v5 }
 0x400   : > { %v1477_v32 = vpop.permute.xlu1 %1476 }
 0x408   : > { %v1387_v2 = vpop.permute.xlu1 %1386 }
 0x409   : > { %1399 = vmatpush.bf16.msra.mxu3 %v1387_v2 }
 0x40e   : > { %1457 = vrot.lane.b32.xlu1 %v3430_v22, %s3083_s16  ;;  %s3087_s16 = smov 100  }
 0x410   : > { %v1441_v35 = vpop.permute.xlu1 %1440 }
 0x411   : > { %1450 = vmatpush.bf16.msra.mxu2 %v1441_v35  ;;  %v1230_v9 = vpop.xlane.xlu0 %1229 }
 0x412   : > { %v1240_v16 = vsub.f32 %v3513_v53, %v1230_v9 }
 0x414   : > { %v1254_v18 = vmul.f32 1.442695, %v1240_v16 }
 0x416   : > { %2974 = vpow2.f32 %v1254_v18  ;;  %1522 = vrot.lane.b32.xlu1 %v3205_v56, %s3086_s26 }
 0x418   : > { %v1424_v10 = vpop.permute.xlu1 %1423 }
 0x419   : > { %v1233_v25 = vpop.xlane.xlu2 %1232 }
 0x41a   : > { %v1241_v15 = vsub.f32 %v3522_v54, %v1233_v25  ;;  %v1482_v25 = vsel %vm693_vm1, %v1477_v32, 0 }
 0x41c   : > { %v3566_v26 = vpop.eup %2974  ;;  %v1256_v30 = vmul.f32 1.442695, %v1241_v15 }
 0x41d   : > { %v1276_v1 = vsel %vm481_vm0, %v3566_v26, 0.0 }
 0x41e   : > { %2976 = vpow2.f32 %v1256_v30  ;;  %1277 = vadd.xlane.f32.xlu2 %v1276_v1  ;;  %1548 = vrot.lane.b32.xlu1 %v3219_v20, %s3085_s19 }
 0x420   : > { %v1525_v54 = vpop.permute.xlu1 %1524 }
 0x424   : > { %v3572_v53 = vpop.eup %2976  ;;  %v1337_v31 = vpop.permute.xlu0 %1336 }
 0x425   : > { %1349 = vmatpush.bf16.msra.mxu1 %v1337_v31  ;;  %v1279_v33 = vsel %vm481_vm0, %v3572_v53, 0.0 }
 0x426   : > { %1671 = vrot.lane.b32.xlu1 %v3387_v44, %s3086_s26  ;;  %1280 = vadd.xlane.f32.xlu0 %v1279_v33 }
 0x429   : > { %1433 = vmatpush.bf16.msrb.mxu1 %v1424_v10 }
 0x436   : > { %1498 = vrot.lane.b32.xlu2 %v3215_v11, %s3086_s26 }
 0x43a   : > { %1500 = vrot.lane.b32.xlu0 %v3212_v7, %s3085_s19 }
 0x43e   : > { %1696 = vrot.lane.b32.xlu2 %v3401_v8, %s3086_s26 }
 0x442   : > { %1546 = vrot.lane.b32.xlu0 %v3221_v21, %s3086_s26 }
 0x44b   : > { %v1260_v19 = vpop.xlane.xlu1 %1259 }
 0x44c   : > { %2978 = vrcp.f32 %v1260_v19 }
 0x44f   : > { %v1263_v38 = vpop.xlane.xlu0 %1262 }
 0x450   : > { %2980 = vrcp.f32 %v1263_v38 }
 0x452   : > { %v2979_v45 = vpop.eup %2978 }
 0x453   : > { %v1290_v17 = vmul.f32 %v2979_v45, %v3534_v6 }
 0x455   : > { %v1298_v51 = vpack.c.bf16 %v1290_v17, %v1290_v17 }
 0x456   : > { %v2981_v46 = vpop.eup %2980  ;;  %v1266_v47 = vpop.xlane.xlu1 %1265 }
 0x457   : > { %v1291_v55 = vmul.f32 %v2981_v46, %v3538_v13  ;;  %2982 = vrcp.f32 %v1266_v47  ;;  %v1308_v2 = vunpack.c.l.b16 %v1298_v51  ;;  %v1475_v51 = vpop.permute.xlu2 %1474 }
 0x459   : > { %v1299_v62 = vpack.c.bf16 %v1291_v55, %v1291_v55 }
 0x45a   : > { %v1269_v5 = vpop.xlane.xlu0 %1268 }
 0x45b   : > { %v1309_v35 = vunpack.c.l.b16 %v1299_v62  ;;  %2984 = vrcp.f32 %v1269_v5  ;;  %v1530_v62 = vsel %vm693_vm1, %v1525_v54, 0 }
 0x45d   : > { %v2983_v9 = vpop.eup %2982  ;;  %v1310_v16 = vpack.c.b16 %v1309_v35, %v1308_v2 }
 0x45e   : > { %v1292_v18 = vmul.f32 %v2983_v9, %v3542_v34 }
 0x45f   : > { %2733 = vmatmul.msk.bf16.vlgmr.msra.gmra.mxu0 %vm481_vm0, %v1310_v16 }
 0x460   : > { %1491 = vmatpush.bf16.xpose.msra.mxu0 %v1482_v25  ;;  %v1300_v15 = vpack.c.bf16 %v1292_v18, %v1292_v18 }
 0x461   : > { %v2985_v6 = vpop.eup %2984 }
 0x462   : > { %v1293_v30 = vmul.f32 %v2985_v6, %v3546_v29  ;;  %v1333_v1 = vunpack.c.l.b16 %v1300_v15 }
 0x464   : > { %v1301_v13 = vpack.c.bf16 %v1293_v30, %v1293_v30 }
 0x466   : > { %v1334_v31 = vunpack.c.l.b16 %v1301_v13 }
 0x468   : > { %v1335_v10 = vpack.c.b16 %v1334_v31, %v1333_v1  ;;  %v1272_v33 = vpop.xlane.xlu1 %1271 }
 0x469   : > { %2986 = vrcp.f32 %v1272_v33 }
 0x46a   : > { %2734 = vmatmul.msk.bf16.vlgmr.msra.gmra.mxu1 %vm481_vm0, %v1335_v10 }
 0x46f   : > { %2737 = vmatmul.msk.bf16.vlgmr.msrb.gmra.mxu0 %vm481_vm0, %v1310_v16  ;;  %v2987_v19 = vpop.eup %2986 }
 0x470   : > { %v1275_v34 = vpop.xlane.xlu0 %1274  ;;  %v1294_v32 = vmul.f32 %v2987_v19, %v3552_v52 }
 0x471   : > { %2988 = vrcp.f32 %v1275_v34 }
 0x472   : > { %v1302_v45 = vpack.c.bf16 %v1294_v32, %v1294_v32 }
 0x474   : > { %v1358_v46 = vunpack.c.l.b16 %v1302_v45 }
 0x477   : > { %v2989_v38 = vpop.eup %2988 }
 0x478   : > { %v1295_v17 = vmul.f32 %v2989_v38, %v3556_v61 }
 0x47a   : > { %v1303_v29 = vpack.c.bf16 %v1295_v17, %v1295_v17  ;;  %2738 = vmatmul.msk.bf16.vlgmr.msrb.gmra.mxu1 %vm481_vm0, %v1335_v10 }
 0x47c   : > { %v1359_v47 = vunpack.c.l.b16 %v1303_v29 }
 0x47e   : > { %v1360_v55 = vpack.c.b16 %v1359_v47, %v1358_v46 }
 0x47f   : > { %2741 = vmatmul.msk.bf16.vlgmr.msra.gmra.mxu0 %vm693_vm1, %v1475_v51 }
 0x480   : > { %2735 = vmatmul.msk.bf16.vlgmr.msrb.gmra.mxu2 %vm481_vm0, %v1360_v55  ;;  %v1458_v5 = vpop.permute.xlu1 %1457 }
 0x481   : > { %1539 = vmatpush.bf16.xpose.msrb.mxu2 %v1530_v62  ;;  %1467 = vmatpush.bf16.msrb.mxu3 %v1458_v5  ;;  %v637_v62 = vld [vmem:[%s4179_s3 + $0x20] sm:$0xff] }
 0x488   : > { %v1523_v52 = vpop.permute.xlu1 %1522 }
 0x490   : > { %2739 = vmatmul.msk.bf16.vlgmr.msra.gmra.mxu2 %vm481_vm0, %v1360_v55  ;;  %v1549_v61 = vpop.permute.xlu1 %1548 }
 0x491   : > { %v1278_v2 = vpop.xlane.xlu2 %1277  ;;  %v1554_v10 = vsel %vm693_vm1, %v1549_v61, 0 }
 0x492   : > { %2990 = vrcp.f32 %v1278_v2 }
 0x498   : > { %v1672_v35 = vpop.permute.xlu1 %1671  ;;  %v2991_v16 = vpop.eup %2990 }
 0x499   : > { %1684 = vmatpush.bf16.msrb.mxu0 %v1672_v35  ;;  %v1281_v9 = vpop.xlane.xlu0 %1280  ;;  %v1296_v18 = vmul.f32 %v2991_v16, %v3566_v26  ;;  %v1499_v30 = vpop.permute.xlu2 %1498 }
 0x49a   : > { %2992 = vrcp.f32 %v1281_v9  ;;  %v638_v9 = vld [vmem:[%s4179_s3 + $0x28] sm:$0xff] }
 0x49b   : > { %v1304_v25 = vpack.c.bf16 %v1296_v18, %v1296_v18 }
 0x49d   : > { %v1383_v13 = vunpack.c.l.b16 %v1304_v25 }
 0x4a0   : > { %2743 = vmatmul.msk.bf16.vlgmr.msrb.gmra.mxu2 %vm693_vm1, %v1523_v52  ;;  %v2993_v54 = vpop.eup %2992 }
 0x4a1   : > { %v1297_v6 = vmul.f32 %v2993_v54, %v3572_v53  ;;  %v1697_v26 = vpop.permute.xlu2 %1696 }
 0x4a3   : > { %v1305_v15 = vpack.c.bf16 %v1297_v6, %v1297_v6 }
 0x4a5   : > { %v1384_v1 = vunpack.c.l.b16 %v1305_v15 }
 0x4a7   : > { %v1385_v31 = vpack.c.b16 %v1384_v1, %v1383_v13 }
 0x4a9   : > { %2736 = vmatmul.msk.bf16.vlgmr.msra.gmra.mxu3 %vm481_vm0, %v1385_v31 }
 0x4aa   : > { %1563 = vmatpush.bf16.xpose.msra.mxu3 %v1554_v10 }
 0x4ac   : > { %v1501_v33 = vpop.permute.xlu0 %1500 }
 0x4ad   : > { %v1506_v34 = vsel %vm693_vm1, %v1501_v33, 0 }
 0x4ae   : > { %1515 = vmatpush.bf16.xpose.msra.mxu1 %v1506_v34 }
 0x4b4   : > { %v1547_v53 = vpop.permute.xlu0 %1546 }
 0x4b5   : > { %2742 = vmatmul.msk.bf16.vlgmr.msra.gmra.mxu1 %vm693_vm1, %v1499_v30 }
 0x4b6   : > { %1709 = vmatpush.bf16.msrb.mxu1 %v1697_v26 }
 0x4b9   : > { %2740 = vmatmul.msk.bf16.vlgmr.msrb.gmra.mxu3 %vm481_vm0, %v1385_v31  ;;  %v653_v31 = vld [vmem:[%s4179_s3 + $0xa0] sm:$0xff] }
 0x4c9   : > { %2744 = vmatmul.msk.bf16.vlgmr.msra.gmra.mxu3 %vm693_vm1, %v1547_v53  ;;  %v645_v53 = vld [vmem:[%s4179_s3 + $0x60] sm:$0xff] }
 0x4dc   : > { %v3610_v19 = vpop.f32.mrf.mxu0 }
 0x4e4   : > { %v3612_v32 = vpop.f32.mrf.mxu0 }
 0x4e7   : > { %v3616_v45 = vpop.f32.mrf.mxu1 }
 0x4ec   : > { %v3618_v17 = vpop.f32.mrf.mxu0 }
 0x4ef   : > { %v3620_v29 = vpop.f32.mrf.mxu1 }
 0x4f4   : > { %v3624_v47 = vpop.f32.mrf.mxu0 }
 0x4f7   : > { %v3628_v55 = vpop.f32.mrf.mxu1 }
 0x4fc   : > { %v1493_v5 = vpop.f32.mrf.mxu0 }
 0x4fd   : > { %v3633_v52 = vadd.f32 %v1493_v5, %v637_v62 }
 0x4ff   : > { %v3635_v61 = vpop.f32.mrf.mxu1  ;;  %v1570_v2 = vsel %vm481_vm0, %v3633_v52, -inf }
 0x500   : > { %1571 = vmax.xlane.f32.xlu2 %v1570_v2 }
 0x503   : > { %v3644_v16 = vpop.f32.mrf.mxu2 }
 0x504   : > { %v1495_v18 = vpop.f32.mrf.mxu0 }
 0x505   : > { %v1496_v54 = vadd.f32 %v1495_v18, %v638_v9 }
 0x507   : > { %v1573_v25 = vsel %vm481_vm0, %v1496_v54, -inf }
 0x508   : > { %1574 = vmax.xlane.f32.xlu1 %v1573_v25  ;;  %v646_v25 = vld [vmem:[%s4179_s3 + $0x68] sm:$0xff] }
 0x50b   : > { %v3647_v6 = vpop.f32.mrf.mxu2 }
 0x513   : > { %v3651_v30 = vpop.f32.mrf.mxu2 }
 0x51b   : > { %v3653_v13 = vpop.f32.mrf.mxu2 }
 0x523   : > { %v1541_v10 = vpop.f32.mrf.mxu2 }
 0x524   : > { %v3660_v33 = vadd.f32 %v1541_v10, %v653_v31 }
 0x526   : > { %v1582_v34 = vsel %vm481_vm0, %v3660_v33, -inf }
 0x527   : > { %1583 = vmax.xlane.f32.xlu1 %v1582_v34 }
 0x52c   : > { %v3664_v26 = vpop.f32.mrf.mxu3 }
 0x532   : > { %v1517_v62 = vpop.f32.mrf.mxu1 }
 0x533   : > { %v1518_v5 = vadd.f32 %v1517_v62, %v645_v53  ;;  %v654_v53 = vld [vmem:[%s4179_s3 + $0xa8] sm:$0xff]  ;;  %v1543_v62 = vpop.f32.mrf.mxu2 }
 0x534   : > { %v3669_v2 = vpop.f32.mrf.mxu3 }
 0x535   : > { %v1576_v18 = vsel %vm481_vm0, %v1518_v5, -inf }
 0x536   : > { %1577 = vmax.xlane.f32.xlu0 %v1576_v18  ;;  %v1544_v18 = vadd.f32 %v1543_v62, %v654_v53  ;;  %v662_v53 = vld [vmem:[%s4179_s3 + $0xe8] sm:$0xff] }
 0x53a   : > { %v1519_v31 = vpop.f32.mrf.mxu1 }
 0x53b   : > { %v1520_v10 = vadd.f32 %v1519_v31, %v646_v25  ;;  %v1585_v25 = vsel %vm481_vm0, %v1544_v18, -inf  ;;  %v661_v31 = vld [vmem:[%s4179_s3 + $0xe0] sm:$0xff] }
 0x53c   : > { %v3677_v34 = vpop.f32.mrf.mxu3 }
 0x53d   : > { %v1579_v1 = vsel %vm481_vm0, %v1520_v10, -inf }
 0x53e   : > { %1580 = vmax.xlane.f32.xlu2 %v1579_v1 }
 0x540   : > { %1721 = vrot.lane.b32.xlu1 %v3240_v39, %s3086_s26 }
 0x544   : > { %v3685_v35 = vpop.f32.mrf.mxu3 }
 0x546   : > { %1586 = vmax.xlane.f32.xlu2 %v1585_v25 }
 0x54c   : > { %v1565_v9 = vpop.f32.mrf.mxu3 }
 0x54d   : > { %v3693_v15 = vadd.f32 %v1565_v9, %v661_v31 }
 0x54f   : > { %v1588_v1 = vsel %vm481_vm0, %v3693_v15, -inf }
 0x550   : > { %1589 = vmax.xlane.f32.xlu0 %v1588_v1 }
 0x554   : > { %v1567_v62 = vpop.f32.mrf.mxu3 }
 0x555   : > { %v3702_v25 = vadd.f32 %v1567_v62, %v662_v53 }
 0x557   : > { %v1591_v9 = vsel %vm481_vm0, %v3702_v25, -inf }
 0x55e   : > { %1836 = vrot.lane.b32.xlu2 %v3193_v36, %s3087_s16 }
 0x564   : > { %1766 = vrot.lane.b32.xlu0 %v3394_v58, %s3086_s26 }
 0x566   : > { %1783 = vrot.lane.b32.xlu2 %v3405_v12, %s3086_s26 }
 0x56a   : > { %1592 = vmax.xlane.f32.xlu1 %v1591_v9 }
 0x56e   : > { %1834 = vrot.lane.b32.xlu2 %v3196_v41, %s3088_s30 }
 0x573   : > { %v1572_v41 = vpop.xlane.xlu2 %1571 }
 0x574   : > { %v1594_v9 = vsub.f32 %v3633_v52, %v1572_v41 }
 0x576   : > { %1746 = vrot.lane.b32.xlu2 %v3247_v49, %s3086_s26  ;;  %v1602_v51 = vmul.f32 1.442695, %v1594_v9 }
 0x57b   : > { %v1575_v36 = vpop.xlane.xlu1 %1574 }
 0x57c   : > { %v1595_v31 = vsub.f32 %v1496_v54, %v1575_v36 }
 0x57e   : > { %1860 = vrot.lane.b32.xlu2 %v3212_v7, %s3087_s16  ;;  %v1604_v1 = vmul.f32 1.442695, %v1595_v31 }
 0x580   : > { %2994 = vpow2.f32 %v1604_v1 }
 0x581   : > { %2996 = vpow2.f32 %v1602_v51 }
 0x583   : > { %1800 = vrot.lane.b32.xlu1 %v3412_v42, %s3086_s26 }
 0x586   : > { %v3718_v53 = vpop.eup %2994 }
 0x587   : > { %v1621_v62 = vsel %vm481_vm0, %v3718_v53, 0.0  ;;  %v3723_v54 = vpop.eup %2996 }
 0x588   : > { %v1618_v7 = vsel %vm481_vm0, %v3723_v54, 0.0 }
 0x58e   : > { %1622 = vadd.xlane.f32.xlu0 %v1621_v62 }
 0x59a   : > { %v1584_v36 = vpop.xlane.xlu1 %1583 }
 0x59b   : > { %v1598_v46 = vsub.f32 %v3660_v33, %v1584_v36 }
 0x59d   : > { %v1610_v48 = vmul.f32 1.442695, %v1598_v46 }
 0x5a7   : > { %1619 = vadd.xlane.f32.xlu2 %v1618_v7 }
 0x5a9   : > { %v1578_v31 = vpop.xlane.xlu0 %1577 }
 0x5aa   : > { %v1596_v1 = vsub.f32 %v1518_v5, %v1578_v31 }
 0x5ac   : > { %v1606_v38 = vmul.f32 1.442695, %v1596_v1 }
 0x5ae   : > { %2998 = vpow2.f32 %v1606_v38 }
 0x5af   : > { %3000 = vpow2.f32 %v1610_v48 }
 0x5b1   : > { %v1581_v62 = vpop.xlane.xlu2 %1580 }
 0x5b2   : > { %v1722_v43 = vpop.permute.xlu1 %1721  ;;  %v1597_v37 = vsub.f32 %v1520_v10, %v1581_v62 }
 0x5b3   : > { %1734 = vmatpush.bf16.msra.mxu2 %v1722_v43 }
 0x5b4   : > { %v3728_v52 = vpop.eup %2998  ;;  %v1608_v51 = vmul.f32 1.442695, %v1597_v37 }
 0x5b5   : > { %v1624_v41 = vsel %vm481_vm0, %v3728_v52, 0.0  ;;  %v3732_v5 = vpop.eup %3000 }
 0x5b6   : > { %3002 = vpow2.f32 %v1608_v51  ;;  %1625 = vadd.xlane.f32.xlu2 %v1624_v41  ;;  %v1630_v46 = vsel %vm481_vm0, %v3732_v5, 0.0 }
 0x5b9   : > { %v1587_v9 = vpop.xlane.xlu2 %1586 }
 0x5ba   : > { %v1599_v33 = vsub.f32 %v1544_v18, %v1587_v9 }
 0x5bc   : > { %v3734_v7 = vpop.eup %3002  ;;  %v1612_v38 = vmul.f32 1.442695, %v1599_v33 }
 0x5bd   : > { %v1627_v43 = vsel %vm481_vm0, %v3734_v7, 0.0 }
 0x5be   : > { %3004 = vpow2.f32 %v1612_v38  ;;  %1631 = vadd.xlane.f32.xlu2 %v1630_v46  ;;  %1628 = vadd.xlane.f32.xlu0 %v1627_v43 }
 0x5c1   : > { %v1837_v37 = vpop.permute.xlu2 %1836 }
 0x5c3   : > { %v1590_v48 = vpop.xlane.xlu0 %1589 }
 0x5c4   : > { %v3740_v10 = vpop.eup %3004  ;;  %v1600_v36 = vsub.f32 %v3693_v15, %v1590_v48 }
 0x5c5   : > { %v1633_v18 = vsel %vm481_vm0, %v3740_v10, 0.0 }
 0x5c6   : > { %v1614_v31 = vmul.f32 1.442695, %v1600_v36  ;;  %1634 = vadd.xlane.f32.xlu0 %v1633_v18 }
 0x5c8   : > { %3006 = vpow2.f32 %v1614_v31 }
 0x5c9   : > { %v1784_v1 = vpop.permute.xlu2 %1783 }
 0x5ca   : > { %1793 = vmatpush.bf16.msra.mxu1 %v1784_v1 }
 0x5ce   : > { %v3745_v62 = vpop.eup %3006 }
 0x5cf   : > { %v1636_v51 = vsel %vm481_vm0, %v3745_v62, 0.0 }
 0x5d0   : > { %1637 = vadd.xlane.f32.xlu1 %v1636_v51 }
 0x5d1   : > { %v3749_v41 = vpop.permute.xlu2 %1834 }
 0x5d6   : > { %v1767_v9 = vpop.permute.xlu0 %1766  ;;  %1858 = vrot.lane.b32.xlu2 %v3215_v11, %s3088_s30 }
 0x5d7   : > { %1776 = vmatpush.bf16.msra.mxu0 %v1767_v9 }
 0x5d9   : > { %v1747_v15 = vpop.permute.xlu2 %1746 }
 0x5da   : > { %1759 = vmatpush.bf16.msrb.mxu3 %v1747_v15 }
 0x5dd   : > { %v1593_v33 = vpop.xlane.xlu1 %1592 }
 0x5de   : > { %v1601_v38 = vsub.f32 %v3702_v25, %v1593_v33  ;;  %1817 = vrot.lane.b32.xlu2 %v3430_v22, %s3086_s26 }
 0x5e0   : > { %v1616_v46 = vmul.f32 1.442695, %v1601_v38 }
 0x5e1   : > { %v1861_v25 = vpop.permute.xlu2 %1860 }
 0x5e2   : > { %3008 = vpow2.f32 %v1616_v46  ;;  %v1842_v46 = vsel %vm693_vm1, %v1837_v37, 0 }
 0x5e6   : > { %1882 = vrot.lane.b32.xlu2 %v3205_v56, %s3088_s30 }
 0x5e8   : > { %v3758_v43 = vpop.eup %3008 }
 0x5e9   : > { %v1639_v48 = vsel %vm481_vm0, %v3758_v43, 0.0  ;;  %1908 = vrot.lane.b32.xlu1 %v3219_v20, %s3087_s16 }
 0x5ea   : > { %1640 = vadd.xlane.f32.xlu0 %v1639_v48 }
 0x5f5   : > { %v1801_v11 = vpop.permute.xlu1 %1800 }
 0x5f6   : > { %1810 = vmatpush.bf16.msrb.mxu2 %v1801_v11 }
 0x5fe   : > { %1884 = vrot.lane.b32.xlu0 %v3201_v50, %s3087_s16 }
 0x601   : > { %v1623_v36 = vpop.xlane.xlu0 %1622 }
 0x602   : > { %3010 = vrcp.f32 %v1623_v36 }
 0x606   : > { %1906 = vrot.lane.b32.xlu0 %v3221_v21, %s3088_s30 }
 0x608   : > { %v3011_v18 = vpop.eup %3010 }
 0x609   : > { %v1651_v31 = vmul.f32 %v3011_v18, %v3718_v53 }
 0x60b   : > { %v1659_v51 = vpack.c.bf16 %v1651_v31, %v1651_v31 }
 0x60d   : > { %v1669_v15 = vunpack.c.l.b16 %v1659_v51 }
 0x61a   : > { %v1620_v56 = vpop.xlane.xlu2 %1619 }
 0x61b   : > { %3012 = vrcp.f32 %v1620_v56 }
 0x621   : > { %v3013_v1 = vpop.eup %3012 }
 0x622   : > { %v1650_v20 = vmul.f32 %v3013_v1, %v3723_v54 }
 0x624   : > { %v1658_v9 = vpack.c.bf16 %v1650_v20, %v1650_v20 }
 0x626   : > { %v1668_v33 = vunpack.c.l.b16 %v1658_v9 }
 0x628   : > { %v1670_v38 = vpack.c.b16 %v1669_v15, %v1668_v33 }
 0x629   : > { %v1626_v50 = vpop.xlane.xlu2 %1625 }
 0x62a   : > { %2745 = vmatmul.msk.bf16.vlgmr.msrb.gmra.mxu0 %vm481_vm0, %v1670_v38  ;;  %3014 = vrcp.f32 %v1626_v50  ;;  %v1866_v50 = vsel %vm693_vm1, %v1861_v25, 0 }
 0x62b   : > { %1851 = vmatpush.bf16.xpose.msrb.mxu0 %v1842_v46 }
 0x630   : > { %v3015_v11 = vpop.eup %3014 }
 0x631   : > { %v1629_v21 = vpop.xlane.xlu0 %1628  ;;  %v1632_v48 = vpop.xlane.xlu2 %1631  ;;  %v1652_v53 = vmul.f32 %v3015_v11, %v3728_v52 }
 0x632   : > { %3016 = vrcp.f32 %v1629_v21 }
 0x633   : > { %3018 = vrcp.f32 %v1632_v48  ;;  %v1660_v54 = vpack.c.bf16 %v1652_v53, %v1652_v53 }
 0x635   : > { %v1693_v51 = vunpack.c.l.b16 %v1660_v54 }
 0x638   : > { %v3017_v36 = vpop.eup %3016 }
 0x639   : > { %v1653_v56 = vmul.f32 %v3017_v36, %v3734_v7  ;;  %v1635_v18 = vpop.xlane.xlu0 %1634  ;;  %v1859_v31 = vpop.permute.xlu2 %1858 }
 0x63a   : > { %v3019_v1 = vpop.eup %3018  ;;  %3020 = vrcp.f32 %v1635_v18  ;;  %2749 = vmatmul.msk.bf16.vlgmr.msra.gmra.mxu0 %vm481_vm0, %v1670_v38 }
 0x63b   : > { %v1661_v37 = vpack.c.bf16 %v1653_v56, %v1653_v56  ;;  %v1654_v9 = vmul.f32 %v3019_v1, %v3732_v5 }
 0x63d   : > { %v1694_v20 = vunpack.c.l.b16 %v1661_v37  ;;  %v1662_v52 = vpack.c.bf16 %v1654_v9, %v1654_v9 }
 0x63f   : > { %v1695_v15 = vpack.c.b16 %v1694_v20, %v1693_v51  ;;  %v1718_v48 = vunpack.c.l.b16 %v1662_v52 }
 0x640   : > { %v3021_v33 = vpop.eup %3020 }
 0x641   : > { %v1655_v46 = vmul.f32 %v3021_v33, %v3740_v10  ;;  %2746 = vmatmul.msk.bf16.vlgmr.msrb.gmra.mxu1 %vm481_vm0, %v1695_v15  ;;  %v1818_v7 = vpop.permute.xlu2 %1817 }
 0x642   : > { %1875 = vmatpush.bf16.xpose.msrb.mxu1 %v1866_v50  ;;  %1827 = vmatpush.bf16.msra.mxu3 %v1818_v7 }
 0x643   : > { %v1663_v21 = vpack.c.bf16 %v1655_v46, %v1655_v46  ;;  %v1638_v5 = vpop.xlane.xlu1 %1637 }
 0x644   : > { %3022 = vrcp.f32 %v1638_v5 }
 0x645   : > { %v1719_v38 = vunpack.c.l.b16 %v1663_v21 }
 0x647   : > { %v1720_v11 = vpack.c.b16 %v1719_v38, %v1718_v48  ;;  %v639_v48 = vld [vmem:[%s4179_s3 + $0x30] sm:$0xff] }
 0x649   : > { %2747 = vmatmul.msk.bf16.vlgmr.msra.gmra.mxu2 %vm481_vm0, %v1720_v11 }
 0x64a   : > { %2753 = vmatmul.msk.bf16.vlgmr.msrb.gmra.mxu0 %vm693_vm1, %v3749_v41  ;;  %v3023_v25 = vpop.eup %3022 }
 0x64b   : > { %v1656_v53 = vmul.f32 %v3023_v25, %v3745_v62  ;;  %v1883_v62 = vpop.permute.xlu2 %1882 }
 0x64d   : > { %v1664_v54 = vpack.c.bf16 %v1656_v53, %v1656_v53 }
 0x64f   : > { %v1743_v1 = vunpack.c.l.b16 %v1664_v54 }
 0x651   : > { %2750 = vmatmul.msk.bf16.vlgmr.msra.gmra.mxu1 %vm481_vm0, %v1695_v15 }
 0x659   : > { %2751 = vmatmul.msk.bf16.vlgmr.msrb.gmra.mxu2 %vm481_vm0, %v1720_v11 }
 0x65b   : > { %v1909_v37 = vpop.permute.xlu1 %1908 }
 0x65c   : > { %v1914_v20 = vsel %vm693_vm1, %v1909_v37, 0 }
 0x65d   : > { %v1641_v10 = vpop.xlane.xlu0 %1640 }
 0x65e   : > { %3024 = vrcp.f32 %v1641_v10 }
 0x661   : > { %2754 = vmatmul.msk.bf16.vlgmr.msrb.gmra.mxu1 %vm693_vm1, %v1859_v31 }
 0x664   : > { %v3025_v36 = vpop.eup %3024 }
 0x665   : > { %v1657_v56 = vmul.f32 %v3025_v36, %v3758_v43  ;;  %v640_v36 = vld [vmem:[%s4179_s3 + $0x38] sm:$0xff] }
 0x667   : > { %v1665_v18 = vpack.c.bf16 %v1657_v56, %v1657_v56 }
 0x669   : > { %v1744_v41 = vunpack.c.l.b16 %v1665_v18 }
 0x66b   : > { %v1745_v51 = vpack.c.b16 %v1744_v41, %v1743_v1 }
 0x66d   : > { %2748 = vmatmul.msk.bf16.vlgmr.msrb.gmra.mxu3 %vm481_vm0, %v1745_v51 }
 0x66e   : > { %1923 = vmatpush.bf16.xpose.msrb.mxu3 %v1914_v20  ;;  %v655_v20 = vld [vmem:[%s4179_s3 + $0xb0] sm:$0xff] }
 0x670   : > { %v1885_v9 = vpop.permute.xlu0 %1884 }
 0x671   : > { %v1890_v15 = vsel %vm693_vm1, %v1885_v9, 0 }
 0x672   : > { %1899 = vmatpush.bf16.xpose.msra.mxu2 %v1890_v15  ;;  %v647_v15 = vld [vmem:[%s4179_s3 + $0x70] sm:$0xff] }
 0x678   : > { %v1907_v43 = vpop.permute.xlu0 %1906 }
 0x679   : > { %2755 = vmatmul.msk.bf16.vlgmr.msra.gmra.mxu2 %vm693_vm1, %v1883_v62 }
 0x67d   : > { %2752 = vmatmul.msk.bf16.vlgmr.msra.gmra.mxu3 %vm481_vm0, %v1745_v51 }
 0x68d   : > { %2756 = vmatmul.msk.bf16.vlgmr.msrb.gmra.mxu3 %vm693_vm1, %v1907_v43 }
 0x6a7   : > { %v3793_v31 = vpop.f32.mrf.mxu0 }
 0x6af   : > { %v3795_v33 = vpop.f32.mrf.mxu0 }
 0x6b7   : > { %v3799_v52 = vpop.f32.mrf.mxu0 }
 0x6be   : > { %v3801_v46 = vpop.f32.mrf.mxu1 }
 0x6bf   : > { %v3803_v7 = vpop.f32.mrf.mxu0 }
 0x6c6   : > { %v3810_v38 = vpop.f32.mrf.mxu1 }
 0x6c7   : > { %v1853_v5 = vpop.f32.mrf.mxu0 }
 0x6c8   : > { %v1854_v10 = vadd.f32 %v1853_v5, %v639_v48 }
 0x6ca   : > { %v1930_v25 = vsel %vm481_vm0, %v1854_v10, -inf }
 0x6cb   : > { %1931 = vmax.xlane.f32.xlu2 %v1930_v25  ;;  %v648_v25 = vld [vmem:[%s4179_s3 + $0x78] sm:$0xff] }
 0x6cc   : > { %v3815_v53 = vpop.f32.mrf.mxu2 }
 0x6ce   : > { %v3820_v54 = vpop.f32.mrf.mxu1 }
 0x6cf   : > { %v1855_v56 = vpop.f32.mrf.mxu0 }
 0x6d0   : > { %v1856_v18 = vadd.f32 %v1855_v56, %v640_v36 }
 0x6d2   : > { %v1933_v1 = vsel %vm481_vm0, %v1856_v18, -inf }
 0x6d3   : > { %1934 = vmax.xlane.f32.xlu1 %v1933_v1 }
 0x6d4   : > { %v3823_v41 = vpop.f32.mrf.mxu2 }
 0x6d6   : > { %v3827_v51 = vpop.f32.mrf.mxu1 }
 0x6dc   : > { %v3831_v9 = vpop.f32.mrf.mxu2 }
 0x6de   : > { %v1877_v62 = vpop.f32.mrf.mxu1 }
 0x6df   : > { %v1878_v43 = vadd.f32 %v1877_v62, %v647_v15 }
 0x6e1   : > { %v1936_v48 = vsel %vm481_vm0, %v1878_v43, -inf }
 0x6e2   : > { %1937 = vmax.xlane.f32.xlu0 %v1936_v48  ;;  %v663_v48 = vld [vmem:[%s4179_s3 + $0xf0] sm:$0xff] }
 0x6e4   : > { %v3837_v5 = vpop.f32.mrf.mxu2 }
 0x6e6   : > { %v1879_v56 = vpop.f32.mrf.mxu1 }
 0x6e7   : > { %v1880_v1 = vadd.f32 %v1879_v56, %v648_v25  ;;  %v656_v25 = vld [vmem:[%s4179_s3 + $0xb8] sm:$0xff] }
 0x6e9   : > { %v1939_v37 = vsel %vm481_vm0, %v1880_v1, -inf }
 0x6ea   : > { %1940 = vmax.xlane.f32.xlu2 %v1939_v37 }
 0x6ec   : > { %2031 = vrot.lane.b32.xlu1 %v3387_v44, %s3088_s30 }
 0x6f0   : > { %v3847_v15 = vpop.f32.mrf.mxu3 }
 0x6f8   : > { %v3849_v62 = vpop.f32.mrf.mxu3 }
 0x6fc   : > { %v1901_v11 = vpop.f32.mrf.mxu2 }
 0x700   : > { %v3853_v21 = vpop.f32.mrf.mxu3 }
 0x704   : > { %v1903_v56 = vpop.f32.mrf.mxu2 }
 0x705   : > { %v3858_v50 = vadd.f32 %v1903_v56, %v656_v25  ;;  %v1902_v56 = vadd.f32 %v1901_v11, %v655_v20 }
 0x707   : > { %v1945_v44 = vsel %vm481_vm0, %v3858_v50, -inf  ;;  %v1942_v27 = vsel %vm481_vm0, %v1902_v56, -inf }
 0x708   : > { %v3862_v37 = vpop.f32.mrf.mxu3  ;;  %1946 = vmax.xlane.f32.xlu0 %v1945_v44  ;;  %v664_v44 = vld [vmem:[%s4179_s3 + $0xf8] sm:$0xff] }
 0x710   : > { %v1925_v40 = vpop.f32.mrf.mxu3 }
 0x711   : > { %v1926_v25 = vadd.f32 %v1925_v40, %v663_v48 }
 0x713   : > { %v1948_v23 = vsel %vm481_vm0, %v1926_v25, -inf }
 0x714   : > { %1949 = vmax.xlane.f32.xlu2 %v1948_v23 }
 0x716   : > { %1943 = vmax.xlane.f32.xlu1 %v1942_v27 }
 0x718   : > { %v1927_v36 = vpop.f32.mrf.mxu3 }
 0x719   : > { %v3877_v4 = vadd.f32 %v1927_v36, %v664_v44 }
 0x71b   : > { %v1951_v14 = vsel %vm481_vm0, %v3877_v4, -inf }
 0x71e   : > { %1952 = vmax.xlane.f32.xlu1 %v1951_v14 }
 0x737   : > { %2081 = vrot.lane.b32.xlu1 %v3240_v39, %s3088_s30 }
 0x73e   : > { %v1932_v40 = vpop.xlane.xlu2 %1931 }
 0x73f   : > { %v1954_v11 = vsub.f32 %v1854_v10, %v1932_v40 }
 0x741   : > { %v1962_v23 = vmul.f32 1.442695, %v1954_v11 }
 0x743   : > { %3026 = vpow2.f32 %v1962_v23 }
 0x746   : > { %v1935_v20 = vpop.xlane.xlu1 %1934 }
 0x747   : > { %v1955_v27 = vsub.f32 %v1856_v18, %v1935_v20 }
 0x749   : > { %v3883_v48 = vpop.eup %3026  ;;  %v1964_v0 = vmul.f32 1.442695, %v1955_v27 }
 0x74a   : > { %v1978_v36 = vsel %vm481_vm0, %v3883_v48, 0.0 }
 0x74b   : > { %3028 = vpow2.f32 %v1964_v0  ;;  %1979 = vadd.xlane.f32.xlu0 %v1978_v36 }
 0x751   : > { %v3887_v44 = vpop.eup %3028 }
 0x752   : > { %v1981_v14 = vsel %vm481_vm0, %v3887_v44, 0.0 }
 0x753   : > { %1982 = vadd.xlane.f32.xlu2 %v1981_v14 }
 0x755   : > { %v1938_v39 = vpop.xlane.xlu0 %1937 }
 0x756   : > { %v1956_v10 = vsub.f32 %v1878_v43, %v1938_v39 }
 0x758   : > { %v1966_v40 = vmul.f32 1.442695, %v1956_v10 }
 0x75a   : > { %3030 = vpow2.f32 %v1966_v40 }
 0x75d   : > { %v1941_v11 = vpop.xlane.xlu2 %1940 }
 0x75e   : > { %v1957_v18 = vsub.f32 %v1880_v1, %v1941_v11  ;;  %v2032_v23 = vpop.permute.xlu1 %2031 }
 0x75f   : > { %2044 = vmatpush.bf16.msra.mxu0 %v2032_v23 }
 0x760   : > { %v3891_v20 = vpop.eup %3030  ;;  %v1968_v27 = vmul.f32 1.442695, %v1957_v18 }
 0x761   : > { %v1984_v0 = vsel %vm481_vm0, %v3891_v20, 0.0 }
 0x762   : > { %3032 = vpow2.f32 %v1968_v27  ;;  %1985 = vadd.xlane.f32.xlu0 %v1984_v0 }
 0x768   : > { %v3895_v36 = vpop.eup %3032 }
 0x769   : > { %v1987_v14 = vsel %vm481_vm0, %v3895_v36, 0.0 }
 0x76a   : > { %1988 = vadd.xlane.f32.xlu2 %v1987_v14 }
 0x782   : > { %2126 = vrot.lane.b32.xlu2 %v3394_v58, %s3088_s30  ;;  %v1947_v58 = vpop.xlane.xlu0 %1946 }
 0x787   : > { %v1950_v43 = vpop.xlane.xlu2 %1949 }
 0x788   : > { %v1960_v1 = vsub.f32 %v1926_v25, %v1950_v43  ;;  %v1959_v25 = vsub.f32 %v3858_v50, %v1947_v58  ;;  %v4198_v50 = vpack.i.bf16 %v3620_v29, %v3616_v45 }
 0x789   : > { %v1944_v10 = vpop.xlane.xlu1 %1943 }
 0x78a   : > { %v1974_v39 = vmul.f32 1.442695, %v1960_v1  ;;  %v1958_v40 = vsub.f32 %v1902_v56, %v1944_v10  ;;  %v1972_v14 = vmul.f32 1.442695, %v1959_v25  ;;  %v4197_v10 = vpack.i.bf16 %v3612_v32, %v3610_v19 }
 0x78b   : > { %v4200_v19 = vpack.i.bf16 %v3647_v6, %v3644_v16 }
 0x78c   : > { %3034 = vpow2.f32 %v1974_v39  ;;  %v1970_v11 = vmul.f32 1.442695, %v1958_v40 }
 0x78e   : > { %3036 = vpow2.f32 %v1970_v11 }
 0x78f   : > { %3038 = vpow2.f32 %v1972_v14 }
 0x791   : > { %v1953_v56 = vpop.xlane.xlu1 %1952 }
 0x792   : > { %v3901_v18 = vpop.eup %3034  ;;  %v1961_v11 = vsub.f32 %v3877_v4, %v1953_v56  ;;  %v4201_v4 = vpack.i.bf16 %v3837_v5, %v3831_v9  ;;  %v4202_v9 = vpack.i.bf16 %v3669_v2, %v3664_v26  ;;  %v4203_v5 = vpack.i.bf16 %v3862_v37, %v3853_v21 }
 0x793   : > { %v1996_v23 = vsel %vm481_vm0, %v3901_v18, 0.0  ;;  %v4205_v26 = vpack.i.bf16 %v3795_v33, %v3793_v31 }
 0x794   : > { %1997 = vadd.xlane.f32.xlu1 %v1996_v23  ;;  %v3905_v27 = vpop.eup %3036  ;;  %v1976_v32 = vmul.f32 1.442695, %v1961_v11 }
 0x795   : > { %v1990_v0 = vsel %vm481_vm0, %v3905_v27, 0.0  ;;  %v3910_v43 = vpop.eup %3038 }
 0x796   : > { %1991 = vadd.xlane.f32.xlu0 %v1990_v0  ;;  %v1993_v39 = vsel %vm481_vm0, %v3910_v43, 0.0 }
 0x7a9   : > { %v2082_v1 = vpop.permute.xlu1 %2081 }
 0x7aa   : > { %2094 = vmatpush.bf16.msrb.mxu2 %v2082_v1  ;;  %2056 = vrot.lane.b32.xlu0 %v3401_v8, %s3088_s30  ;;  %v4199_v8 = vpack.i.bf16 %v3827_v51, %v3820_v54 }
 0x7ab   : > { %1994 = vadd.xlane.f32.xlu2 %v1993_v39 }
 0x7ad   : > { %2808 = vrot.lane.b32.xlu1 %v4197_v10, %s3089_s13 }
 0x7b5   : > { %2828 = vrot.lane.b32.xlu1 %v4198_v50, %s3089_s13 }
 0x7bd   : > { %2853 = vrot.lane.b32.xlu1 %v4199_v8, %s3090_s14 }
 0x7be   : > { %v1980_v40 = vpop.xlane.xlu0 %1979 }
 0x7bf   : > { %3040 = vrcp.f32 %v1980_v40 }
 0x7c3   : > { %2143 = vrot.lane.b32.xlu2 %v3405_v12, %s3088_s30 }
 0x7c5   : > { %2858 = vrot.lane.b32.xlu1 %v4200_v19, %s3089_s13  ;;  %v3041_v29 = vpop.eup %3040 }
 0x7c6   : > { %v1983_v45 = vpop.xlane.xlu2 %1982  ;;  %v2010_v54 = vmul.f32 %v3041_v29, %v3883_v48 }
 0x7c7   : > { %3042 = vrcp.f32 %v1983_v45 }
 0x7c8   : > { %3044 = vpow2.f32 %v1976_v32  ;;  %v2018_v51 = vpack.c.bf16 %v2010_v54, %v2010_v54 }
 0x7ca   : > { %v2028_v0 = vunpack.c.l.b16 %v2018_v51 }
 0x7cb   : > { %2106 = vrot.lane.b32.xlu2 %v3247_v49, %s3088_s30 }
 0x7cd   : > { %2883 = vrot.lane.b32.xlu1 %v4201_v4, %s3090_s14  ;;  %v3043_v12 = vpop.eup %3042 }
 0x7ce   : > { %v2011_v16 = vmul.f32 %v3043_v12, %v3887_v44  ;;  %v3943_v6 = vpop.eup %3044  ;;  %v4204_v44 = vpack.i.bf16 %v3624_v47, %v3618_v17 }
 0x7cf   : > { %v1999_v49 = vsel %vm481_vm0, %v3943_v6, 0.0 }
 0x7d0   : > { %v2019_v23 = vpack.c.bf16 %v2011_v16, %v2011_v16 }
 0x7d2   : > { %v2029_v58 = vunpack.c.l.b16 %v2019_v23 }
 0x7d3   : > { %2160 = vrot.lane.b32.xlu2 %v3412_v42, %s3088_s30 }
 0x7d4   : > { %v2030_v48 = vpack.c.b16 %v2029_v58, %v2028_v0  ;;  %2000 = vadd.xlane.f32.xlu0 %v1999_v49 }
 0x7d5   : > { %2888 = vrot.lane.b32.xlu1 %v4202_v9, %s3089_s13  ;;  %v1986_v2 = vpop.xlane.xlu0 %1985 }
 0x7d6   : > { %2757 = vmatmul.msk.bf16.vlgmr.msra.gmra.mxu0 %vm481_vm0, %v2030_v48 }
 0x7db   : > { %2177 = vrot.lane.b32.xlu2 %v3430_v22, %s3088_s30  ;;  %v4206_v22 = vpack.i.bf16 %v3803_v7, %v3799_v52  ;;  %s3091_s30 = smov 12  }
 0x7dd   : > { %2913 = vrot.lane.b32.xlu1 %v4203_v5, %s3090_s14  ;;  %v1989_v42 = vpop.xlane.xlu2 %1988 }
 0x7de   : > { %3046 = vrcp.f32 %v1989_v42 }
 0x7df   : > { %3048 = vrcp.f32 %v1986_v2  ;;  %v2786_v2 = vld [vmem:[%s4184_s8] sm:$0xff] }
 0x7e3   : > { %2813 = vrot.lane.b32.xlu2 %v4204_v44, %s3089_s13 }
 0x7e4   : > { %v3047_v21 = vpop.eup %3046 }
 0x7e5   : > { %v2127_v25 = vpop.permute.xlu2 %2126  ;;  %v3049_v17 = vpop.eup %3048  ;;  %v2013_v47 = vmul.f32 %v3047_v21, %v3895_v36 }
 0x7e6   : > { %2136 = vmatpush.bf16.msrb.mxu0 %v2127_v25  ;;  %v2012_v37 = vmul.f32 %v3049_v17, %v3891_v20 }
 0x7e7   : > { %v2021_v56 = vpack.c.bf16 %v2013_v47, %v2013_v47 }
 0x7e8   : > { %2818 = vrot.lane.b32.xlu0 %v4205_v26, %s3090_s14  ;;  %v2020_v31 = vpack.c.bf16 %v2012_v37, %v2012_v37 }
 0x7e9   : > { %2761 = vmatmul.msk.bf16.vlgmr.msrb.gmra.mxu0 %vm481_vm0, %v2030_v48  ;;  %v2054_v33 = vunpack.c.l.b16 %v2021_v56 }
 0x7ea   : > { %v2053_v1 = vunpack.c.l.b16 %v2020_v31  ;;  %2471 = vmatpush.bf16.msra.mxu0 %v2786_v2 }
 0x7eb   : > { %2823 = vrot.lane.b32.xlu2 %v4206_v22, %s3090_s14  ;;  %v4208_v22 = vpack.i.bf16 %v3810_v38, %v3801_v46 }
 0x7ec   : > { %v2055_v10 = vpack.c.b16 %v2054_v33, %v2053_v1 }
 0x807   : > { %v1998_v4 = vpop.xlane.xlu1 %1997 }
 0x809   : > { %v1992_v14 = vpop.xlane.xlu0 %1991 }
 0x80a   : > { %3050 = vrcp.f32 %v1992_v14  ;;  %v4209_v14 = vpack.i.bf16 %v3653_v13, %v3651_v30 }
 0x810   : > { %v3051_v7 = vpop.eup %3050 }
 0x811   : > { %v2014_v50 = vmul.f32 %v3051_v7, %v3905_v27 }
 0x813   : > { %v2022_v36 = vpack.c.bf16 %v2014_v50, %v2014_v50 }
 0x815   : > { %v2078_v19 = vunpack.c.l.b16 %v2022_v36 }
 0x81c   : > { %v2057_v39 = vpop.permute.xlu0 %2056 }
 0x81d   : > { %2069 = vmatpush.bf16.msra.mxu1 %v2057_v39 }
 0x81e   : > { %v1995_v52 = vpop.xlane.xlu2 %1994 }
 0x81f   : > { %3052 = vrcp.f32 %v1995_v52  ;;  %v2809_v46 = vpop.permute.xlu1 %2808 }
 0x820   : > { %2758 = vmatmul.msk.bf16.vlgmr.msra.gmra.mxu1 %vm481_vm0, %v2055_v10  ;;  %3054 = vrcp.f32 %v1998_v4  ;;  %v2811_v31 = vunpack.i.h.bf16 %v2809_v46  ;;  %v2810_v33 = vunpack.i.l.bf16 %v2809_v46  ;;  %v4212_v4 = vpack.i.bf16 %v3849_v62, %v3847_v15 }
 0x822   : > { %v2291_v7 = vsel %vm693_vm1, %v3444_v28, %v2811_v31  ;;  %v2290_v30 = vsel %vm693_vm1, %v3442_v24, %v2810_v33  ;;  %v4210_v24 = vpack.i.bf16 %v3823_v41, %v3815_v53 }
 0x825   : > { %v3053_v8 = vpop.eup %3052 }
 0x826   : > { %v2015_v20 = vmul.f32 %v3053_v8, %v3910_v43  ;;  %v2144_v40 = vpop.permute.xlu2 %2143  ;;  %v3055_v12 = vpop.eup %3054 }
 0x827   : > { %2153 = vmatpush.bf16.msrb.mxu1 %v2144_v40  ;;  %v2016_v51 = vmul.f32 %v3055_v12, %v3901_v18  ;;  %v4207_v18 = vpack.i.bf16 %v3635_v61, %v3628_v55 }
 0x828   : > { %v2023_v11 = vpack.c.bf16 %v2015_v20, %v2015_v20 }
 0x829   : > { %v2024_v23 = vpack.c.bf16 %v2016_v51, %v2016_v51 }
 0x82a   : > { %v2079_v32 = vunpack.c.l.b16 %v2023_v11 }
 0x82b   : > { %v2103_v49 = vunpack.c.l.b16 %v2024_v23  ;;  %2516 = vmatpush.bf16.msra.mxu1 %v2786_v2 }
 0x82c   : > { %v2080_v45 = vpack.c.b16 %v2079_v32, %v2078_v19 }
 0x82e   : > { %2759 = vmatmul.msk.bf16.vlgmr.msrb.gmra.mxu2 %vm481_vm0, %v2080_v45  ;;  %v2107_v29 = vpop.permute.xlu2 %2106 }
 0x82f   : > { %2119 = vmatpush.bf16.msra.mxu3 %v2107_v29  ;;  %v4211_v29 = vpack.i.bf16 %v3685_v35, %v3677_v34 }
 0x830   : > { %2762 = vmatmul.msk.bf16.vlgmr.msrb.gmra.mxu1 %vm481_vm0, %v2055_v10 }
 0x836   : > { %v2161_v54 = vpop.permute.xlu2 %2160 }
 0x837   : > { %2170 = vmatpush.bf16.msra.mxu2 %v2161_v54 }
 0x83e   : > { %2763 = vmatmul.msk.bf16.vlgmr.msra.gmra.mxu2 %vm481_vm0, %v2080_v45  ;;  %v2178_v27 = vpop.permute.xlu2 %2177 }
 0x83f   : > { %2187 = vmatpush.bf16.msrb.mxu3 %v2178_v27 }
 0x846   : > { %v2814_v21 = vpop.permute.xlu2 %2813 }
 0x847   : > { %v2001_v43 = vpop.xlane.xlu0 %2000  ;;  %v2816_v12 = vunpack.i.h.bf16 %v2814_v21  ;;  %v2815_v51 = vunpack.i.l.bf16 %v2814_v21 }
 0x848   : > { %3056 = vrcp.f32 %v2001_v43 }
 0x849   : > { %v2413_v35 = vsel %vm693_vm1, %v3452_v63, %v2816_v12  ;;  %v2412_v34 = vsel %vm693_vm1, %v3448_v59, %v2815_v51 }
 0x84e   : > { %v3057_v16 = vpop.eup %3056  ;;  %v2824_v37 = vpop.permute.xlu2 %2823 }
 0x84f   : > { %v2017_v0 = vmul.f32 %v3057_v16, %v3943_v6  ;;  %v2826_v53 = vunpack.i.h.bf16 %v2824_v37  ;;  %v2825_v41 = vunpack.i.l.bf16 %v2824_v37 }
 0x851   : > { %v2025_v58 = vpack.c.bf16 %v2017_v0, %v2017_v0  ;;  %v2421_v15 = vsel %vm2298_vm3, %v2413_v35, %v2826_v53 }
 0x853   : > { %v2104_v48 = vunpack.c.l.b16 %v2025_v58  ;;  %v2046_v9 = vpop.f32.mrf.mxu0 }
 0x855   : > { %v2105_v5 = vpack.c.b16 %v2104_v48, %v2103_v49  ;;  %v2420_v48 = vsel %vm2298_vm3, %v2412_v34, %v2825_v41  ;;  %v4067_v34 = vld [vmem:[%s4185_s9] ss:$0 sm:$0xff] }
 0x857   : > { %2760 = vmatmul.msk.bf16.vlgmr.msra.gmra.mxu3 %vm481_vm0, %v2105_v5 }
 0x85a   : > { %v2819_v56 = vpop.permute.xlu0 %2818 }
 0x85b   : > { %v2048_v42 = vpop.f32.mrf.mxu0  ;;  %v2821_v39 = vunpack.i.h.bf16 %v2819_v56  ;;  %v2820_v10 = vunpack.i.l.bf16 %v2819_v56 }
 0x85c   : > { %v2832_v44 = vpack.i.bf16 %v2048_v42, %v2046_v9 }
 0x85d   : > { %v2299_v20 = vsel %vm2298_vm3, %v2290_v30, %v2820_v10  ;;  %v2300_v40 = vsel %vm2298_vm3, %v2291_v7, %v2821_v39 }
 0x85e   : > { %2833 = vrot.lane.b32.xlu2 %v2832_v44, %s3091_s30 }
 0x866   : > { %2838 = vrot.lane.b32.xlu2 %v4207_v18, %s3089_s13  ;;  %v2138_v25 = vpop.f32.mrf.mxu0  ;;  %v2829_v18 = vpop.permute.xlu1 %2828 }
 0x867   : > { %2764 = vmatmul.msk.bf16.vlgmr.msrb.gmra.mxu3 %vm481_vm0, %v2105_v5 }
 0x86e   : > { %v2140_v6 = vpop.f32.mrf.mxu0  ;;  %v2854_v31 = vpop.permute.xlu1 %2853 }
 0x86f   : > { %v2842_v26 = vpack.i.bf16 %v2140_v6, %v2138_v25  ;;  %v2831_v6 = vunpack.i.h.bf16 %v2829_v18  ;;  %v2855_v7 = vunpack.i.l.bf16 %v2854_v31 }
 0x871   : > { %2843 = vrot.lane.b32.xlu0 %v2842_v26, %s3091_s30  ;;  %v2830_v26 = vunpack.i.l.bf16 %v2829_v18  ;;  %v3058_v18 = vld [vmem:[%s3183_s29] sm:$0xff] }
 0x873   : > { %v2292_v21 = vsel %vm693_vm1, %v3446_v57, %v2830_v26  ;;  %v4213_v57 = vld [vmem:[#allocation2_spill] sm:$0xff] }
 0x879   : > { %2848 = vrot.lane.b32.xlu0 %v4208_v22, %s3090_s14 }
 0x89d   : > { %v2071_v55 = vpop.f32.mrf.mxu1 }
 0x8a5   : > { %v2073_v61 = vpop.f32.mrf.mxu1 }
 0x8a6   : > { %v2862_v17 = vpack.i.bf16 %v2073_v61, %v2071_v55  ;;  %v2293_v61 = vsel %vm693_vm1, %v3450_v60, %v2831_v6 }
 0x8a8   : > { %2863 = vrot.lane.b32.xlu2 %v2862_v17, %s3091_s30 }
 0x8ad   : > { %v2155_v47 = vpop.f32.mrf.mxu1 }
 0x8b0   : > { %2868 = vrot.lane.b32.xlu2 %v4209_v14, %s3089_s13 }
 0x8b1   : > { %v2096_v38 = vpop.f32.mrf.mxu2 }
 0x8b5   : > { %v2157_v1 = vpop.f32.mrf.mxu1 }
 0x8b6   : > { %v2872_v52 = vpack.i.bf16 %v2157_v1, %v2155_v47 }
 0x8b8   : > { %2873 = vrot.lane.b32.xlu0 %v2872_v52, %s3091_s30  ;;  %v2834_v50 = vpop.permute.xlu2 %2833  ;;  %v2856_v52 = vunpack.i.h.bf16 %v2854_v31  ;;  %v3059_v31 = vld [vmem:[%s3183_s29 + $0x8] sm:$0xff] }
 0x8b9   : > { %v2836_v13 = vunpack.i.h.bf16 %v2834_v50  ;;  %v2835_v8 = vunpack.i.l.bf16 %v2834_v50  ;;  %v2098_v36 = vpop.f32.mrf.mxu2 }
 0x8ba   : > { %v2892_v11 = vpack.i.bf16 %v2098_v36, %v2096_v38 }
 0x8bb   : > { %v2309_v19 = vsel %vm2307_vm2, %v2300_v40, %v2836_v13  ;;  %v2308_v28 = vsel %vm2307_vm2, %v2299_v20, %v2835_v8  ;;  %v2859_v20 = vpop.permute.xlu1 %2858 }
 0x8bc   : > { %v2439_v32 = vpack.c.bf16 %v2309_v19, %v2308_v28  ;;  %2893 = vrot.lane.b32.xlu2 %v2892_v11, %s3091_s30  ;;  %v2860_v28 = vunpack.i.l.bf16 %v2859_v20 }
 0x8be   : > { %2769 = vmatmul.msk.bf16.vlgmr.msra.gmra.mxu0 %vm481_vm0, %v2439_v32 }
 0x8c0   : > { %2878 = vrot.lane.b32.xlu0 %v4210_v24, %s3090_s14  ;;  %v2839_v59 = vpop.permute.xlu2 %2838 }
 0x8c1   : > { %v2172_v45 = vpop.f32.mrf.mxu2  ;;  %v2841_v33 = vunpack.i.h.bf16 %v2839_v59  ;;  %v2840_v1 = vunpack.i.l.bf16 %v2839_v59 }
 0x8c3   : > { %v2415_v60 = vsel %vm693_vm1, %v3462_v3, %v2841_v33  ;;  %v2414_v39 = vsel %vm693_vm1, %v4213_v57, %v2840_v1  ;;  %v2861_v3 = vunpack.i.h.bf16 %v2859_v20 }
 0x8c4   : > { %2898 = vrot.lane.b32.xlu2 %v4211_v29, %s3089_s13  ;;  %v2422_v8 = vsel %vm2298_vm3, %v2414_v39, %v2855_v7  ;;  %v2423_v36 = vsel %vm2298_vm3, %v2415_v60, %v2856_v52  ;;  %v4218_v39 = vld [vmem:[#allocation8_spill] sm:$0xff]  ;;  %v4219_v52 = vld [vmem:[#allocation7_spill] sm:$0xff] }
 0x8c9   : > { %v2174_v54 = vpop.f32.mrf.mxu2 }
 0x8ca   : > { %v2902_v27 = vpack.i.bf16 %v2174_v54, %v2172_v45  ;;  %v4214_v54 = vld [vmem:[#allocation4_spill] sm:$0xff] }
 0x8cc   : > { %2903 = vrot.lane.b32.xlu0 %v2902_v27, %s3091_s30  ;;  %v2295_v27 = vsel %vm693_vm1, %v4214_v54, %v2861_v3 }
 0x8d4   : > { %2908 = vrot.lane.b32.xlu0 %v4212_v4, %s3090_s14  ;;  %v4215_v4 = vld [vmem:[#allocation3_spill] sm:$0xff] }
 0x8da   : > { %v2121_v43 = vpop.f32.mrf.mxu3 }
 0x8e2   : > { %v2123_v16 = vpop.f32.mrf.mxu3 }
 0x8e3   : > { %v2917_v23 = vpack.i.bf16 %v2123_v16, %v2121_v43  ;;  %v2844_v0 = vpop.permute.xlu0 %2843  ;;  %v2294_v43 = vsel %vm693_vm1, %v4215_v4, %v2860_v28  ;;  %v4220_v28 = vld [vmem:[#allocation10_spill] sm:$0xff] }
 0x8e4   : > { %v2846_v58 = vunpack.i.h.bf16 %v2844_v0  ;;  %v2845_v49 = vunpack.i.l.bf16 %v2844_v0  ;;  %v2884_v0 = vpop.permute.xlu1 %2883 }
 0x8e5   : > { %2918 = vrot.lane.b32.xlu2 %v2917_v23, %s3091_s30  ;;  %v2885_v59 = vunpack.i.l.bf16 %v2884_v0 }
 0x8e6   : > { %v2428_v62 = vsel %vm2307_vm2, %v2420_v48, %v2845_v49  ;;  %v2429_v9 = vsel %vm2307_vm2, %v2421_v15, %v2846_v58 }
 0x8e7   : > { %v2493_v5 = vpack.c.bf16 %v2429_v9, %v2428_v62  ;;  %v4216_v62 = vld [vmem:[#allocation6_spill] sm:$0xff] }
 0x8e9   : > { %2773 = vmatmul.msk.bf16.vlgmr.msra.gmra.mxu1 %vm481_vm0, %v2493_v5  ;;  %v4217_v5 = vld [vmem:[#allocation5_spill] sm:$0xff] }
 0x8ea   : > { %v2189_v42 = vpop.f32.mrf.mxu3 }
 0x8eb   : > { %v2849_v25 = vpop.permute.xlu0 %2848 }
 0x8ec   : > { %v2851_v22 = vunpack.i.h.bf16 %v2849_v25  ;;  %v2850_v2 = vunpack.i.l.bf16 %v2849_v25 }
 0x8ee   : > { %v2302_v37 = vsel %vm2298_vm3, %v2293_v61, %v2851_v22  ;;  %v2301_v14 = vsel %vm2298_vm3, %v2292_v21, %v2850_v2  ;;  %v2889_v61 = vpop.permute.xlu1 %2888 }
 0x8f2   : > { %v2191_v63 = vpop.f32.mrf.mxu3 }
 0x8f3   : > { %v2922_v44 = vpack.i.bf16 %v2191_v63, %v2189_v42 }
 0x8f5   : > { %2923 = vrot.lane.b32.xlu0 %v2922_v44, %s3091_s30  ;;  %v2886_v44 = vunpack.i.h.bf16 %v2884_v0 }
 0x8f6   : > { %v2914_v3 = vpop.permute.xlu1 %2913 }
 0x8f7   : > { %v2916_v54 = vunpack.i.h.bf16 %v2914_v3 }
 0x902   : > { %v2864_v55 = vpop.permute.xlu2 %2863 }
 0x903   : > { %v2866_v17 = vunpack.i.h.bf16 %v2864_v55  ;;  %v2865_v47 = vunpack.i.l.bf16 %v2864_v55 }
 0x905   : > { %v2311_v46 = vsel %vm2307_vm2, %v2302_v37, %v2866_v17  ;;  %v2310_v38 = vsel %vm2307_vm2, %v2301_v14, %v2865_v47  ;;  %v2891_v14 = vunpack.i.h.bf16 %v2889_v61 }
 0x906   : > { %v2440_v56 = vpack.c.bf16 %v2311_v46, %v2310_v38  ;;  %v2890_v46 = vunpack.i.l.bf16 %v2889_v61 }
 0x908   : > { %2770 = vmatmul.msk.bf16.gmra.mxu0 %vm481_vm0, %v2440_v56  ;;  %v2296_v7 = vsel %vm693_vm1, %v4219_v52, %v2890_v46 }
 0x90a   : > { %v2869_v10 = vpop.permute.xlu2 %2868 }
 0x90b   : > { %v2871_v58 = vunpack.i.h.bf16 %v2869_v10  ;;  %v2870_v49 = vunpack.i.l.bf16 %v2869_v10  ;;  %v2297_v10 = vsel %vm693_vm1, %v4218_v39, %v2891_v14  ;;  %v3066_v14 = vld [vmem:[%s3183_s29 + $0x20] sm:$0xff] }
 0x90d   : > { %v2417_v9 = vsel %vm693_vm1, %v4216_v62, %v2871_v58  ;;  %v2416_v42 = vsel %vm693_vm1, %v4217_v5, %v2870_v49 }
 0x90e   : > { %v2424_v2 = vsel %vm2298_vm3, %v2416_v42, %v2885_v59  ;;  %v2425_v55 = vsel %vm2298_vm3, %v2417_v9, %v2886_v44  ;;  %v3062_v42 = vld [vmem:[%s3183_s29 + $0x10] sm:$0xff] }
 0x916   : > { %v2894_v32 = vpop.permute.xlu2 %2893 }
 0x917   : > { %v2896_v12 = vunpack.i.h.bf16 %v2894_v32  ;;  %v2895_v51 = vunpack.i.l.bf16 %v2894_v32 }
 0x91e   : > { %v2899_v63 = vpop.permute.xlu2 %2898 }
 0x92a   : > { %v2874_v50 = vpop.permute.xlu0 %2873 }
 0x92b   : > { %v2876_v30 = vunpack.i.h.bf16 %v2874_v50  ;;  %v2875_v13 = vunpack.i.l.bf16 %v2874_v50 }
 0x92d   : > { %v2430_v40 = vsel %vm2307_vm2, %v2422_v8, %v2875_v13  ;;  %v2431_v11 = vsel %vm2307_vm2, %v2423_v36, %v2876_v30 }
 0x92e   : > { %v2494_v19 = vpack.c.bf16 %v2431_v11, %v2430_v40  ;;  %v2901_v11 = vunpack.i.h.bf16 %v2899_v63 }
 0x930   : > { %2774 = vmatmul.msk.bf16.gmra.mxu1 %vm481_vm0, %v2494_v19  ;;  %v2900_v19 = vunpack.i.l.bf16 %v2899_v63  ;;  %v2419_v32 = vsel %vm693_vm1, %v4220_v28, %v2901_v11  ;;  %v3071_v11 = vld [vmem:[%s3183_s29 + $0x38] sm:$0xff] }
 0x932   : > { %v2879_v24 = vpop.permute.xlu0 %2878 }
 0x933   : > { %v2881_v45 = vunpack.i.h.bf16 %v2879_v24  ;;  %v2880_v29 = vunpack.i.l.bf16 %v2879_v24  ;;  %v4221_v24 = vld [vmem:[#allocation9_spill] sm:$0xff] }
 0x935   : > { %v2304_v53 = vsel %vm2298_vm3, %v2295_v27, %v2881_v45  ;;  %v2303_v41 = vsel %vm2298_vm3, %v2294_v43, %v2880_v29  ;;  %v2418_v45 = vsel %vm693_vm1, %v4221_v24, %v2900_v19  ;;  %v2915_v27 = vunpack.i.l.bf16 %v2914_v3 }
 0x936   : > { %v2312_v16 = vsel %vm2307_vm2, %v2303_v41, %v2895_v51  ;;  %v2313_v23 = vsel %vm2307_vm2, %v2304_v53, %v2896_v12  ;;  %v3060_v53 = vld [vmem:[%s3311_s20] sm:$0xff] }
 0x937   : > { %v2441_v35 = vpack.c.bf16 %v2313_v23, %v2312_v16  ;;  %v2426_v16 = vsel %vm2298_vm3, %v2418_v45, %v2915_v27  ;;  %v2427_v23 = vsel %vm2298_vm3, %v2419_v32, %v2916_v54  ;;  %v3072_v32 = vld [vmem:[%s3311_s20 + $0x30] sm:$0xff]  ;;  %v3073_v54 = vld [vmem:[%s3311_s20 + $0x38] sm:$0xff] }
 0x939   : > { %2771 = vmatmul.msk.bf16.gmra.mxu0 %vm481_vm0, %v2441_v35 }
 0x93b   : > { %v2473_v48 = vpop.f32.mrf.mxu0 }
 0x93c   : > { %v2474_v15 = vadd.f32 %v4067_v34, %v2473_v48 }
 0x93e   : > { %v2538_v25 = vadd.f32 %v3058_v18, %v2474_v15  ;;  %v2904_v6 = vpop.permute.xlu0 %2903  ;;  %v3061_v15 = vld [vmem:[%s3311_s20 + $0x8] sm:$0xff]  ;;  %v3063_v18 = vld [vmem:[%s3183_s29 + $0x18] sm:$0xff] }
 0x93f   : > { %v2906_v26 = vunpack.i.h.bf16 %v2904_v6  ;;  %v2905_v22 = vunpack.i.l.bf16 %v2904_v6  ;;  %v2919_v56 = vpop.permute.xlu2 %2918 }
 0x940   : > { %2546 = vst.msk [vmem:[%s4079_s25] sm:$0xff] %vm481_vm0, %v2538_v25  ;;  %v2921_v50 = vunpack.i.h.bf16 %v2919_v56  ;;  %v2920_v30 = vunpack.i.l.bf16 %v2919_v56 }
 0x941   : > { %v2432_v21 = vsel %vm2307_vm2, %v2424_v2, %v2905_v22  ;;  %v2433_v17 = vsel %vm2307_vm2, %v2425_v55, %v2906_v26  ;;  %v3064_v22 = vld [vmem:[%s3311_s20 + $0x10] sm:$0xff] }
 0x942   : > { %v2495_v47 = vpack.c.bf16 %v2433_v17, %v2432_v21 }
 0x943   : > { %v2475_v37 = vpop.f32.mrf.mxu0 }
 0x944   : > { %v2476_v38 = vadd.f32 %v4067_v34, %v2475_v37  ;;  %2775 = vmatmul.msk.bf16.gmra.mxu1 %vm481_vm0, %v2495_v47  ;;  %v3065_v47 = vld [vmem:[%s3311_s20 + $0x18] sm:$0xff] }
 0x946   : > { %v2539_v33 = vadd.f32 %v3059_v31, %v2476_v38  ;;  %v2909_v1 = vpop.permute.xlu0 %2908  ;;  %v3067_v31 = vld [vmem:[%s3183_s29 + $0x28] sm:$0xff] }
 0x947   : > { %v2911_v60 = vunpack.i.h.bf16 %v2909_v1  ;;  %v2910_v57 = vunpack.i.l.bf16 %v2909_v1 }
 0x948   : > { %2547 = vst.msk [vmem:[%s4079_s25 + $0x8] sm:$0xff] %vm481_vm0, %v2539_v33 }
 0x949   : > { %v2306_v13 = vsel %vm2298_vm3, %v2297_v10, %v2911_v60  ;;  %v2305_v8 = vsel %vm2298_vm3, %v2296_v7, %v2910_v57  ;;  %v3068_v57 = vld [vmem:[%s3311_s20 + $0x20] sm:$0xff] }
 0x94a   : > { %v2314_v36 = vsel %vm2307_vm2, %v2305_v8, %v2920_v30  ;;  %v2315_v20 = vsel %vm2307_vm2, %v2306_v13, %v2921_v50  ;;  %v3069_v30 = vld [vmem:[%s3311_s20 + $0x28] sm:$0xff]  ;;  %v3070_v8 = vld [vmem:[%s3183_s29 + $0x30] sm:$0xff] }
 0x94b   : > { %v2442_v40 = vpack.c.bf16 %v2315_v20, %v2314_v36 }
 0x94d   : > { %2772 = vmatmul.msk.bf16.gmra.mxu0 %vm481_vm0, %v2442_v40 }
 0x966   : > { %v2518_v29 = vpop.f32.mrf.mxu1 }
 0x967   : > { %v2519_v4 = vadd.f32 %v4067_v34, %v2518_v29  ;;  %v2924_v43 = vpop.permute.xlu0 %2923 }
 0x968   : > { %v2926_v12 = vunpack.i.h.bf16 %v2924_v43  ;;  %v2925_v51 = vunpack.i.l.bf16 %v2924_v43 }
 0x969   : > { %v2554_v41 = vadd.f32 %v3060_v53, %v2519_v4 }
 0x96a   : > { %v2434_v0 = vsel %vm2307_vm2, %v2426_v16, %v2925_v51  ;;  %v2435_v35 = vsel %vm2307_vm2, %v2427_v23, %v2926_v12 }
 0x96b   : > { %2562 = vst.msk [vmem:[%s4111_s28] sm:$0xff] %vm481_vm0, %v2554_v41  ;;  %v2496_v58 = vpack.c.bf16 %v2435_v35, %v2434_v0 }
 0x96d   : > { %2776 = vmatmul.msk.bf16.gmra.mxu1 %vm481_vm0, %v2496_v58 }
 0x96e   : > { %v2520_v49 = vpop.f32.mrf.mxu1 }
 0x96f   : > { %v2521_v48 = vadd.f32 %v4067_v34, %v2520_v49 }
 0x971   : > { %v2555_v62 = vadd.f32 %v3061_v15, %v2521_v48 }
 0x973   : > { %2563 = vst.msk [vmem:[%s4111_s28 + $0x8] sm:$0xff] %vm481_vm0, %v2555_v62 }
 0x985   : > { %v2478_v9 = vpop.f32.mrf.mxu0 }
 0x986   : > { %v2479_v5 = vadd.f32 %v4067_v34, %v2478_v9 }
 0x988   : > { %v2540_v63 = vadd.f32 %v3062_v42, %v2479_v5 }
 0x98a   : > { %2548 = vst.msk [vmem:[%s4079_s25 + $0x10] sm:$0xff] %vm481_vm0, %v2540_v63 }
 0x98d   : > { %v2480_v44 = vpop.f32.mrf.mxu0 }
 0x98e   : > { %v2481_v59 = vadd.f32 %v4067_v34, %v2480_v44 }
 0x990   : > { %v2541_v25 = vadd.f32 %v3063_v18, %v2481_v59 }
 0x992   : > { %2549 = vst.msk [vmem:[%s4079_s25 + $0x18] sm:$0xff] %vm481_vm0, %v2541_v25 }
 0x9ad   : > { %v2523_v6 = vpop.f32.mrf.mxu1 }
 0x9ae   : > { %v2524_v26 = vadd.f32 %v4067_v34, %v2523_v6 }
 0x9b0   : > { %v2556_v2 = vadd.f32 %v3064_v22, %v2524_v26 }
 0x9b2   : > { %2564 = vst.msk [vmem:[%s4111_s28 + $0x10] sm:$0xff] %vm481_vm0, %v2556_v2 }
 0x9b5   : > { %v2525_v55 = vpop.f32.mrf.mxu1 }
 0x9b6   : > { %v2526_v61 = vadd.f32 %v4067_v34, %v2525_v55  ;;  %v2483_v21 = vpop.f32.mrf.mxu0 }
 0x9b7   : > { %v2484_v17 = vadd.f32 %v4067_v34, %v2483_v21 }
 0x9b8   : > { %v2557_v37 = vadd.f32 %v3065_v47, %v2526_v61 }
 0x9b9   : > { %v2542_v46 = vadd.f32 %v3066_v14, %v2484_v17 }
 0x9ba   : > { %2565 = vst.msk [vmem:[%s4111_s28 + $0x18] sm:$0xff] %vm481_vm0, %v2557_v37 }
 0x9bb   : > { %2550 = vst.msk [vmem:[%s4079_s25 + $0x20] sm:$0xff] %vm481_vm0, %v2542_v46 }
 0x9be   : > { %v2485_v38 = vpop.f32.mrf.mxu0 }
 0x9bf   : > { %v2486_v56 = vadd.f32 %v4067_v34, %v2485_v38 }
 0x9c1   : > { %v2543_v33 = vadd.f32 %v3067_v31, %v2486_v56  ;;  %v2528_v1 = vpop.f32.mrf.mxu1 }
 0x9c2   : > { %v2529_v60 = vadd.f32 %v4067_v34, %v2528_v1 }
 0x9c3   : > { %2551 = vst.msk [vmem:[%s4079_s25 + $0x28] sm:$0xff] %vm481_vm0, %v2543_v33 }
 0x9c4   : > { %v2558_v39 = vadd.f32 %v3068_v57, %v2529_v60 }
 0x9c6   : > { %2566 = vst.msk [vmem:[%s4111_s28 + $0x20] sm:$0xff] %vm481_vm0, %v2558_v39 }
 0x9c9   : > { %v2530_v10 = vpop.f32.mrf.mxu1 }
 0x9ca   : > { %v2531_v52 = vadd.f32 %v4067_v34, %v2530_v10  ;;  %v2488_v7 = vpop.f32.mrf.mxu0 }
 0x9cb   : > { %v2489_v50 = vadd.f32 %v4067_v34, %v2488_v7 }
 0x9cc   : > { %v2559_v13 = vadd.f32 %v3069_v30, %v2531_v52 }
 0x9cd   : > { %v2544_v36 = vadd.f32 %v3070_v8, %v2489_v50 }
 0x9ce   : > { %2567 = vst.msk [vmem:[%s4111_s28 + $0x28] sm:$0xff] %vm481_vm0, %v2559_v13 }
 0x9cf   : > { %2552 = vst.msk [vmem:[%s4079_s25 + $0x30] sm:$0xff] %vm481_vm0, %v2544_v36 }
 0x9d2   : > { %v2490_v20 = vpop.f32.mrf.mxu0 }
 0x9d3   : > { %v2491_v40 = vadd.f32 %v4067_v34, %v2490_v20 }
 0x9d5   : > { %v2545_v19 = vadd.f32 %v3071_v11, %v2491_v40 }
 0x9d7   : > { %2553 = vst.msk [vmem:[%s4079_s25 + $0x38] sm:$0xff] %vm481_vm0, %v2545_v19 }
 0x9ea   : > { %v2533_v3 = vpop.f32.mrf.mxu1 }
 0x9eb   : > { %v2534_v28 = vadd.f32 %v4067_v34, %v2533_v3 }
 0x9ed   : > { %v2560_v24 = vadd.f32 %v3072_v32, %v2534_v28 }
 0x9ef   : > { %2568 = vst.msk [vmem:[%s4111_s28 + $0x30] sm:$0xff] %vm481_vm0, %v2560_v24 }
 0x9f2   : > { %v2535_v45 = vpop.f32.mrf.mxu1 }
 0x9f3   : > { %v2536_v29 = vadd.f32 %v4067_v34, %v2535_v45 }
 0x9f5   : > { %v2561_v27 = vadd.f32 %v3073_v54, %v2536_v29 }
 0x9f7   : > { %2569 = vst.msk [vmem:[%s4111_s28 + $0x38] sm:$0xff] %vm481_vm0, %v2561_v27 }
 0x9f8 PF: > { %s22_s17 = sadd.s32 1, %s3080_s17  }
 0x9f9   : > { %p19_p4 = scmp.ge.s32.totalorder %s22_s17, 4  }
 0x9fb   :  { %21 = sbr.rel (!%p19_p4) target bundleno = 1 (0x1), region = 108 }

</bundles_post_ra>
